<compile_context>
chip_gen: v7x
topology: tpu7x:2x2x1
jax: 0.10.0
libtpu: 0.0.40
codegen_flags: <defaults>
</compile_context>

<pallas_src>
import functools

import jax
import jax.numpy as jnp
from jax.experimental import pallas as pl
from jax.experimental.pallas import tpu as pltpu

BN_EPS = 1e-5
TM = 512            # row tile (sublane dim of A_hat tiles / outputs)
TK = 1024           # contraction tile (lane dim of A_hat tiles); multiple of TM
LANE = 128          # lane padding for feature dims
X_RESIDENT_BYTES = 8 * 1024 * 1024   # keep padded x fully VMEM-resident below this
# TODO(synk): v7x-only fp8 quantization of the A_hat stream (values in [0,1]) would
# halve the dominant HBM stream; not implemented here to stay portable to v5e/v6e.


def _round_up(x, m):
    return (x + m - 1) // m * m


# ---------------------------------------------------------------------------
# Pass 1: tiled (A_hat @ x) with f32 accumulator; at the last contraction step
#         the epilogue computes h_pre = agg @ W + b1, residual = x_i @ Ws + bs,
#         and masked per-row-tile BN channel sum / sum-of-squares.
# ---------------------------------------------------------------------------
def gcn_matmul_kernel(a_ref, xk_ref, xi_ref, w_ref, b1_ref, ws_ref, bs_ref,
                      hpre_ref, res_ref, psum_ref, psumsq_ref, acc_ref,
                      *, num_nodes, tm, tk, x_resident):
    # NOTE: program_id / num_programs only at the kernel top level (never inside
    # pl.when bodies) so the interpret fallback can lower the cond branches.
    i = pl.program_id(0)
    k = pl.program_id(1)
    nk = pl.num_programs(1)

    @pl.when(k == 0)
    def _():
        acc_ref[...] = jnp.zeros_like(acc_ref)

    if x_resident:
        xk = xk_ref[pl.ds(k * tk, tk), :]       # slice the resident x copy
    else:
        xk = xk_ref[...]                        # streamed per-k block

    # bf16 x bf16 -> f32 MXU accumulation of agg = A_hat @ x.
    acc_ref[...] += jnp.dot(a_ref[...], xk, preferred_element_type=jnp.float32)

    @pl.when(k == nk - 1)
    def _():
        agg = acc_ref[...]                                          # [tm, Cin_pad] f32
        # GCNConv feature transform + bias (bf16 operands, f32 accumulation).
        h = jnp.dot(agg.astype(jnp.bfloat16), w_ref[...],
                    preferred_element_type=jnp.float32) + b1_ref[...]
        hpre_ref[...] = h.astype(hpre_ref.dtype)
        # Linear shortcut on the row tile of x.
        res = jnp.dot(xi_ref[...], ws_ref[...],
                      preferred_element_type=jnp.float32) + bs_ref[...]
        res_ref[...] = res.astype(res_ref.dtype)
        # Masked partial BN statistics in f32 (exclude zero-padded rows).
        rows = jax.lax.broadcasted_iota(jnp.int32, h.shape, 0) + i * tm
        mask = (rows < num_nodes).astype(jnp.float32)
        hm = h * mask
        s = jnp.sum(hm, axis=0, keepdims=True)                      # [1, Cout_pad]
        sq = jnp.sum(hm * hm, axis=0, keepdims=True)
        srow = jax.lax.broadcasted_iota(jnp.int32, psum_ref.shape, 0)
        psum_ref[...] = jnp.where(srow == 0,
                                  jnp.broadcast_to(s, psum_ref.shape), 0.0)
        psumsq_ref[...] = jnp.where(srow == 0,
                                    jnp.broadcast_to(sq, psumsq_ref.shape), 0.0)


# ---------------------------------------------------------------------------
# Pass 2: folded BN (scale*h + shift), ReLU, shortcut add, final ReLU.
# scale/shift are precomputed once (tiny reduction) between the two calls.
# ---------------------------------------------------------------------------
def bn_epilogue_kernel(hpre_ref, res_ref, scale_ref, shift_ref, o_ref):
    h = hpre_ref[...].astype(jnp.float32) * scale_ref[...] + shift_ref[...]
    h = jnp.maximum(h, 0.0)
    # TODO(synk): dropout applied as identity (eval semantics); PyTorch's
    # training-mode dropout RNG stream is not reproduced.
    o_ref[...] = jnp.maximum(h + res_ref[...].astype(jnp.float32), 0.0)


def build_gcn_norm_adj_padded(edge_index, num_nodes, n_rows, n_cols):
    """Dense D^-1/2 (A + I) D^-1/2 scattered directly into the padded buffer."""
    # TODO(synk): for realistic graph sparsity, replace the dense A_hat with a
    # block-sparse layout + scalar-prefetched block list so all-zero tiles are
    # never DMA'd; dense streaming is kept here for generality.
    loops = jnp.arange(num_nodes, dtype=edge_index.dtype)
    row = jnp.concatenate([edge_index[0], loops])   # source
    col = jnp.concatenate([edge_index[1], loops])   # target
    w = jnp.ones(row.shape[0], dtype=jnp.float32)
    deg = jnp.zeros((num_nodes,), jnp.float32).at[col].add(w)
    dis = jnp.where(deg > 0, jax.lax.rsqrt(deg), 0.0)
    norm = dis[row] * w * dis[col]
    # out[target] += norm * x[source]  ->  A_hat[target, source] = norm
    a = jnp.zeros((n_rows, n_cols), jnp.float32).at[col, row].add(norm)
    return a.astype(jnp.bfloat16)


@functools.partial(jax.jit, static_argnames=("num_nodes",))
def residual_block_forward(x, edge_index, params, num_nodes):
    cin = x.shape[1]
    cout = params["conv_w"].shape[0]
    n_rows = _round_up(num_nodes, TM)       # target-node (output-row) padding
    n_cols = _round_up(num_nodes, TK)       # source-node (contraction) padding
    cin_pad = _round_up(cin, LANE)
    cout_pad = _round_up(cout, LANE)
    n_i = n_rows // TM
    n_k = n_cols // TK

    # Keep x fully VMEM-resident when small enough (DMA'd exactly once);
    # otherwise stream one (TK, Cin_pad) block per contraction step.
    x_resident = n_cols * cin_pad * 2 <= X_RESIDENT_BYTES

    # --- build & pad operands (lane-dense feature dims, bf16 big streams) ---
    a_p = build_gcn_norm_adj_padded(edge_index, num_nodes, n_rows, n_cols)
    x_p = jnp.zeros((n_cols, cin_pad), jnp.bfloat16).at[
        :num_nodes, :cin].set(x.astype(jnp.bfloat16))

    w_p = jnp.zeros((cin_pad, cout_pad), jnp.bfloat16).at[
        :cin, :cout].set(params["conv_w"].T.astype(jnp.bfloat16))
    ws_p = jnp.zeros((cin_pad, cout_pad), jnp.bfloat16).at[
        :cin, :cout].set(params["sc_w"].T.astype(jnp.bfloat16))

    def pad_vec(v):
        return jnp.zeros((1, cout_pad), jnp.float32).at[0, :cout].set(v)

    b1_p = pad_vec(params["conv_b"])
    gamma_p = pad_vec(params["bn_gamma"])
    beta_p = pad_vec(params["bn_beta"])
    bs_p = pad_vec(params["sc_b"])

    if x_resident:
        xk_spec = pl.BlockSpec((n_cols, cin_pad), lambda i, k: (0, 0))   # one DMA
    else:
        xk_spec = pl.BlockSpec((TK, cin_pad), lambda i, k: (k, 0))       # stream once

    # --- pass 1: tiled matmuls + shortcut + partial BN stats ---
    kernel1 = functools.partial(gcn_matmul_kernel, num_nodes=num_nodes,
                                tm=TM, tk=TK, x_resident=x_resident)
    hpre, res, psum, psumsq = pl.pallas_call(
        kernel1,
        out_shape=(
            jax.ShapeDtypeStruct((n_rows, cout_pad), jnp.bfloat16),    # h_pre
            jax.ShapeDtypeStruct((n_rows, cout_pad), jnp.bfloat16),    # residual
            jax.ShapeDtypeStruct((n_i * 8, cout_pad), jnp.float32),    # partial sum
            jax.ShapeDtypeStruct((n_i * 8, cout_pad), jnp.float32),    # partial sumsq
        ),
        grid=(n_i, n_k),
        in_specs=[
            pl.BlockSpec((TM, TK), lambda i, k: (i, k)),               # A_hat tile
            xk_spec,                                                   # x (contraction)
            pl.BlockSpec((TM, cin_pad), lambda i, k: (i, 0)),          # x (shortcut rows)
            pl.BlockSpec((cin_pad, cout_pad), lambda i, k: (0, 0)),    # W   (resident)
            pl.BlockSpec((1, cout_pad), lambda i, k: (0, 0)),          # b1
            pl.BlockSpec((cin_pad, cout_pad), lambda i, k: (0, 0)),    # Ws  (resident)
            pl.BlockSpec((1, cout_pad), lambda i, k: (0, 0)),          # bs
        ],
        out_specs=(
            pl.BlockSpec((TM, cout_pad), lambda i, k: (i, 0)),
            pl.BlockSpec((TM, cout_pad), lambda i, k: (i, 0)),
            pl.BlockSpec((8, cout_pad), lambda i, k: (i, 0)),
            pl.BlockSpec((8, cout_pad), lambda i, k: (i, 0)),
        ),
        scratch_shapes=[pltpu.VMEM((TM, cin_pad), jnp.float32)],
        compiler_params=pltpu.CompilerParams(
            dimension_semantics=("parallel", "arbitrary")),
    )(a_p, x_p, x_p, w_p, b1_p, ws_p, bs_p)

    # --- BN statistics finalize: tiny [n_i*8, C] -> [1, C] reduction, done once
    #     in plain JAX between the two kernels (hoisted out of the per-tile pass). ---
    inv_n = 1.0 / num_nodes
    mean = jnp.sum(psum, axis=0, keepdims=True) * inv_n
    var = jnp.maximum(jnp.sum(psumsq, axis=0, keepdims=True) * inv_n - mean * mean,
                      0.0)                       # biased variance (training-mode BN)
    scale = gamma_p * jax.lax.rsqrt(var + BN_EPS)
    shift = beta_p - mean * scale

    # --- pass 2: BN FMA + ReLU + shortcut add + final ReLU ---
    out_p = pl.pallas_call(
        bn_epilogue_kernel,
        out_shape=jax.ShapeDtypeStruct((n_rows, cout_pad), jnp.float32),
        grid=(n_i,),
        in_specs=[
            pl.BlockSpec((TM, cout_pad), lambda i: (i, 0)),
            pl.BlockSpec((TM, cout_pad), lambda i: (i, 0)),
            pl.BlockSpec((1, cout_pad), lambda i: (0, 0)),
            pl.BlockSpec((1, cout_pad), lambda i: (0, 0)),
        ],
        out_specs=pl.BlockSpec((TM, cout_pad), lambda i: (i, 0)),
        compiler_params=pltpu.CompilerParams(
            dimension_semantics=("parallel",)),
    )(hpre, res, scale, shift)

    return out_p[:num_nodes, :cout]


def xavier_uniform(key, shape, gain):
    """Torch nn.init.xavier_uniform_ for a [fan_out, fan_in] weight."""
    fan_out, fan_in = shape
    bound = gain * (6.0 / (fan_in + fan_out)) ** 0.5
    return jax.random.uniform(key, shape, jnp.float32, -bound, bound)


def init_params(key, in_channels, out_channels):
    k1, k2 = jax.random.split(key)
    relu_gain = 2.0 ** 0.5  # nn.init.calculate_gain('relu')
    return {
        "conv_w": xavier_uniform(k1, (out_channels, in_channels), relu_gain),
        "conv_b": jnp.zeros((out_channels,), jnp.float32),
        "bn_gamma": jnp.ones((out_channels,), jnp.float32),
        "bn_beta": jnp.zeros((out_channels,), jnp.float32),
        "sc_w": xavier_uniform(k2, (out_channels, in_channels), 1.0),
        "sc_b": jnp.zeros((out_channels,), jnp.float32),
    }


if __name__ == "__main__":
    key = jax.random.PRNGKey(0)
    k_x, k_p = jax.random.split(key)

    num_nodes, in_channels, out_channels = 16, 8, 32
    x = jax.random.normal(k_x, (num_nodes, in_channels), jnp.float32)

    # Deterministic ring graph, edges in both directions: edge_index [2, 2N]
    src = jnp.arange(num_nodes, dtype=jnp.int32)
    dst = (src + 1) % num_nodes
    edge_index = jnp.concatenate(
        [jnp.stack([src, dst]), jnp.stack([dst, src])], axis=1)

    params = init_params(k_p, in_channels, out_channels)

    out = residual_block_forward(x, edge_index, params, num_nodes=num_nodes)
    jax.block_until_ready(out)
    assert out.shape == (num_nodes, out_channels)
    assert bool(jnp.all(jnp.isfinite(out)))
    print("KERNEL_OK")
</pallas_src>

<mosaic_0001>
module attributes {stable_mosaic.version = 11 : i64} {
  func.func private @main(%arg0: i32) attributes {dimension_semantics = [#tpu.dimension_semantics<core_parallel>], iteration_bounds = array<i64: 2>, tpu.core_type = #tpu.core_type<sc_scalar_subcore>, window_params = []} {
    return
  }
}

module attributes {stable_mosaic.version = 11 : i64} {
  func.func private @main(%arg0: i32) attributes {dimension_semantics = [#tpu.dimension_semantics<core_parallel>], iteration_bounds = array<i64: 2>, tpu.core_type = #tpu.core_type<sc_scalar_subcore>, window_params = []} {
    return
  }
}

module attributes {stable_mosaic.version = 11 : i64} {
  func.func @gcn_matmul_kernel(%arg0: i32, %arg1: i32, %arg2: memref<512x1024xbf16, #tpu.memory_space<vmem>>, %arg3: memref<1024x128xbf16, #tpu.memory_space<vmem>>, %arg4: memref<512x128xbf16, #tpu.memory_space<vmem>>, %arg5: memref<128x128xbf16, #tpu.memory_space<vmem>>, %arg6: memref<1x128xf32, #tpu.memory_space<vmem>>, %arg7: memref<128x128xbf16, #tpu.memory_space<vmem>>, %arg8: memref<1x128xf32, #tpu.memory_space<vmem>>, %arg9: memref<512x128xbf16, #tpu.memory_space<vmem>>, %arg10: memref<512x128xbf16, #tpu.memory_space<vmem>>, %arg11: memref<8x128xf32, #tpu.memory_space<vmem>>, %arg12: memref<8x128xf32, #tpu.memory_space<vmem>>, %arg13: memref<512x128xf32, #tpu.memory_space<vmem>>) attributes {dimension_semantics = [#tpu.dimension_semantics<parallel>, #tpu.dimension_semantics<arbitrary>], iteration_bounds = array<i64: 1, 1>, scalar_prefetch = 0 : i64, scratch_operands = 1 : i64, tpu.core_type = #tpu.core_type<tc>, window_params = [{transform_indices = @transform_0, window_bounds = array<i64: 512, 1024>}, {pipeline_mode = #tpu.pipeline_mode<synchronous>, transform_indices = @transform_1, window_bounds = array<i64: 1024, 128>}, {transform_indices = @transform_2, window_bounds = array<i64: 512, 128>}, {pipeline_mode = #tpu.pipeline_mode<synchronous>, transform_indices = @transform_3, window_bounds = array<i64: 128, 128>}, {pipeline_mode = #tpu.pipeline_mode<synchronous>, transform_indices = @transform_4, window_bounds = array<i64: 1, 128>}, {pipeline_mode = #tpu.pipeline_mode<synchronous>, transform_indices = @transform_5, window_bounds = array<i64: 128, 128>}, {pipeline_mode = #tpu.pipeline_mode<synchronous>, transform_indices = @transform_6, window_bounds = array<i64: 1, 128>}, {transform_indices = @transform_7, window_bounds = array<i64: 512, 128>}, {transform_indices = @transform_8, window_bounds = array<i64: 512, 128>}, {transform_indices = @transform_9, window_bounds = array<i64: 8, 128>}, {transform_indices = @transform_10, window_bounds = array<i64: 8, 128>}]} {
    %c0_i32 = arith.constant 0 : i32
    %0 = arith.cmpi eq, %arg1, %c0_i32 : i32
    %1 = arith.extui %0 : i1 to i32
    %c0_i32_0 = arith.constant 0 : i32
    %2 = arith.cmpi ne, %1, %c0_i32_0 : i32
    scf.if %2 {
      %cst_9 = arith.constant 0.000000e+00 : f32
      %14 = vector.broadcast %cst_9 : f32 to vector<512x128xf32>
      %c0_10 = arith.constant 0 : index
      %c0_11 = arith.constant 0 : index
      %15 = vector.load %arg13[%c0_10, %c0_11] : memref<512x128xf32, #tpu.memory_space<vmem>>, vector<512x128xf32>
      tpu.vector_store %arg13[%c0_10, %c0_11], %14 {strides = array<i32>} : memref<512x128xf32, #tpu.memory_space<vmem>>, vector<512x128xf32>,
    } else {
    }
    %c1024_i32 = arith.constant 1024 : i32
    %3 = arith.muli %arg1, %c1024_i32 : i32
    %4 = arith.index_cast %3 : i32 to index
    %c0 = arith.constant 0 : index
    %5 = vector.load %arg3[%4, %c0] : memref<1024x128xbf16, #tpu.memory_space<vmem>>, vector<1024x128xbf16>
    %c0_1 = arith.constant 0 : index
    %c0_2 = arith.constant 0 : index
    %6 = vector.load %arg13[%c0_1, %c0_2] : memref<512x128xf32, #tpu.memory_space<vmem>>, vector<512x128xf32>
    %c0_3 = arith.constant 0 : index
    %c0_4 = arith.constant 0 : index
    %7 = vector.load %arg2[%c0_3, %c0_4] : memref<512x1024xbf16, #tpu.memory_space<vmem>>, vector<512x1024xbf16>
    %cst = arith.constant dense<0.000000e+00> : vector<512x128xf32>
    %8 = tpu.matmul %7, %5, %cst {dimension_numbers = #tpu.dot_dimension_numbers<[1], [0], [0], [1], [0, 0, 1, 1], [], []>} : vector<512x1024xbf16>, vector<1024x128xbf16>, vector<512x128xf32> -> vector<512x128xf32>
    %9 = arith.addf %6, %8 : vector<512x128xf32>
    %c0_5 = arith.constant 0 : index
    %c0_6 = arith.constant 0 : index
    %10 = vector.load %arg13[%c0_5, %c0_6] : memref<512x128xf32, #tpu.memory_space<vmem>>, vector<512x128xf32>
    tpu.vector_store %arg13[%c0_5, %c0_6], %9 {strides = array<i32>} : memref<512x128xf32, #tpu.memory_space<vmem>>, vector<512x128xf32>,
    %c0_i32_7 = arith.constant 0 : i32
    %11 = arith.cmpi eq, %arg1, %c0_i32_7 : i32
    %12 = arith.extui %11 : i1 to i32
    %c0_i32_8 = arith.constant 0 : i32
    %13 = arith.cmpi ne, %12, %c0_i32_8 : i32
    scf.if %13 {
      %c0_9 = arith.constant 0 : index
      %c0_10 = arith.constant 0 : index
      %14 = vector.load %arg13[%c0_9, %c0_10] : memref<512x128xf32, #tpu.memory_space<vmem>>, vector<512x128xf32>
      %15 = arith.truncf %14 : vector<512x128xf32> to vector<512x128xbf16>
      %c0_11 = arith.constant 0 : index
      %c0_12 = arith.constant 0 : index
      %16 = vector.load %arg5[%c0_11, %c0_12] : memref<128x128xbf16, #tpu.memory_space<vmem>>, vector<128x128xbf16>
      %cst_13 = arith.constant dense<0.000000e+00> : vector<512x128xf32>
      %17 = tpu.matmul %15, %16, %cst_13 {dimension_numbers = #tpu.dot_dimension_numbers<[1], [0], [0], [1], [0, 0, 1, 1], [], []>} : vector<512x128xbf16>, vector<128x128xbf16>, vector<512x128xf32> -> vector<512x128xf32>
      %c0_14 = arith.constant 0 : index
      %c0_15 = arith.constant 0 : index
      %18 = vector.load %arg6[%c0_14, %c0_15] : memref<1x128xf32, #tpu.memory_space<vmem>>, vector<1x128xf32>
      %19 = vector.broadcast %18 : vector<1x128xf32> to vector<512x128xf32>
      %20 = arith.addf %17, %19 : vector<512x128xf32>
      %21 = arith.truncf %20 : vector<512x128xf32> to vector<512x128xbf16>
      %c0_16 = arith.constant 0 : index
      %c0_17 = arith.constant 0 : index
      %22 = vector.load %arg9[%c0_16, %c0_17] : memref<512x128xbf16, #tpu.memory_space<vmem>>, vector<512x128xbf16>
      tpu.vector_store %arg9[%c0_16, %c0_17], %21 {strides = array<i32>} : memref<512x128xbf16, #tpu.memory_space<vmem>>, vector<512x128xbf16>,
      %c0_18 = arith.constant 0 : index
      %c0_19 = arith.constant 0 : index
      %23 = vector.load %arg4[%c0_18, %c0_19] : memref<512x128xbf16, #tpu.memory_space<vmem>>, vector<512x128xbf16>
      %c0_20 = arith.constant 0 : index
      %c0_21 = arith.constant 0 : index
      %24 = vector.load %arg7[%c0_20, %c0_21] : memref<128x128xbf16, #tpu.memory_space<vmem>>, vector<128x128xbf16>
      %cst_22 = arith.constant dense<0.000000e+00> : vector<512x128xf32>
      %25 = tpu.matmul %23, %24, %cst_22 {dimension_numbers = #tpu.dot_dimension_numbers<[1], [0], [0], [1], [0, 0, 1, 1], [], []>} : vector<512x128xbf16>, vector<128x128xbf16>, vector<512x128xf32> -> vector<512x128xf32>
      %c0_23 = arith.constant 0 : index
      %c0_24 = arith.constant 0 : index
      %26 = vector.load %arg8[%c0_23, %c0_24] : memref<1x128xf32, #tpu.memory_space<vmem>>, vector<1x128xf32>
      %27 = vector.broadcast %26 : vector<1x128xf32> to vector<512x128xf32>
      %28 = arith.addf %25, %27 : vector<512x128xf32>
      %29 = arith.truncf %28 : vector<512x128xf32> to vector<512x128xbf16>
      %c0_25 = arith.constant 0 : index
      %c0_26 = arith.constant 0 : index
      %30 = vector.load %arg10[%c0_25, %c0_26] : memref<512x128xbf16, #tpu.memory_space<vmem>>, vector<512x128xbf16>
      tpu.vector_store %arg10[%c0_25, %c0_26], %29 {strides = array<i32>} : memref<512x128xbf16, #tpu.memory_space<vmem>>, vector<512x128xbf16>,
      %31 = tpu.iota {dimensions = array<i32: 0>} : vector<512x128xi32>
      %c512_i32 = arith.constant 512 : i32
      %32 = arith.muli %arg0, %c512_i32 : i32
      %33 = vector.broadcast %32 : i32 to vector<512x128xi32>
      %34 = arith.addi %31, %33 : vector<512x128xi32>
      %c16_i32 = arith.constant 16 : i32
      %35 = vector.broadcast %c16_i32 : i32 to vector<512x128xi32>
      %36 = arith.cmpi slt, %34, %35 : vector<512x128xi32>
      %37 = arith.extui %36 : vector<512x128xi1> to vector<512x128xi32>
      %38 = arith.sitofp %37 : vector<512x128xi32> to vector<512x128xf32>
      %39 = arith.mulf %20, %38 : vector<512x128xf32>
      %cst_27 = arith.constant dense<0.000000e+00> : vector<128xf32>
      %40 = vector.multi_reduction <add>, %39, %cst_27 [0] : vector<512x128xf32> to vector<128xf32>
      %41 = vector.shape_cast %40 : vector<128xf32> to vector<1x128xf32>
      %42 = arith.mulf %39, %39 : vector<512x128xf32>
      %cst_28 = arith.constant dense<0.000000e+00> : vector<128xf32>
      %43 = vector.multi_reduction <add>, %42, %cst_28 [0] : vector<512x128xf32> to vector<128xf32>
      %44 = vector.shape_cast %43 : vector<128xf32> to vector<1x128xf32>
      %45 = tpu.iota {dimensions = array<i32: 0>} : vector<8x128xi32>
      %c0_i32_29 = arith.constant 0 : i32
      %46 = vector.broadcast %c0_i32_29 : i32 to vector<8x128xi32>
      %47 = arith.cmpi eq, %45, %46 : vector<8x128xi32>
      %48 = vector.shape_cast %41 : vector<1x128xf32> to vector<1x128xf32>
      %49 = vector.broadcast %48 : vector<1x128xf32> to vector<8x128xf32>
      %cst_30 = arith.constant 0.000000e+00 : f32
      %50 = vector.broadcast %cst_30 : f32 to vector<8x128xf32>
      %51 = arith.select %47, %49, %50 : vector<8x128xi1>, vector<8x128xf32>
      %c0_31 = arith.constant 0 : index
      %c0_32 = arith.constant 0 : index
      %52 = vector.load %arg11[%c0_31, %c0_32] : memref<8x128xf32, #tpu.memory_space<vmem>>, vector<8x128xf32>
      tpu.vector_store %arg11[%c0_31, %c0_32], %51 {strides = array<i32>} : memref<8x128xf32, #tpu.memory_space<vmem>>, vector<8x128xf32>,
      %c0_i32_33 = arith.constant 0 : i32
      %53 = vector.broadcast %c0_i32_33 : i32 to vector<8x128xi32>
      %54 = arith.cmpi eq, %45, %53 : vector<8x128xi32>
      %55 = vector.shape_cast %44 : vector<1x128xf32> to vector<1x128xf32>
      %56 = vector.broadcast %55 : vector<1x128xf32> to vector<8x128xf32>
      %cst_34 = arith.constant 0.000000e+00 : f32
      %57 = vector.broadcast %cst_34 : f32 to vector<8x128xf32>
      %58 = arith.select %54, %56, %57 : vector<8x128xi1>, vector<8x128xf32>
      %c0_35 = arith.constant 0 : index
      %c0_36 = arith.constant 0 : index
      %59 = vector.load %arg12[%c0_35, %c0_36] : memref<8x128xf32, #tpu.memory_space<vmem>>, vector<8x128xf32>
      tpu.vector_store %arg12[%c0_35, %c0_36], %58 {strides = array<i32>} : memref<8x128xf32, #tpu.memory_space<vmem>>, vector<8x128xf32>,
    } else {
    }
    return
  }
  func.func @transform_0(%arg0: i32, %arg1: i32) -> (i32, i32) {
    %c0_i32 = arith.constant 0 : i32
    return %arg0, %arg1 : i32, i32
  }
  func.func @transform_1(%arg0: i32, %arg1: i32) -> (i32, i32) {
    %c0_i32 = arith.constant 0 : i32
    %c0_i32_0 = arith.constant 0 : i32
    %c0_i32_1 = arith.constant 0 : i32
    return %c0_i32, %c0_i32_0 : i32, i32
  }
  func.func @transform_2(%arg0: i32, %arg1: i32) -> (i32, i32) {
    %c0_i32 = arith.constant 0 : i32
    %c0_i32_0 = arith.constant 0 : i32
    return %arg0, %c0_i32 : i32, i32
  }
  func.func @transform_3(%arg0: i32, %arg1: i32) -> (i32, i32) {
    %c0_i32 = arith.constant 0 : i32
    %c0_i32_0 = arith.constant 0 : i32
    %c0_i32_1 = arith.constant 0 : i32
    return %c0_i32, %c0_i32_0 : i32, i32
  }
  func.func @transform_4(%arg0: i32, %arg1: i32) -> (i32, i32) {
    %c0_i32 = arith.constant 0 : i32
    %c0_i32_0 = arith.constant 0 : i32
    %c0_i32_1 = arith.constant 0 : i32
    return %c0_i32, %c0_i32_0 : i32, i32
  }
  func.func @transform_5(%arg0: i32, %arg1: i32) -> (i32, i32) {
    %c0_i32 = arith.constant 0 : i32
    %c0_i32_0 = arith.constant 0 : i32
    %c0_i32_1 = arith.constant 0 : i32
    return %c0_i32, %c0_i32_0 : i32, i32
  }
  func.func @transform_6(%arg0: i32, %arg1: i32) -> (i32, i32) {
    %c0_i32 = arith.constant 0 : i32
    %c0_i32_0 = arith.constant 0 : i32
    %c0_i32_1 = arith.constant 0 : i32
    return %c0_i32, %c0_i32_0 : i32, i32
  }
  func.func @transform_7(%arg0: i32, %arg1: i32) -> (i32, i32) {
    %c0_i32 = arith.constant 0 : i32
    %c0_i32_0 = arith.constant 0 : i32
    return %arg0, %c0_i32 : i32, i32
  }
  func.func @transform_8(%arg0: i32, %arg1: i32) -> (i32, i32) {
    %c0_i32 = arith.constant 0 : i32
    %c0_i32_0 = arith.constant 0 : i32
    return %arg0, %c0_i32 : i32, i32
  }
  func.func @transform_9(%arg0: i32, %arg1: i32) -> (i32, i32) {
    %c0_i32 = arith.constant 0 : i32
    %c0_i32_0 = arith.constant 0 : i32
    return %arg0, %c0_i32 : i32, i32
  }
  func.func @transform_10(%arg0: i32, %arg1: i32) -> (i32, i32) {
    %c0_i32 = arith.constant 0 : i32
    %c0_i32_0 = arith.constant 0 : i32
    return %arg0, %c0_i32 : i32, i32
  }
}

module attributes {stable_mosaic.version = 11 : i64} {
  func.func @bn_epilogue_kernel(%arg0: i32, %arg1: memref<512x128xbf16, #tpu.memory_space<vmem>>, %arg2: memref<512x128xbf16, #tpu.memory_space<vmem>>, %arg3: memref<1x128xf32, #tpu.memory_space<vmem>>, %arg4: memref<1x128xf32, #tpu.memory_space<vmem>>, %arg5: memref<512x128xf32, #tpu.memory_space<vmem>>) attributes {dimension_semantics = [#tpu.dimension_semantics<parallel>], iteration_bounds = array<i64: 1>, scalar_prefetch = 0 : i64, scratch_operands = 0 : i64, tpu.core_type = #tpu.core_type<tc>, window_params = [{transform_indices = @transform_0, window_bounds = array<i64: 512, 128>}, {transform_indices = @transform_1, window_bounds = array<i64: 512, 128>}, {pipeline_mode = #tpu.pipeline_mode<synchronous>, transform_indices = @transform_2, window_bounds = array<i64: 1, 128>}, {pipeline_mode = #tpu.pipeline_mode<synchronous>, transform_indices = @transform_3, window_bounds = array<i64: 1, 128>}, {transform_indices = @transform_4, window_bounds = array<i64: 512, 128>}]} {
    %c0 = arith.constant 0 : index
    %c0_0 = arith.constant 0 : index
    %0 = vector.load %arg1[%c0, %c0_0] : memref<512x128xbf16, #tpu.memory_space<vmem>>, vector<512x128xbf16>
    %1 = arith.extf %0 : vector<512x128xbf16> to vector<512x128xf32>
    %c0_1 = arith.constant 0 : index
    %c0_2 = arith.constant 0 : index
    %2 = vector.load %arg3[%c0_1, %c0_2] : memref<1x128xf32, #tpu.memory_space<vmem>>, vector<1x128xf32>
    %3 = vector.broadcast %2 : vector<1x128xf32> to vector<512x128xf32>
    %4 = arith.mulf %1, %3 : vector<512x128xf32>
    %c0_3 = arith.constant 0 : index
    %c0_4 = arith.constant 0 : index
    %5 = vector.load %arg4[%c0_3, %c0_4] : memref<1x128xf32, #tpu.memory_space<vmem>>, vector<1x128xf32>
    %6 = vector.broadcast %5 : vector<1x128xf32> to vector<512x128xf32>
    %7 = arith.addf %4, %6 : vector<512x128xf32>
    %cst = arith.constant 0.000000e+00 : f32
    %8 = vector.broadcast %cst : f32 to vector<512x128xf32>
    %9 = arith.maximumf %7, %8 : vector<512x128xf32>
    %c0_5 = arith.constant 0 : index
    %c0_6 = arith.constant 0 : index
    %10 = vector.load %arg2[%c0_5, %c0_6] : memref<512x128xbf16, #tpu.memory_space<vmem>>, vector<512x128xbf16>
    %11 = arith.extf %10 : vector<512x128xbf16> to vector<512x128xf32>
    %12 = arith.addf %9, %11 : vector<512x128xf32>
    %cst_7 = arith.constant 0.000000e+00 : f32
    %13 = vector.broadcast %cst_7 : f32 to vector<512x128xf32>
    %14 = arith.maximumf %12, %13 : vector<512x128xf32>
    %c0_8 = arith.constant 0 : index
    %c0_9 = arith.constant 0 : index
    %15 = vector.load %arg5[%c0_8, %c0_9] : memref<512x128xf32, #tpu.memory_space<vmem>>, vector<512x128xf32>
    tpu.vector_store %arg5[%c0_8, %c0_9], %14 {strides = array<i32>} : memref<512x128xf32, #tpu.memory_space<vmem>>, vector<512x128xf32>,
    return
  }
  func.func @transform_0(%arg0: i32) -> (i32, i32) {
    %c0_i32 = arith.constant 0 : i32
    %c0_i32_0 = arith.constant 0 : i32
    return %arg0, %c0_i32 : i32, i32
  }
  func.func @transform_1(%arg0: i32) -> (i32, i32) {
    %c0_i32 = arith.constant 0 : i32
    %c0_i32_0 = arith.constant 0 : i32
    return %arg0, %c0_i32 : i32, i32
  }
  func.func @transform_2(%arg0: i32) -> (i32, i32) {
    %c0_i32 = arith.constant 0 : i32
    %c0_i32_0 = arith.constant 0 : i32
    %c0_i32_1 = arith.constant 0 : i32
    return %c0_i32, %c0_i32_0 : i32, i32
  }
  func.func @transform_3(%arg0: i32) -> (i32, i32) {
    %c0_i32 = arith.constant 0 : i32
    %c0_i32_0 = arith.constant 0 : i32
    %c0_i32_1 = arith.constant 0 : i32
    return %c0_i32, %c0_i32_0 : i32, i32
  }
  func.func @transform_4(%arg0: i32) -> (i32, i32) {
    %c0_i32 = arith.constant 0 : i32
    %c0_i32_0 = arith.constant 0 : i32
    return %arg0, %c0_i32 : i32, i32
  }
}

</mosaic_0001>

<bundles_post_ra>
// kernel: mul.6
= control target key start
LH: loop header
LB: loop body
LE: loop exit
PB: predicated region body
PF: predicated region fallthrough
CT: control target
= control target key end

     0   :  { %s34_s0 = inlined_call_operand.vmem [shape: f32[48], index: 0, kind: input, shape index: {}]   ;;  %s35_s1 = inlined_call_operand.vmem [shape: f32[48], index: 1, kind: input, shape index: {}]   ;;  %s36_s2 = inlined_call_operand.vmem [shape: f32[48], index: 2, kind: output, shape index: {}]  }
   0x1   :  { %v3_v0 = vld [vmem:[%s34_s0] sm:$0x1] }
   0x2   :  { %v4_v1 = vld [vmem:[%s35_s1] sm:$0x1] }
   0x3   :  { %v7_v2 = vmul.f32 %v4_v1, %v3_v0 }
   0x5   :  { %9 = vst [vmem:[%s36_s2] sm:$0x1] %v7_v2 }

// kernel: residual_block_forward.3
= control target key start
LH: loop header
LB: loop body
LE: loop exit
PB: predicated region body
PF: predicated region fallthrough
CT: control target
= control target key end

     0   :  { %s1538_s0 = inlined_call_operand.vmem [shape: bf16[512,128], index: 0, kind: input, shape index: {}]   ;;  %s1539_s1 = inlined_call_operand.vmem [shape: bf16[512,128], index: 1, kind: input, shape index: {}]   ;;  %s1540_s2 = inlined_call_operand.vmem [shape: f32[1,128], index: 2, kind: input, shape index: {}]   ;;  %s1541_s3 = inlined_call_operand.vmem [shape: f32[1,128], index: 3, kind: input, shape index: {}]   ;;  %s1542_s4 = inlined_call_operand.vmem [shape: f32[512,128], index: 4, kind: output, shape index: {}]  }
   0x1   :  { %v678_v0 = vld [vmem:[%s1538_s0] sm:$0xff]   ;;  %v933_v5 = vld [vmem:[%s1538_s0 + $0x8] sm:$0xff]   ;;  %v934_v12 = vld [vmem:[%s1538_s0 + $0x10] sm:$0xff]  }
   0x2   :  { %v1028_v1 = vld [vmem:[%s1540_s2] ss:$0 sm:$0xff]  ;;  %v679_v2 = vunpack.c.l.bf16 %v678_v0  ;;  %v680_v4 = vunpack.c.h.bf16 %v678_v0  ;;  %v964_v6 = vld [vmem:[%s1539_s1 + $0x8] sm:$0xff]   ;;  %v683_v10 = vunpack.c.l.bf16 %v933_v5  ;;  %v965_v13 = vld [vmem:[%s1539_s1 + $0x10] sm:$0xff]   ;;  %v684_v16 = vunpack.c.h.bf16 %v933_v5 }
   0x3   :  { %v806_v3 = vld [vmem:[%s1539_s1] sm:$0xff]   ;;  %v811_v11 = vunpack.c.l.bf16 %v964_v6  ;;  %v812_v17 = vunpack.c.h.bf16 %v964_v6  ;;  %v935_v18 = vld [vmem:[%s1538_s0 + $0x18] sm:$0xff]   ;;  %v687_v20 = vunpack.c.l.bf16 %v934_v12  ;;  %v815_v21 = vunpack.c.l.bf16 %v965_v13  ;;  %v937_v62 = vld [vmem:[%s1538_s0 + $0x28] sm:$0xff]  }
   0x4   :  { %v1042_v7 = vld [vmem:[%s1541_s3] ss:$0 sm:$0xff]  ;;  %v807_v8 = vunpack.c.l.bf16 %v806_v3  ;;  %v808_v9 = vunpack.c.h.bf16 %v806_v3  ;;  %v152_v14 = vmul.f32 %v679_v2, %v1028_v1  ;;  %v153_v15 = vmul.f32 %v680_v4, %v1028_v1  ;;  %v966_v23 = vld [vmem:[%s1539_s1 + $0x18] sm:$0xff]   ;;  %v968_v3 = vld [vmem:[%s1539_s1 + $0x28] sm:$0xff]  }
   0x5   :  { %v154_v19 = vmul.f32 %v683_v10, %v1028_v1  ;;  %v688_v22 = vunpack.c.h.bf16 %v934_v12  ;;  %v155_v26 = vmul.f32 %v684_v16, %v1028_v1  ;;  %v816_v27 = vunpack.c.h.bf16 %v965_v13  ;;  %v936_v48 = vld [vmem:[%s1538_s0 + $0x20] sm:$0xff]  }
   0x6   :  { %v223_v24 = vadd.f32 %v1042_v7, %v152_v14  ;;  %v224_v25 = vadd.f32 %v1042_v7, %v153_v15  ;;  %v156_v29 = vmul.f32 %v687_v20, %v1028_v1  ;;  %v691_v31 = vunpack.c.l.bf16 %v935_v18  ;;  %v967_v57 = vld [vmem:[%s1539_s1 + $0x20] sm:$0xff]  }
   0x7   :  { %v225_v28 = vadd.f32 %v1042_v7, %v154_v19  ;;  %v157_v30 = vmul.f32 %v688_v22, %v1028_v1  ;;  %v226_v34 = vadd.f32 %v1042_v7, %v155_v26  ;;  %v819_v35 = vunpack.c.l.bf16 %v966_v23 }
   0x8   :  { %v287_v32 = vmax.f32 %v223_v24, 0.0  ;;  %v288_v33 = vmax.f32 %v224_v25, 0.0  ;;  %v227_v37 = vadd.f32 %v1042_v7, %v156_v29  ;;  %v158_v39 = vmul.f32 %v691_v31, %v1028_v1 }
   0x9   :  { %v289_v36 = vmax.f32 %v225_v28, 0.0  ;;  %v228_v38 = vadd.f32 %v1042_v7, %v157_v30  ;;  %v290_v42 = vmax.f32 %v226_v34, 0.0  ;;  %v692_v43 = vunpack.c.h.bf16 %v935_v18  ;;  %v969_v18 = vld [vmem:[%s1539_s1 + $0x30] sm:$0xff]  }
   0xa   :  { %v479_v40 = vadd.f32 %v807_v8, %v287_v32  ;;  %v480_v41 = vadd.f32 %v808_v9, %v288_v33  ;;  %v291_v45 = vmax.f32 %v227_v37, 0.0  ;;  %v229_v47 = vadd.f32 %v1042_v7, %v158_v39  ;;  %v938_v9 = vld [vmem:[%s1538_s0 + $0x30] sm:$0xff]  }
   0xb   :  { %v481_v44 = vadd.f32 %v811_v11, %v289_v36  ;;  %v292_v46 = vmax.f32 %v228_v38, 0.0  ;;  %v482_v51 = vadd.f32 %v812_v17, %v290_v42  ;;  %v159_v52 = vmul.f32 %v692_v43, %v1028_v1 }
   0xc   :  { %v543_v49 = vmax.f32 %v479_v40, 0.0  ;;  %v544_v50 = vmax.f32 %v480_v41, 0.0  ;;  %v483_v54 = vadd.f32 %v815_v21, %v291_v45  ;;  %v293_v56 = vmax.f32 %v229_v47, 0.0  ;;  %v970_v40 = vld [vmem:[%s1539_s1 + $0x38] sm:$0xff]  }
   0xd   :  { %v545_v53 = vmax.f32 %v481_v44, 0.0  ;;  %v484_v55 = vadd.f32 %v816_v27, %v292_v46  ;;  %v546_v58 = vmax.f32 %v482_v51, 0.0  ;;  %v230_v59 = vadd.f32 %v1042_v7, %v159_v52 }
   0xe   :  { %607 = vst [vmem:[%s1542_s4] sm:$0xff] %v543_v49  ;;  %608 = vst [vmem:[%s1542_s4 + $0x8] sm:$0xff] %v544_v50  ;;  %v820_v60 = vunpack.c.h.bf16 %v966_v23  ;;  %v695_v61 = vunpack.c.l.bf16 %v936_v48  ;;  %v547_v63 = vmax.f32 %v483_v54, 0.0  ;;  %v485_v2 = vadd.f32 %v819_v35, %v293_v56  ;;  %v939_v23 = vld [vmem:[%s1538_s0 + $0x38] sm:$0xff]   ;;  %v940_v49 = vld [vmem:[%s1538_s0 + $0x40] sm:$0xff]  }
   0xf   :  { %609 = vst [vmem:[%s1542_s4 + $0x10] sm:$0xff] %v545_v53  ;;  %v548_v0 = vmax.f32 %v484_v55, 0.0  ;;  %610 = vst [vmem:[%s1542_s4 + $0x18] sm:$0xff] %v546_v58  ;;  %v294_v4 = vmax.f32 %v230_v59, 0.0  ;;  %v823_v6 = vunpack.c.l.bf16 %v967_v57  ;;  %v696_v8 = vunpack.c.h.bf16 %v936_v48  ;;  %v971_v54 = vld [vmem:[%s1539_s1 + $0x40] sm:$0xff]   ;;  %v941_v59 = vld [vmem:[%s1538_s0 + $0x48] sm:$0xff]  }
  0x10   :  { %v160_v5 = vmul.f32 %v695_v61, %v1028_v1  ;;  %611 = vst [vmem:[%s1542_s4 + $0x20] sm:$0xff] %v547_v63  ;;  %v549_v10 = vmax.f32 %v485_v2, 0.0  ;;  %v824_v11 = vunpack.c.h.bf16 %v967_v57  ;;  %v699_v12 = vunpack.c.l.bf16 %v937_v62 }
  0x11   :  { %612 = vst [vmem:[%s1542_s4 + $0x28] sm:$0xff] %v548_v0  ;;  %v700_v13 = vunpack.c.h.bf16 %v937_v62  ;;  %v486_v14 = vadd.f32 %v820_v60, %v294_v4  ;;  %v161_v16 = vmul.f32 %v696_v8, %v1028_v1  ;;  %v827_v17 = vunpack.c.l.bf16 %v968_v3 }
  0x12   :  { %v231_v15 = vadd.f32 %v1042_v7, %v160_v5  ;;  %613 = vst [vmem:[%s1542_s4 + $0x30] sm:$0xff] %v549_v10  ;;  %v162_v19 = vmul.f32 %v699_v12, %v1028_v1  ;;  %v828_v21 = vunpack.c.h.bf16 %v968_v3  ;;  %v703_v22 = vunpack.c.l.bf16 %v938_v9  ;;  %v972_v5 = vld [vmem:[%s1539_s1 + $0x48] sm:$0xff]  }
  0x13   :  { %v163_v20 = vmul.f32 %v700_v13, %v1028_v1  ;;  %v550_v24 = vmax.f32 %v486_v14, 0.0  ;;  %v232_v26 = vadd.f32 %v1042_v7, %v161_v16  ;;  %v704_v27 = vunpack.c.h.bf16 %v938_v9 }
  0x14   :  { %v295_v25 = vmax.f32 %v231_v15, 0.0  ;;  %v233_v28 = vadd.f32 %v1042_v7, %v162_v19  ;;  %v164_v30 = vmul.f32 %v703_v22, %v1028_v1  ;;  %v831_v31 = vunpack.c.l.bf16 %v969_v18 }
  0x15   :  { %v234_v29 = vadd.f32 %v1042_v7, %v163_v20  ;;  %614 = vst [vmem:[%s1542_s4 + $0x38] sm:$0xff] %v550_v24  ;;  %v296_v33 = vmax.f32 %v232_v26, 0.0  ;;  %v165_v34 = vmul.f32 %v704_v27, %v1028_v1  ;;  %v707_v35 = vunpack.c.l.bf16 %v939_v23  ;;  %v973_v24 = vld [vmem:[%s1539_s1 + $0x50] sm:$0xff]  }
  0x16   :  { %v487_v32 = vadd.f32 %v823_v6, %v295_v25  ;;  %v297_v36 = vmax.f32 %v233_v28, 0.0  ;;  %v235_v38 = vadd.f32 %v1042_v7, %v164_v30  ;;  %v832_v39 = vunpack.c.h.bf16 %v969_v18 }
  0x17   :  { %v298_v37 = vmax.f32 %v234_v29, 0.0  ;;  %v488_v42 = vadd.f32 %v824_v11, %v296_v33  ;;  %v236_v43 = vadd.f32 %v1042_v7, %v165_v34  ;;  %v166_v44 = vmul.f32 %v707_v35, %v1028_v1  ;;  %v942_v11 = vld [vmem:[%s1538_s0 + $0x50] sm:$0xff]   ;;  %v943_v29 = vld [vmem:[%s1538_s0 + $0x58] sm:$0xff]  }
  0x18   :  { %v551_v41 = vmax.f32 %v487_v32, 0.0  ;;  %v489_v45 = vadd.f32 %v827_v17, %v297_v36  ;;  %v299_v47 = vmax.f32 %v235_v38, 0.0  ;;  %v708_v48 = vunpack.c.h.bf16 %v939_v23 }
  0x19   :  { %v490_v46 = vadd.f32 %v828_v21, %v298_v37  ;;  %v552_v50 = vmax.f32 %v488_v42, 0.0  ;;  %v300_v51 = vmax.f32 %v236_v43, 0.0  ;;  %v237_v52 = vadd.f32 %v1042_v7, %v166_v44  ;;  %v974_v42 = vld [vmem:[%s1539_s1 + $0x58] sm:$0xff]  }
  0x1a   :  { %615 = vst [vmem:[%s1542_s4 + $0x40] sm:$0xff] %v551_v41  ;;  %v835_v53 = vunpack.c.l.bf16 %v970_v40  ;;  %v553_v55 = vmax.f32 %v489_v45, 0.0  ;;  %v491_v57 = vadd.f32 %v831_v31, %v299_v47  ;;  %v167_v58 = vmul.f32 %v708_v48, %v1028_v1  ;;  %v944_v47 = vld [vmem:[%s1538_s0 + $0x60] sm:$0xff]  }
  0x1b   :  { %v554_v56 = vmax.f32 %v490_v46, 0.0  ;;  %616 = vst [vmem:[%s1542_s4 + $0x48] sm:$0xff] %v552_v50  ;;  %v492_v60 = vadd.f32 %v832_v39, %v300_v51  ;;  %v301_v61 = vmax.f32 %v237_v52, 0.0  ;;  %v836_v62 = vunpack.c.h.bf16 %v970_v40 }
  0x1c   :  { %v711_v63 = vunpack.c.l.bf16 %v940_v49  ;;  %617 = vst [vmem:[%s1542_s4 + $0x50] sm:$0xff] %v553_v55  ;;  %v555_v0 = vmax.f32 %v491_v57, 0.0  ;;  %v238_v2 = vadd.f32 %v1042_v7, %v167_v58  ;;  %v839_v3 = vunpack.c.l.bf16 %v971_v54 }
  0x1d   :  { %618 = vst [vmem:[%s1542_s4 + $0x58] sm:$0xff] %v554_v56  ;;  %v712_v4 = vunpack.c.h.bf16 %v940_v49  ;;  %v556_v6 = vmax.f32 %v492_v60, 0.0  ;;  %v493_v8 = vadd.f32 %v835_v53, %v301_v61  ;;  %v715_v10 = vunpack.c.l.bf16 %v941_v59  ;;  %v975_v56 = vld [vmem:[%s1539_s1 + $0x60] sm:$0xff]   ;;  %v945_v61 = vld [vmem:[%s1538_s0 + $0x68] sm:$0xff]  }
  0x1e   :  { %v168_v9 = vmul.f32 %v711_v63, %v1028_v1  ;;  %619 = vst [vmem:[%s1542_s4 + $0x60] sm:$0xff] %v555_v0  ;;  %v302_v12 = vmax.f32 %v238_v2, 0.0  ;;  %v840_v14 = vunpack.c.h.bf16 %v971_v54  ;;  %v716_v15 = vunpack.c.h.bf16 %v941_v59 }
  0x1f   :  { %v169_v13 = vmul.f32 %v712_v4, %v1028_v1  ;;  %620 = vst [vmem:[%s1542_s4 + $0x68] sm:$0xff] %v556_v6  ;;  %v557_v16 = vmax.f32 %v493_v8, 0.0  ;;  %v170_v18 = vmul.f32 %v715_v10, %v1028_v1  ;;  %v843_v19 = vunpack.c.l.bf16 %v972_v5  ;;  %v976_v8 = vld [vmem:[%s1539_s1 + $0x68] sm:$0xff]  }
  0x20   :  { %v239_v17 = vadd.f32 %v1042_v7, %v168_v9  ;;  %v494_v20 = vadd.f32 %v836_v62, %v302_v12  ;;  %v171_v22 = vmul.f32 %v716_v15, %v1028_v1  ;;  %v719_v23 = vunpack.c.l.bf16 %v942_v11 }
  0x21   :  { %v240_v21 = vadd.f32 %v1042_v7, %v169_v13  ;;  %621 = vst [vmem:[%s1542_s4 + $0x70] sm:$0xff] %v557_v16  ;;  %v241_v26 = vadd.f32 %v1042_v7, %v170_v18  ;;  %v844_v27 = vunpack.c.h.bf16 %v972_v5  ;;  %v720_v28 = vunpack.c.h.bf16 %v942_v11  ;;  %v946_v13 = vld [vmem:[%s1538_s0 + $0x70] sm:$0xff]  }
  0x22   :  { %v303_v25 = vmax.f32 %v239_v17, 0.0  ;;  %v558_v30 = vmax.f32 %v494_v20, 0.0  ;;  %v242_v32 = vadd.f32 %v1042_v7, %v171_v22  ;;  %v172_v33 = vmul.f32 %v719_v23, %v1028_v1 }
  0x23   :  { %v304_v31 = vmax.f32 %v240_v21, 0.0  ;;  %v305_v35 = vmax.f32 %v241_v26, 0.0  ;;  %v847_v36 = vunpack.c.l.bf16 %v973_v24  ;;  %v173_v37 = vmul.f32 %v720_v28, %v1028_v1  ;;  %v977_v26 = vld [vmem:[%s1539_s1 + $0x70] sm:$0xff]  }
  0x24   :  { %v495_v34 = vadd.f32 %v839_v3, %v303_v25  ;;  %622 = vst [vmem:[%s1542_s4 + $0x78] sm:$0xff] %v558_v30  ;;  %v306_v39 = vmax.f32 %v242_v32, 0.0  ;;  %v243_v40 = vadd.f32 %v1042_v7, %v172_v33  ;;  %v723_v41 = vunpack.c.l.bf16 %v943_v29 }
  0x25   :  { %v496_v38 = vadd.f32 %v840_v14, %v304_v31  ;;  %v497_v44 = vadd.f32 %v843_v19, %v305_v35  ;;  %v244_v45 = vadd.f32 %v1042_v7, %v173_v37  ;;  %v848_v46 = vunpack.c.h.bf16 %v973_v24  ;;  %v947_v35 = vld [vmem:[%s1538_s0 + $0x78] sm:$0xff]  }
  0x26   :  { %v559_v43 = vmax.f32 %v495_v34, 0.0  ;;  %v498_v49 = vadd.f32 %v844_v27, %v306_v39  ;;  %v307_v50 = vmax.f32 %v243_v40, 0.0  ;;  %v174_v51 = vmul.f32 %v723_v41, %v1028_v1 }
  0x27   :  { %v560_v48 = vmax.f32 %v496_v38, 0.0  ;;  %v561_v52 = vmax.f32 %v497_v44, 0.0  ;;  %v308_v53 = vmax.f32 %v244_v45, 0.0  ;;  %v851_v54 = vunpack.c.l.bf16 %v974_v42  ;;  %v978_v44 = vld [vmem:[%s1539_s1 + $0x78] sm:$0xff]   ;;  %v948_v45 = vld [vmem:[%s1538_s0 + $0x80] sm:$0xff]  }
  0x28   :  { %623 = vst [vmem:[%s1542_s4 + $0x80] sm:$0xff] %v559_v43  ;;  %v724_v55 = vunpack.c.h.bf16 %v943_v29  ;;  %v562_v57 = vmax.f32 %v498_v49, 0.0  ;;  %v499_v58 = vadd.f32 %v847_v36, %v307_v50  ;;  %v245_v59 = vadd.f32 %v1042_v7, %v174_v51 }
  0x29   :  { %624 = vst [vmem:[%s1542_s4 + $0x88] sm:$0xff] %v560_v48  ;;  %v727_v60 = vunpack.c.l.bf16 %v944_v47  ;;  %625 = vst [vmem:[%s1542_s4 + $0x90] sm:$0xff] %v561_v52  ;;  %v500_v62 = vadd.f32 %v848_v46, %v308_v53  ;;  %v852_v0 = vunpack.c.h.bf16 %v974_v42  ;;  %v728_v2 = vunpack.c.h.bf16 %v944_v47 }
  0x2a   :  { %v175_v63 = vmul.f32 %v724_v55, %v1028_v1  ;;  %626 = vst [vmem:[%s1542_s4 + $0x98] sm:$0xff] %v562_v57  ;;  %v563_v3 = vmax.f32 %v499_v58, 0.0  ;;  %v309_v4 = vmax.f32 %v245_v59, 0.0  ;;  %v855_v6 = vunpack.c.l.bf16 %v975_v56  ;;  %v979_v58 = vld [vmem:[%s1539_s1 + $0x80] sm:$0xff]  }
  0x2b   :  { %v176_v5 = vmul.f32 %v727_v60, %v1028_v1  ;;  %v564_v9 = vmax.f32 %v500_v62, 0.0  ;;  %v177_v11 = vmul.f32 %v728_v2, %v1028_v1  ;;  %v731_v12 = vunpack.c.l.bf16 %v945_v61 }
  0x2c   :  { %v246_v10 = vadd.f32 %v1042_v7, %v175_v63  ;;  %627 = vst [vmem:[%s1542_s4 + $0xa0] sm:$0xff] %v563_v3  ;;  %v501_v14 = vadd.f32 %v851_v54, %v309_v4  ;;  %v856_v16 = vunpack.c.h.bf16 %v975_v56  ;;  %v732_v17 = vunpack.c.h.bf16 %v945_v61  ;;  %v949_v63 = vld [vmem:[%s1538_s0 + $0x88] sm:$0xff]  }
  0x2d   :  { %v247_v15 = vadd.f32 %v1042_v7, %v176_v5  ;;  %628 = vst [vmem:[%s1542_s4 + $0xa8] sm:$0xff] %v564_v9  ;;  %v248_v19 = vadd.f32 %v1042_v7, %v177_v11  ;;  %v178_v20 = vmul.f32 %v731_v12, %v1028_v1  ;;  %v859_v21 = vunpack.c.l.bf16 %v976_v8 }
  0x2e   :  { %v310_v18 = vmax.f32 %v246_v10, 0.0  ;;  %v565_v22 = vmax.f32 %v501_v14, 0.0  ;;  %v179_v24 = vmul.f32 %v732_v17, %v1028_v1  ;;  %v735_v25 = vunpack.c.l.bf16 %v946_v13  ;;  %v980_v14 = vld [vmem:[%s1539_s1 + $0x88] sm:$0xff]  }
  0x2f   :  { %v311_v23 = vmax.f32 %v247_v15, 0.0  ;;  %v312_v28 = vmax.f32 %v248_v19, 0.0  ;;  %v249_v29 = vadd.f32 %v1042_v7, %v178_v20  ;;  %v860_v30 = vunpack.c.h.bf16 %v976_v8  ;;  %v950_v15 = vld [vmem:[%s1538_s0 + $0x90] sm:$0xff]  }
  0x30   :  { %v502_v27 = vadd.f32 %v852_v0, %v310_v18  ;;  %629 = vst [vmem:[%s1542_s4 + $0xb0] sm:$0xff] %v565_v22  ;;  %v250_v32 = vadd.f32 %v1042_v7, %v179_v24  ;;  %v180_v33 = vmul.f32 %v735_v25, %v1028_v1  ;;  %v736_v34 = vunpack.c.h.bf16 %v946_v13 }
  0x31   :  { %v503_v31 = vadd.f32 %v855_v6, %v311_v23  ;;  %v504_v37 = vadd.f32 %v856_v16, %v312_v28  ;;  %v313_v38 = vmax.f32 %v249_v29, 0.0  ;;  %v863_v39 = vunpack.c.l.bf16 %v977_v26 }
  0x32   :  { %v566_v36 = vmax.f32 %v502_v27, 0.0  ;;  %v314_v41 = vmax.f32 %v250_v32, 0.0  ;;  %v251_v42 = vadd.f32 %v1042_v7, %v180_v33  ;;  %v181_v43 = vmul.f32 %v736_v34, %v1028_v1  ;;  %v981_v32 = vld [vmem:[%s1539_s1 + $0x90] sm:$0xff]   ;;  %v951_v33 = vld [vmem:[%s1538_s0 + $0x98] sm:$0xff]  }
  0x33   :  { %v567_v40 = vmax.f32 %v503_v31, 0.0  ;;  %v568_v46 = vmax.f32 %v504_v37, 0.0  ;;  %v505_v47 = vadd.f32 %v859_v21, %v313_v38  ;;  %v864_v48 = vunpack.c.h.bf16 %v977_v26 }
  0x34   :  { %630 = vst [vmem:[%s1542_s4 + $0xb8] sm:$0xff] %v566_v36  ;;  %v739_v49 = vunpack.c.l.bf16 %v947_v35  ;;  %v506_v50 = vadd.f32 %v860_v30, %v314_v41  ;;  %v315_v51 = vmax.f32 %v251_v42, 0.0  ;;  %v252_v52 = vadd.f32 %v1042_v7, %v181_v43 }
  0x35   :  { %631 = vst [vmem:[%s1542_s4 + $0xc0] sm:$0xff] %v567_v40  ;;  %v740_v53 = vunpack.c.h.bf16 %v947_v35  ;;  %632 = vst [vmem:[%s1542_s4 + $0xc8] sm:$0xff] %v568_v46  ;;  %v569_v54 = vmax.f32 %v505_v47, 0.0  ;;  %v867_v56 = vunpack.c.l.bf16 %v978_v44  ;;  %v743_v57 = vunpack.c.l.bf16 %v948_v45  ;;  %v982_v46 = vld [vmem:[%s1539_s1 + $0x98] sm:$0xff]   ;;  %v952_v47 = vld [vmem:[%s1538_s0 + $0xa0] sm:$0xff]  }
  0x36   :  { %v182_v55 = vmul.f32 %v739_v49, %v1028_v1  ;;  %v570_v59 = vmax.f32 %v506_v50, 0.0  ;;  %v507_v60 = vadd.f32 %v863_v39, %v315_v51  ;;  %v316_v61 = vmax.f32 %v252_v52, 0.0 }
  0x37   :  { %v183_v62 = vmul.f32 %v740_v53, %v1028_v1  ;;  %633 = vst [vmem:[%s1542_s4 + $0xd0] sm:$0xff] %v569_v54  ;;  %v868_v2 = vunpack.c.h.bf16 %v978_v44  ;;  %v184_v3 = vmul.f32 %v743_v57, %v1028_v1  ;;  %v744_v4 = vunpack.c.h.bf16 %v948_v45 }
  0x38   :  { %v253_v0 = vadd.f32 %v1042_v7, %v182_v55  ;;  %634 = vst [vmem:[%s1542_s4 + $0xd8] sm:$0xff] %v570_v59  ;;  %v571_v5 = vmax.f32 %v507_v60, 0.0  ;;  %v508_v6 = vadd.f32 %v864_v48, %v316_v61  ;;  %v871_v9 = vunpack.c.l.bf16 %v979_v58  ;;  %v983_v60 = vld [vmem:[%s1539_s1 + $0xa0] sm:$0xff]  }
  0x39   :  { %v254_v8 = vadd.f32 %v1042_v7, %v183_v62  ;;  %v255_v11 = vadd.f32 %v1042_v7, %v184_v3  ;;  %v185_v12 = vmul.f32 %v744_v4, %v1028_v1  ;;  %v747_v13 = vunpack.c.l.bf16 %v949_v63 }
  0x3a   :  { %v317_v10 = vmax.f32 %v253_v0, 0.0  ;;  %635 = vst [vmem:[%s1542_s4 + $0xe0] sm:$0xff] %v571_v5  ;;  %v572_v16 = vmax.f32 %v508_v6, 0.0  ;;  %v872_v18 = vunpack.c.h.bf16 %v979_v58  ;;  %v748_v19 = vunpack.c.h.bf16 %v949_v63 }
  0x3b   :  { %v318_v17 = vmax.f32 %v254_v8, 0.0  ;;  %v319_v21 = vmax.f32 %v255_v11, 0.0  ;;  %v256_v22 = vadd.f32 %v1042_v7, %v185_v12  ;;  %v186_v23 = vmul.f32 %v747_v13, %v1028_v1 }
  0x3c   :  { %v509_v20 = vadd.f32 %v867_v56, %v317_v10  ;;  %636 = vst [vmem:[%s1542_s4 + $0xe8] sm:$0xff] %v572_v16  ;;  %v875_v25 = vunpack.c.l.bf16 %v980_v14  ;;  %v187_v26 = vmul.f32 %v748_v19, %v1028_v1  ;;  %v751_v27 = vunpack.c.l.bf16 %v950_v15  ;;  %v984_v16 = vld [vmem:[%s1539_s1 + $0xa8] sm:$0xff]  }
  0x3d   :  { %v510_v24 = vadd.f32 %v868_v2, %v318_v17  ;;  %v511_v29 = vadd.f32 %v871_v9, %v319_v21  ;;  %v320_v30 = vmax.f32 %v256_v22, 0.0  ;;  %v257_v31 = vadd.f32 %v1042_v7, %v186_v23  ;;  %v953_v2 = vld [vmem:[%s1538_s0 + $0xa8] sm:$0xff]   ;;  %v954_v21 = vld [vmem:[%s1538_s0 + $0xb0] sm:$0xff]  }
  0x3e   :  { %v573_v28 = vmax.f32 %v509_v20, 0.0  ;;  %v258_v35 = vadd.f32 %v1042_v7, %v187_v26  ;;  %v876_v36 = vunpack.c.h.bf16 %v980_v14  ;;  %v188_v37 = vmul.f32 %v751_v27, %v1028_v1 }
  0x3f   :  { %v574_v34 = vmax.f32 %v510_v24, 0.0  ;;  %v575_v38 = vmax.f32 %v511_v29, 0.0  ;;  %v512_v39 = vadd.f32 %v872_v18, %v320_v30  ;;  %v321_v40 = vmax.f32 %v257_v31, 0.0 }
  0x40   :  { %637 = vst [vmem:[%s1542_s4 + $0xf0] sm:$0xff] %v573_v28  ;;  %v752_v41 = vunpack.c.h.bf16 %v950_v15  ;;  %v322_v42 = vmax.f32 %v258_v35, 0.0  ;;  %v259_v43 = vadd.f32 %v1042_v7, %v188_v37  ;;  %v879_v44 = vunpack.c.l.bf16 %v981_v32  ;;  %v955_v35 = vld [vmem:[%s1538_s0 + $0xb8] sm:$0xff]  }
  0x41   :  { %638 = vst [vmem:[%s1542_s4 + $0xf8] sm:$0xff] %v574_v34  ;;  %v755_v45 = vunpack.c.l.bf16 %v951_v33  ;;  %639 = vst [vmem:[%s1542_s4 + $0x100] sm:$0xff] %v575_v38  ;;  %v576_v48 = vmax.f32 %v512_v39, 0.0  ;;  %v513_v49 = vadd.f32 %v875_v25, %v321_v40  ;;  %v880_v51 = vunpack.c.h.bf16 %v981_v32  ;;  %v985_v34 = vld [vmem:[%s1539_s1 + $0xb0] sm:$0xff]  }
  0x42   :  { %v189_v50 = vmul.f32 %v752_v41, %v1028_v1  ;;  %v514_v52 = vadd.f32 %v876_v36, %v322_v42  ;;  %v323_v53 = vmax.f32 %v259_v43, 0.0  ;;  %v756_v55 = vunpack.c.h.bf16 %v951_v33 }
  0x43   :  { %v190_v54 = vmul.f32 %v755_v45, %v1028_v1  ;;  %640 = vst [vmem:[%s1542_s4 + $0x108] sm:$0xff] %v576_v48  ;;  %v577_v56 = vmax.f32 %v513_v49, 0.0  ;;  %v883_v58 = vunpack.c.l.bf16 %v982_v46  ;;  %v759_v59 = vunpack.c.l.bf16 %v952_v47  ;;  %v986_v48 = vld [vmem:[%s1539_s1 + $0xb8] sm:$0xff]   ;;  %v956_v49 = vld [vmem:[%s1538_s0 + $0xc0] sm:$0xff]  }
  0x44   :  { %v260_v57 = vadd.f32 %v1042_v7, %v189_v50  ;;  %v578_v61 = vmax.f32 %v514_v52, 0.0  ;;  %v515_v62 = vadd.f32 %v879_v44, %v323_v53  ;;  %v191_v0 = vmul.f32 %v756_v55, %v1028_v1 }
  0x45   :  { %v261_v63 = vadd.f32 %v1042_v7, %v190_v54  ;;  %641 = vst [vmem:[%s1542_s4 + $0x110] sm:$0xff] %v577_v56  ;;  %v884_v4 = vunpack.c.h.bf16 %v982_v46  ;;  %v192_v5 = vmul.f32 %v759_v59, %v1028_v1  ;;  %v760_v6 = vunpack.c.h.bf16 %v952_v47 }
  0x46   :  { %v324_v3 = vmax.f32 %v260_v57, 0.0  ;;  %642 = vst [vmem:[%s1542_s4 + $0x118] sm:$0xff] %v578_v61  ;;  %v579_v8 = vmax.f32 %v515_v62, 0.0  ;;  %v262_v10 = vadd.f32 %v1042_v7, %v191_v0  ;;  %v887_v11 = vunpack.c.l.bf16 %v983_v60  ;;  %v987_v62 = vld [vmem:[%s1539_s1 + $0xc0] sm:$0xff]  }
  0x47   :  { %v325_v9 = vmax.f32 %v261_v63, 0.0  ;;  %v263_v13 = vadd.f32 %v1042_v7, %v192_v5  ;;  %v193_v14 = vmul.f32 %v760_v6, %v1028_v1  ;;  %v763_v15 = vunpack.c.l.bf16 %v953_v2 }
  0x48   :  { %v516_v12 = vadd.f32 %v880_v51, %v324_v3  ;;  %643 = vst [vmem:[%s1542_s4 + $0x120] sm:$0xff] %v579_v8  ;;  %v326_v18 = vmax.f32 %v262_v10, 0.0  ;;  %v888_v19 = vunpack.c.h.bf16 %v983_v60  ;;  %v764_v20 = vunpack.c.h.bf16 %v953_v2 }
  0x49   :  { %v517_v17 = vadd.f32 %v883_v58, %v325_v9  ;;  %v327_v23 = vmax.f32 %v263_v13, 0.0  ;;  %v264_v24 = vadd.f32 %v1042_v7, %v193_v14  ;;  %v194_v25 = vmul.f32 %v763_v15, %v1028_v1 }
  0x4a   :  { %v580_v22 = vmax.f32 %v516_v12, 0.0  ;;  %v518_v27 = vadd.f32 %v884_v4, %v326_v18  ;;  %v891_v28 = vunpack.c.l.bf16 %v984_v16  ;;  %v195_v29 = vmul.f32 %v764_v20, %v1028_v1  ;;  %v957_v4 = vld [vmem:[%s1538_s0 + $0xc8] sm:$0xff]  }
  0x4b   :  { %v581_v26 = vmax.f32 %v517_v17, 0.0  ;;  %v519_v30 = vadd.f32 %v887_v11, %v327_v23  ;;  %v328_v31 = vmax.f32 %v264_v24, 0.0  ;;  %v265_v32 = vadd.f32 %v1042_v7, %v194_v25  ;;  %v988_v18 = vld [vmem:[%s1539_s1 + $0xc8] sm:$0xff]  }
  0x4c   :  { %644 = vst [vmem:[%s1542_s4 + $0x128] sm:$0xff] %v580_v22  ;;  %v767_v33 = vunpack.c.l.bf16 %v954_v21  ;;  %v582_v36 = vmax.f32 %v518_v27, 0.0  ;;  %v266_v37 = vadd.f32 %v1042_v7, %v195_v29  ;;  %v892_v38 = vunpack.c.h.bf16 %v984_v16 }
  0x4d   :  { %645 = vst [vmem:[%s1542_s4 + $0x130] sm:$0xff] %v581_v26  ;;  %v768_v39 = vunpack.c.h.bf16 %v954_v21  ;;  %v583_v40 = vmax.f32 %v519_v30, 0.0  ;;  %v520_v41 = vadd.f32 %v888_v19, %v328_v31  ;;  %v329_v42 = vmax.f32 %v265_v32, 0.0  ;;  %v958_v19 = vld [vmem:[%s1538_s0 + $0xd0] sm:$0xff]  }
  0x4e   :  { %v196_v43 = vmul.f32 %v767_v33, %v1028_v1  ;;  %646 = vst [vmem:[%s1542_s4 + $0x138] sm:$0xff] %v582_v36  ;;  %v330_v44 = vmax.f32 %v266_v37, 0.0  ;;  %v895_v45 = vunpack.c.l.bf16 %v985_v34  ;;  %v771_v47 = vunpack.c.l.bf16 %v955_v35  ;;  %v989_v36 = vld [vmem:[%s1539_s1 + $0xd0] sm:$0xff]   ;;  %v959_v37 = vld [vmem:[%s1538_s0 + $0xd8] sm:$0xff]  }
  0x4f   :  { %v197_v46 = vmul.f32 %v768_v39, %v1028_v1  ;;  %647 = vst [vmem:[%s1542_s4 + $0x140] sm:$0xff] %v583_v40  ;;  %v584_v50 = vmax.f32 %v520_v41, 0.0  ;;  %v521_v51 = vadd.f32 %v891_v28, %v329_v42  ;;  %v896_v53 = vunpack.c.h.bf16 %v985_v34 }
  0x50   :  { %v267_v52 = vadd.f32 %v1042_v7, %v196_v43  ;;  %v522_v54 = vadd.f32 %v892_v38, %v330_v44  ;;  %v198_v56 = vmul.f32 %v771_v47, %v1028_v1  ;;  %v772_v57 = vunpack.c.h.bf16 %v955_v35 }
  0x51   :  { %v268_v55 = vadd.f32 %v1042_v7, %v197_v46  ;;  %648 = vst [vmem:[%s1542_s4 + $0x148] sm:$0xff] %v584_v50  ;;  %v585_v58 = vmax.f32 %v521_v51, 0.0  ;;  %v899_v60 = vunpack.c.l.bf16 %v986_v48  ;;  %v775_v61 = vunpack.c.l.bf16 %v956_v49  ;;  %v990_v50 = vld [vmem:[%s1539_s1 + $0xd8] sm:$0xff]   ;;  %v960_v51 = vld [vmem:[%s1538_s0 + $0xe0] sm:$0xff]  }
  0x52   :  { %v331_v59 = vmax.f32 %v267_v52, 0.0  ;;  %v586_v63 = vmax.f32 %v522_v54, 0.0  ;;  %v269_v2 = vadd.f32 %v1042_v7, %v198_v56  ;;  %v199_v3 = vmul.f32 %v772_v57, %v1028_v1 }
  0x53   :  { %v332_v0 = vmax.f32 %v268_v55, 0.0  ;;  %649 = vst [vmem:[%s1542_s4 + $0x150] sm:$0xff] %v585_v58  ;;  %v900_v6 = vunpack.c.h.bf16 %v986_v48  ;;  %v200_v8 = vmul.f32 %v775_v61, %v1028_v1  ;;  %v776_v9 = vunpack.c.h.bf16 %v956_v49 }
  0x54   :  { %v523_v5 = vadd.f32 %v895_v45, %v331_v59  ;;  %650 = vst [vmem:[%s1542_s4 + $0x158] sm:$0xff] %v586_v63  ;;  %v333_v11 = vmax.f32 %v269_v2, 0.0  ;;  %v270_v12 = vadd.f32 %v1042_v7, %v199_v3  ;;  %v903_v13 = vunpack.c.l.bf16 %v987_v62 }
  0x55   :  { %v524_v10 = vadd.f32 %v896_v53, %v332_v0  ;;  %v271_v15 = vadd.f32 %v1042_v7, %v200_v8  ;;  %v201_v16 = vmul.f32 %v776_v9, %v1028_v1  ;;  %v779_v17 = vunpack.c.l.bf16 %v957_v4 }
  0x56   :  { %v587_v14 = vmax.f32 %v523_v5, 0.0  ;;  %v525_v21 = vadd.f32 %v899_v60, %v333_v11  ;;  %v334_v22 = vmax.f32 %v270_v12, 0.0  ;;  %v904_v23 = vunpack.c.h.bf16 %v987_v62  ;;  %v991_v5 = vld [vmem:[%s1539_s1 + $0xe0] sm:$0xff]  }
  0x57   :  { %v588_v20 = vmax.f32 %v524_v10, 0.0  ;;  %v335_v24 = vmax.f32 %v271_v15, 0.0  ;;  %v272_v25 = vadd.f32 %v1042_v7, %v201_v16  ;;  %v202_v26 = vmul.f32 %v779_v17, %v1028_v1 }
  0x58   :  { %651 = vst [vmem:[%s1542_s4 + $0x160] sm:$0xff] %v587_v14  ;;  %v780_v27 = vunpack.c.h.bf16 %v957_v4  ;;  %v589_v28 = vmax.f32 %v525_v21, 0.0  ;;  %v526_v29 = vadd.f32 %v900_v6, %v334_v22  ;;  %v907_v30 = vunpack.c.l.bf16 %v988_v18  ;;  %v961_v6 = vld [vmem:[%s1538_s0 + $0xe8] sm:$0xff]   ;;  %v962_v21 = vld [vmem:[%s1538_s0 + $0xf0] sm:$0xff]  }
  0x59   :  { %652 = vst [vmem:[%s1542_s4 + $0x168] sm:$0xff] %v588_v20  ;;  %v783_v31 = vunpack.c.l.bf16 %v958_v19  ;;  %v527_v32 = vadd.f32 %v903_v13, %v335_v24  ;;  %v336_v33 = vmax.f32 %v272_v25, 0.0  ;;  %v273_v34 = vadd.f32 %v1042_v7, %v202_v26  ;;  %v992_v20 = vld [vmem:[%s1539_s1 + $0xe8] sm:$0xff]  }
  0x5a   :  { %v203_v35 = vmul.f32 %v780_v27, %v1028_v1  ;;  %653 = vst [vmem:[%s1542_s4 + $0x170] sm:$0xff] %v589_v28  ;;  %v590_v38 = vmax.f32 %v526_v29, 0.0  ;;  %v908_v39 = vunpack.c.h.bf16 %v988_v18  ;;  %v784_v41 = vunpack.c.h.bf16 %v958_v19  ;;  %v995_v27 = vld [vmem:[%s1540_s2] ss:$0 sm:$0xff] }
  0x5b   :  { %v204_v40 = vmul.f32 %v783_v31, %v1028_v1  ;;  %v591_v42 = vmax.f32 %v527_v32, 0.0  ;;  %v528_v43 = vadd.f32 %v904_v23, %v336_v33  ;;  %v337_v44 = vmax.f32 %v273_v34, 0.0 }
  0x5c   :  { %v274_v45 = vadd.f32 %v1042_v7, %v203_v35  ;;  %654 = vst [vmem:[%s1542_s4 + $0x178] sm:$0xff] %v590_v38  ;;  %v911_v47 = vunpack.c.l.bf16 %v989_v36  ;;  %v205_v48 = vmul.f32 %v784_v41, %v1028_v1  ;;  %v787_v49 = vunpack.c.l.bf16 %v959_v37  ;;  %v993_v38 = vld [vmem:[%s1539_s1 + $0xf0] sm:$0xff]  }
  0x5d   :  { %v275_v46 = vadd.f32 %v1042_v7, %v204_v40  ;;  %655 = vst [vmem:[%s1542_s4 + $0x180] sm:$0xff] %v591_v42  ;;  %v592_v52 = vmax.f32 %v528_v43, 0.0  ;;  %v529_v53 = vadd.f32 %v907_v30, %v337_v44  ;;  %v912_v55 = vunpack.c.h.bf16 %v989_v36 }
  0x5e   :  { %v338_v54 = vmax.f32 %v274_v45, 0.0  ;;  %v276_v57 = vadd.f32 %v1042_v7, %v205_v48  ;;  %v206_v58 = vmul.f32 %v787_v49, %v1028_v1  ;;  %v788_v59 = vunpack.c.h.bf16 %v959_v37 }
  0x5f   :  { %v339_v56 = vmax.f32 %v275_v46, 0.0  ;;  %656 = vst [vmem:[%s1542_s4 + $0x188] sm:$0xff] %v592_v52  ;;  %v593_v60 = vmax.f32 %v529_v53, 0.0  ;;  %v915_v62 = vunpack.c.l.bf16 %v990_v50  ;;  %v791_v63 = vunpack.c.l.bf16 %v960_v51  ;;  %v994_v52 = vld [vmem:[%s1539_s1 + $0xf8] sm:$0xff]  }
  0x60   :  { %v530_v61 = vadd.f32 %v908_v39, %v338_v54  ;;  %v340_v2 = vmax.f32 %v276_v57, 0.0  ;;  %v277_v3 = vadd.f32 %v1042_v7, %v206_v58  ;;  %v207_v4 = vmul.f32 %v788_v59, %v1028_v1  ;;  %v963_v39 = vld [vmem:[%s1538_s0 + $0xf8] sm:$0xff]  }
  0x61   :  { %v531_v0 = vadd.f32 %v911_v47, %v339_v56  ;;  %657 = vst [vmem:[%s1542_s4 + $0x190] sm:$0xff] %v593_v60  ;;  %v916_v9 = vunpack.c.h.bf16 %v990_v50  ;;  %v208_v10 = vmul.f32 %v791_v63, %v1028_v1  ;;  %v792_v11 = vunpack.c.h.bf16 %v960_v51 }
  0x62   :  { %v594_v8 = vmax.f32 %v530_v61, 0.0  ;;  %v532_v13 = vadd.f32 %v912_v55, %v340_v2  ;;  %v341_v14 = vmax.f32 %v277_v3, 0.0  ;;  %v278_v15 = vadd.f32 %v1042_v7, %v207_v4 }
  0x63   :  { %v595_v12 = vmax.f32 %v531_v0, 0.0  ;;  %v279_v16 = vadd.f32 %v1042_v7, %v208_v10  ;;  %v919_v17 = vunpack.c.l.bf16 %v991_v5  ;;  %v209_v18 = vmul.f32 %v792_v11, %v1028_v1 }
  0x64   :  { %658 = vst [vmem:[%s1542_s4 + $0x198] sm:$0xff] %v594_v8  ;;  %v795_v19 = vunpack.c.l.bf16 %v961_v6  ;;  %v596_v22 = vmax.f32 %v532_v13, 0.0  ;;  %v533_v23 = vadd.f32 %v915_v62, %v341_v14  ;;  %v342_v24 = vmax.f32 %v278_v15, 0.0 }
  0x65   :  { %659 = vst [vmem:[%s1542_s4 + $0x1a0] sm:$0xff] %v595_v12  ;;  %v920_v25 = vunpack.c.h.bf16 %v991_v5  ;;  %v343_v26 = vmax.f32 %v279_v16, 0.0  ;;  %v280_v1 = vadd.f32 %v1042_v7, %v209_v18  ;;  %v796_v29 = vunpack.c.h.bf16 %v961_v6  ;;  %v996_v7 = vld [vmem:[%s1541_s3] ss:$0 sm:$0xff] }
  0x66   :  { %v210_v28 = vmul.f32 %v995_v27, %v795_v19  ;;  %660 = vst [vmem:[%s1542_s4 + $0x1a8] sm:$0xff] %v596_v22  ;;  %v597_v30 = vmax.f32 %v533_v23, 0.0  ;;  %v534_v31 = vadd.f32 %v916_v9, %v342_v24  ;;  %v923_v32 = vunpack.c.l.bf16 %v992_v20 }
  0x67   :  { %v799_v33 = vunpack.c.l.bf16 %v962_v21  ;;  %v535_v34 = vadd.f32 %v919_v17, %v343_v26  ;;  %v344_v35 = vmax.f32 %v280_v1, 0.0  ;;  %v211_v37 = vmul.f32 %v995_v27, %v796_v29 }
  0x68   :  { %v281_v36 = vadd.f32 %v996_v7, %v210_v28  ;;  %661 = vst [vmem:[%s1542_s4 + $0x1b0] sm:$0xff] %v597_v30  ;;  %v598_v40 = vmax.f32 %v534_v31, 0.0  ;;  %v924_v41 = vunpack.c.h.bf16 %v992_v20  ;;  %v800_v43 = vunpack.c.h.bf16 %v962_v21 }
  0x69   :  { %v212_v42 = vmul.f32 %v995_v27, %v799_v33  ;;  %v599_v44 = vmax.f32 %v535_v34, 0.0  ;;  %v536_v45 = vadd.f32 %v920_v25, %v344_v35  ;;  %v282_v47 = vadd.f32 %v996_v7, %v211_v37 }
  0x6a   :  { %v345_v46 = vmax.f32 %v281_v36, 0.0  ;;  %662 = vst [vmem:[%s1542_s4 + $0x1b8] sm:$0xff] %v598_v40  ;;  %v927_v49 = vunpack.c.l.bf16 %v993_v38  ;;  %v213_v50 = vmul.f32 %v995_v27, %v800_v43  ;;  %v803_v51 = vunpack.c.l.bf16 %v963_v39 }
  0x6b   :  { %v283_v48 = vadd.f32 %v996_v7, %v212_v42  ;;  %663 = vst [vmem:[%s1542_s4 + $0x1c0] sm:$0xff] %v599_v44  ;;  %v600_v53 = vmax.f32 %v536_v45, 0.0  ;;  %v346_v55 = vmax.f32 %v282_v47, 0.0  ;;  %v928_v56 = vunpack.c.h.bf16 %v993_v38 }
  0x6c   :  { %v537_v54 = vadd.f32 %v923_v32, %v345_v46  ;;  %v284_v58 = vadd.f32 %v996_v7, %v213_v50  ;;  %v214_v59 = vmul.f32 %v995_v27, %v803_v51  ;;  %v804_v60 = vunpack.c.h.bf16 %v963_v39 }
  0x6d   :  { %v347_v57 = vmax.f32 %v283_v48, 0.0  ;;  %664 = vst [vmem:[%s1542_s4 + $0x1c8] sm:$0xff] %v600_v53  ;;  %v538_v62 = vadd.f32 %v924_v41, %v346_v55  ;;  %v931_v63 = vunpack.c.l.bf16 %v994_v52  ;;  %v932_v6 = vunpack.c.h.bf16 %v994_v52 }
  0x6e   :  { %v601_v61 = vmax.f32 %v537_v54, 0.0  ;;  %v348_v2 = vmax.f32 %v284_v58, 0.0  ;;  %v285_v3 = vadd.f32 %v996_v7, %v214_v59  ;;  %v215_v4 = vmul.f32 %v995_v27, %v804_v60 }
  0x6f   :  { %v539_v0 = vadd.f32 %v927_v49, %v347_v57  ;;  %v602_v5 = vmax.f32 %v538_v62, 0.0 }
  0x70   :  { %665 = vst [vmem:[%s1542_s4 + $0x1d0] sm:$0xff] %v601_v61  ;;  %v540_v9 = vadd.f32 %v928_v56, %v348_v2  ;;  %v349_v10 = vmax.f32 %v285_v3, 0.0  ;;  %v286_v11 = vadd.f32 %v996_v7, %v215_v4 }
  0x71   :  { %v603_v8 = vmax.f32 %v539_v0, 0.0  ;;  %666 = vst [vmem:[%s1542_s4 + $0x1d8] sm:$0xff] %v602_v5 }
  0x72   :  { %v604_v12 = vmax.f32 %v540_v9, 0.0  ;;  %v541_v13 = vadd.f32 %v931_v63, %v349_v10  ;;  %v350_v14 = vmax.f32 %v286_v11, 0.0 }
  0x73   :  { %667 = vst [vmem:[%s1542_s4 + $0x1e0] sm:$0xff] %v603_v8 }
  0x74   :  { %668 = vst [vmem:[%s1542_s4 + $0x1e8] sm:$0xff] %v604_v12  ;;  %v605_v15 = vmax.f32 %v541_v13, 0.0  ;;  %v542_v16 = vadd.f32 %v932_v6, %v350_v14 }
  0x76   :  { %669 = vst [vmem:[%s1542_s4 + $0x1f0] sm:$0xff] %v605_v15  ;;  %v606_v17 = vmax.f32 %v542_v16, 0.0 }
  0x78   :  { %670 = vst [vmem:[%s1542_s4 + $0x1f8] sm:$0xff] %v606_v17 }

// kernel: residual_block_forward.2
= control target key start
LH: loop header
LB: loop body
LE: loop exit
PB: predicated region body
PF: predicated region fallthrough
CT: control target
= control target key end

     0   :  { %v7541_v0 = vmov 0   ;;  %s9390_s1 = inlined_call_operand.vmem [shape: bf16[1024,128], index: 1, kind: input, shape index: {}, may-alias: {1,2}]   ;;  %s9391_s0 = inlined_call_operand.vmem [shape: bf16[512,1024], index: 0, kind: input, shape index: {}]   ;;  %s9392_s3 = inlined_call_operand.vmem [shape: bf16[128,128], index: 3, kind: input, shape index: {}]   ;;  %s9393_s5 = inlined_call_operand.vmem [shape: bf16[128,128], index: 5, kind: input, shape index: {}]   ;;  %s9394_s2 = inlined_call_operand.vmem [shape: bf16[1024,128], index: 2, kind: input, shape index: {}, may-alias: {1,2}]   ;;  %s9395_s4 = inlined_call_operand.vmem [shape: f32[1,128], index: 4, kind: input, shape index: {}]   ;;  %s9396_s7 = inlined_call_operand.vmem [shape: bf16[512,128], index: 7, kind: output, shape index: {0}]   ;;  %s9397_s6 = inlined_call_operand.vmem [shape: f32[1,128], index: 6, kind: input, shape index: {}]   ;;  %s9398_s8 = inlined_call_operand.vmem [shape: bf16[512,128], index: 8, kind: output, shape index: {1}]   ;;  %s9399_s9 = inlined_call_operand.vmem [shape: f32[8,128], index: 9, kind: output, shape index: {2}]   ;;  %s9400_s10 = inlined_call_operand.vmem [shape: f32[8,128], index: 10, kind: output, shape index: {3}]  }
   0x1   :  { %2505 = vmatprep.subr.bf16.mxu0 %v7541_v0  ;;  %v7601_v1 = vld [vmem:[%s9390_s1 + $0x80] sm:$0xff]   ;;  %2216 = vmatprep.subr.bf16.mxu1 %v7541_v0  ;;  %v7608_v2 = vld [vmem:[%s9390_s1 + $0x88] sm:$0xff]   ;;  %v7615_v3 = vld [vmem:[%s9390_s1 + $0x90] sm:$0xff]  }
   0x2   :  { %2506 = vmatpush1.bf16.msra.mxu0 %v7601_v1  ;;  %v7622_v4 = vld [vmem:[%s9390_s1 + $0x98] sm:$0xff]   ;;  %v7629_v5 = vld [vmem:[%s9390_s1 + $0xa0] sm:$0xff]   ;;  %v7635_v6 = vld [vmem:[%s9391_s0 + $0x8] sm:$0xff] }
   0x3   :  { %2507 = vmatprep.subr.bf16.mxu0 %v7541_v0  ;;  %v7640_v7 = vld [vmem:[%s9391_s0 + $0x28] sm:$0xff]  ;;  %v7655_v10 = vld [vmem:[%s9390_s1 + $0xb0] sm:$0xff]   ;;  %v7662_v11 = vld [vmem:[%s9390_s1 + $0xb8] sm:$0xff]  }
   0x4   :  { %v5830_v8 = vcombine.high %v7635_v6, %v7640_v7  ;;  %v7648_v9 = vld [vmem:[%s9390_s1 + $0xa8] sm:$0xff]   ;;  %v7669_v12 = vld [vmem:[%s9390_s1 + $0xc0] sm:$0xff]   ;;  %v7455_v16 = vld [vmem:[%s9390_s1 + $0x10] sm:$0xff]   ;;  %v5829_v35 = vcombine.low %v7635_v6, %v7640_v7 }
   0x5   :  { %v7452_v13 = vld [vmem:[%s9390_s1] sm:$0xff]   ;;  %v7454_v14 = vld [vmem:[%s9390_s1 + $0x8] sm:$0xff]   ;;  %v7694_v17 = vld [vmem:[%s9390_s1 + $0xd0] sm:$0xff]  }
   0x6   :  { %2508 = vmatpush1.bf16.msra.mxu0 %v7608_v2  ;;  %2537 = vmatprep.mubr.bf16.mxu0 %v5830_v8  ;;  %v7683_v15 = vld [vmem:[%s9390_s1 + $0xc8] sm:$0xff]   ;;  %v7457_v18 = vld [vmem:[%s9390_s1 + $0x18] sm:$0xff]   ;;  %v7458_v20 = vld [vmem:[%s9390_s1 + $0x20] sm:$0xff]  }
   0x7   :  { %2509 = vmatprep.subr.bf16.mxu0 %v7541_v0  ;;  %2217 = vmatpush1.bf16.msra.mxu1 %v7452_v13  ;;  %v7705_v19 = vld [vmem:[%s9390_s1 + $0xd8] sm:$0xff]   ;;  %v7716_v21 = vld [vmem:[%s9390_s1 + $0xe0] sm:$0xff]   ;;  %v7460_v22 = vld [vmem:[%s9390_s1 + $0x28] sm:$0xff]  }
   0x8   :  { %2218 = vmatprep.subr.bf16.mxu1 %v7541_v0  ;;  %v7727_v23 = vld [vmem:[%s9390_s1 + $0xe8] sm:$0xff]   ;;  %v7461_v24 = vld [vmem:[%s9390_s1 + $0x30] sm:$0xff]   ;;  %v7463_v26 = vld [vmem:[%s9390_s1 + $0x38] sm:$0xff]  }
   0x9   :  { %v7738_v25 = vld [vmem:[%s9390_s1 + $0xf0] sm:$0xff]   ;;  %v7747_v27 = vld [vmem:[%s9390_s1 + $0xf8] sm:$0xff]   ;;  %v305_v28 = vld [vmem:[%s9391_s0 + $0x48] sm:$0xff] }
   0xa   :  { %2510 = vmatpush1.bf16.msra.mxu0 %v7615_v3  ;;  %v7757_v29 = vld [vmem:[%s9391_s0] sm:$0xff]  ;;  %v309_v30 = vld [vmem:[%s9391_s0 + $0x68] sm:$0xff]  ;;  %v7467_v41 = vld [vmem:[%s9390_s1 + $0x50] sm:$0xff]  }
   0xb   :  { %2511 = vmatprep.subr.bf16.mxu0 %v7541_v0  ;;  %2219 = vmatpush1.bf16.msra.mxu1 %v7454_v14  ;;  %v7464_v31 = vld [vmem:[%s9390_s1 + $0x40] sm:$0xff]   ;;  %v5838_v36 = vcombine.high %v305_v28, %v309_v30  ;;  %v7466_v37 = vld [vmem:[%s9390_s1 + $0x48] sm:$0xff]   ;;  %v7446_v42 = vld [vmem:[%s9390_s1 + $0x110] sm:$0xff]   ;;  %v5837_v43 = vcombine.low %v305_v28, %v309_v30 }
   0xc   :  { %2220 = vmatprep.subr.bf16.mxu1 %v7541_v0  ;;  %v7769_v32 = vld [vmem:[%s9391_s0 + $0x20] sm:$0xff]  ;;  %v7445_v38 = vld [vmem:[%s9390_s1 + $0x108] sm:$0xff]   ;;  %v7469_v45 = vld [vmem:[%s9390_s1 + $0x58] sm:$0xff]  }
   0xd   :  { %v7444_v33 = vld [vmem:[%s9390_s1 + $0x100] sm:$0xff]   ;;  %v5828_v34 = vcombine.high %v7757_v29, %v7769_v32  ;;  %v313_v39 = vld [vmem:[%s9391_s0 + $0x88] sm:$0xff]  ;;  %v7447_v46 = vld [vmem:[%s9390_s1 + $0x118] sm:$0xff]   ;;  %v5827_v13 = vcombine.low %v7757_v29, %v7769_v32 }
   0xe   :  { %2512 = vmatpush1.bf16.msra.mxu0 %v7622_v4  ;;  %v317_v40 = vld [vmem:[%s9391_s0 + $0xa8] sm:$0xff]  ;;  %v7470_v49 = vld [vmem:[%s9390_s1 + $0x60] sm:$0xff]   ;;  %v7473_v57 = vld [vmem:[%s9390_s1 + $0x70] sm:$0xff]  }
   0xf   :  { %2513 = vmatprep.subr.bf16.mxu0 %v7541_v0  ;;  %2221 = vmatpush1.bf16.msra.mxu1 %v7455_v16  ;;  %v5846_v44 = vcombine.high %v313_v39, %v317_v40  ;;  %v321_v47 = vld [vmem:[%s9391_s0 + $0xc8] sm:$0xff]  ;;  %v5845_v50 = vcombine.low %v313_v39, %v317_v40  ;;  %v7448_v52 = vld [vmem:[%s9390_s1 + $0x120] sm:$0xff]   ;;  %v7450_v60 = vld [vmem:[%s9390_s1 + $0x130] sm:$0xff]  }
  0x10   :  { %2222 = vmatprep.subr.bf16.mxu1 %v7541_v0  ;;  %2248 = vmatprep.mubr.bf16.mxu1 %v5828_v34  ;;  %v325_v48 = vld [vmem:[%s9391_s0 + $0xe8] sm:$0xff]  ;;  %v7475_v61 = vld [vmem:[%s9390_s1 + $0x78] sm:$0xff]   ;;  %v304_v62 = vld [vmem:[%s9391_s0 + $0x40] sm:$0xff] }
  0x11   :  { %v5854_v51 = vcombine.high %v321_v47, %v325_v48  ;;  %v7472_v53 = vld [vmem:[%s9390_s1 + $0x68] sm:$0xff]   ;;  %v5853_v58 = vcombine.low %v321_v47, %v325_v48  ;;  %v308_v63 = vld [vmem:[%s9391_s0 + $0x60] sm:$0xff]  ;;  %v7451_v6 = vld [vmem:[%s9390_s1 + $0x138] sm:$0xff]  }
  0x12   :  { %2514 = vmatpush1.bf16.msra.mxu0 %v7629_v5  ;;  %v7449_v54 = vld [vmem:[%s9390_s1 + $0x128] sm:$0xff]   ;;  %v5836_v14 = vcombine.high %v304_v62, %v308_v63  ;;  %v5835_v29 = vcombine.low %v304_v62, %v308_v63  ;;  %v324_v34 = vld [vmem:[%s9391_s0 + $0xe0] sm:$0xff] }
  0x13   :  { %2515 = vmatprep.subr.bf16.mxu0 %v7541_v0  ;;  %2223 = vmatpush1.bf16.msra.mxu1 %v7457_v18  ;;  %v329_v55 = vld [vmem:[%s9391_s0 + $0x108] sm:$0xff]  ;;  %v352_v63 = vld [vmem:[%s9391_s0 + $0x1c0] sm:$0xff] }
  0x14   :  { %2224 = vmatprep.subr.bf16.mxu1 %v7541_v0  ;;  %v333_v56 = vld [vmem:[%s9391_s0 + $0x128] sm:$0xff] }
  0x15   :  { %v5862_v59 = vcombine.high %v329_v55, %v333_v56  ;;  %v337_v7 = vld [vmem:[%s9391_s0 + $0x148] sm:$0xff]  ;;  %v5861_v16 = vcombine.low %v329_v55, %v333_v56 }
  0x16   :  { %2516 = vmatpush1.bf16.msra.mxu0 %v7648_v9  ;;  %v341_v8 = vld [vmem:[%s9391_s0 + $0x168] sm:$0xff] }
  0x17   :  { %2517 = vmatprep.subr.bf16.mxu0 %v7541_v0  ;;  %2225 = vmatpush1.bf16.msra.mxu1 %v7458_v20  ;;  %v5870_v18 = vcombine.high %v337_v7, %v341_v8  ;;  %v7453_v20 = vld [vmem:[%s9390_s1 + $0x140] sm:$0xff]   ;;  %v349_v28 = vld [vmem:[%s9391_s0 + $0x1a8] sm:$0xff] }
  0x18   :  { %2226 = vmatprep.subr.bf16.mxu1 %v7541_v0 }
  0x1a   :  { %2518 = vmatpush1.bf16.msra.mxu0 %v7655_v10 }
  0x1b   :  { %2519 = vmatprep.subr.bf16.mxu0 %v7541_v0  ;;  %2227 = vmatpush1.bf16.msra.mxu1 %v7460_v22  ;;  %v312_v22 = vld [vmem:[%s9391_s0 + $0x80] sm:$0xff] }
  0x1c   :  { %2228 = vmatprep.subr.bf16.mxu1 %v7541_v0 }
  0x1e   :  { %2520 = vmatpush1.bf16.msra.mxu0 %v7662_v11 }
  0x1f   :  { %2521 = vmatprep.subr.bf16.mxu0 %v7541_v0  ;;  %2229 = vmatpush1.bf16.msra.mxu1 %v7461_v24  ;;  %v316_v24 = vld [vmem:[%s9391_s0 + $0xa0] sm:$0xff] }
  0x20   :  { %2230 = vmatprep.subr.bf16.mxu1 %v7541_v0  ;;  %v5844_v30 = vcombine.high %v312_v22, %v316_v24 }
  0x22   :  { %2522 = vmatpush1.bf16.msra.mxu0 %v7669_v12 }
  0x23   :  { %2523 = vmatprep.subr.bf16.mxu0 %v7541_v0  ;;  %2231 = vmatpush1.bf16.msra.mxu1 %v7463_v26  ;;  %v7456_v26 = vld [vmem:[%s9390_s1 + $0x148] sm:$0xff]  }
  0x24   :  { %2232 = vmatprep.subr.bf16.mxu1 %v7541_v0 }
  0x26   :  { %2524 = vmatpush1.bf16.msra.mxu0 %v7683_v15 }
  0x27   :  { %2525 = vmatprep.subr.bf16.mxu0 %v7541_v0  ;;  %2233 = vmatpush1.bf16.msra.mxu1 %v7464_v31  ;;  %v5869_v31 = vcombine.low %v337_v7, %v341_v8 }
  0x28   :  { %2234 = vmatprep.subr.bf16.mxu1 %v7541_v0 }
  0x2a   :  { %2526 = vmatpush1.bf16.msra.mxu0 %v7694_v17 }
  0x2b   :  { %2527 = vmatprep.subr.bf16.mxu0 %v7541_v0  ;;  %2235 = vmatpush1.bf16.msra.mxu1 %v7466_v37  ;;  %v5843_v37 = vcombine.low %v312_v22, %v316_v24 }
  0x2c   :  { %2236 = vmatprep.subr.bf16.mxu1 %v7541_v0 }
  0x2e   :  { %2528 = vmatpush1.bf16.msra.mxu0 %v7705_v19 }
  0x2f   :  { %2529 = vmatprep.subr.bf16.mxu0 %v7541_v0  ;;  %2237 = vmatpush1.bf16.msra.mxu1 %v7467_v41  ;;  %v7465_v41 = vld [vmem:[%s9390_s1 + $0x160] sm:$0xff]  }
  0x30   :  { %2238 = vmatprep.subr.bf16.mxu1 %v7541_v0 }
  0x32   :  { %2530 = vmatpush1.bf16.msra.mxu0 %v7716_v21 }
  0x33   :  { %2531 = vmatprep.subr.bf16.mxu0 %v7541_v0  ;;  %2239 = vmatpush1.bf16.msra.mxu1 %v7469_v45 }
  0x34   :  { %2240 = vmatprep.subr.bf16.mxu1 %v7541_v0 }
  0x36   :  { %2532 = vmatpush1.bf16.msra.mxu0 %v7727_v23 }
  0x37   :  { %2533 = vmatprep.subr.bf16.mxu0 %v7541_v0  ;;  %2241 = vmatpush1.bf16.msra.mxu1 %v7470_v49  ;;  %v7471_v49 = vld [vmem:[%s9390_s1 + $0x170] sm:$0xff]  }
  0x38   :  { %2242 = vmatprep.subr.bf16.mxu1 %v7541_v0 }
  0x3a   :  { %2534 = vmatpush1.bf16.msra.mxu0 %v7738_v25 }
  0x3b   :  { %2535 = vmatprep.subr.bf16.mxu0 %v7541_v0  ;;  %2243 = vmatpush1.bf16.msra.mxu1 %v7472_v53 }
  0x3c   :  { %2244 = vmatprep.subr.bf16.mxu1 %v7541_v0 }
  0x3e   :  { %2536 = vmatpush1.bf16.msra.mxu0 %v7747_v27 }
  0x3f   :  { %2794 = vmatprep.subr.bf16.mxu0 %v7541_v0  ;;  %2245 = vmatpush1.bf16.msra.mxu1 %v7473_v57  ;;  %v344_v57 = vld [vmem:[%s9391_s0 + $0x180] sm:$0xff] }
  0x40   :  { %2246 = vmatprep.subr.bf16.mxu1 %v7541_v0 }
  0x41   :  { %2538 = vmatmul.mubr.bf16.vlgmr.msra.gmra.mrb[0].mxu0 %v5829_v35  ;;  %v7462_v35 = vld [vmem:[%s9390_s1 + $0x158] sm:$0xff]  }
  0x42   :  { %2795 = vmatpush1.bf16.msra.mxu0 %v7444_v33  ;;  %2545 = vmatprep.mubr.bf16.mxu0 %v5838_v36  ;;  %v7459_v33 = vld [vmem:[%s9390_s1 + $0x150] sm:$0xff]   ;;  %v357_v36 = vld [vmem:[%s9391_s0 + $0x1e8] sm:$0xff] }
  0x43   :  { %2796 = vmatprep.subr.bf16.mxu0 %v7541_v0  ;;  %2247 = vmatpush1.bf16.msra.mxu1 %v7475_v61 }
  0x44   :  { %7075 = vmatprep.subr.bf16.mxu1 %v7541_v0 }
  0x46   :  { %2797 = vmatpush1.bf16.msra.mxu0 %v7445_v38  ;;  %2249 = vmatmul.mubr.bf16.vlgmr.msra.gmra.mrb[0].mxu1 %v5827_v13 }
  0x47   :  { %2798 = vmatprep.subr.bf16.mxu0 %v7541_v0  ;;  %2256 = vmatprep.mubr.bf16.mxu1 %v5836_v14 }
  0x48   :  { %7091 = vmatpush1.bf16.msra.mxu1 %v7601_v1  ;;  %v345_v1 = vld [vmem:[%s9391_s0 + $0x188] sm:$0xff] }
  0x49   :  { %2546 = vmatmul.mubr.bf16.gmra.mrb[4].mxu0 %v5837_v43  ;;  %7076 = vmatprep.subr.bf16.mxu1 %v7541_v0  ;;  %v5878_v32 = vcombine.high %v345_v1, %v349_v28  ;;  %v5877_v39 = vcombine.low %v345_v1, %v349_v28  ;;  %v7468_v43 = vld [vmem:[%s9390_s1 + $0x168] sm:$0xff]   ;;  %v368_v1 = vld [vmem:[%s9391_s0 + $0x240] sm:$0xff] }
  0x4a   :  { %2553 = vmatprep.mubr.bf16.mxu0 %v5846_v44  ;;  %2799 = vmatpush1.bf16.msra.mxu0 %v7446_v42  ;;  %v332_v42 = vld [vmem:[%s9391_s0 + $0x120] sm:$0xff]  ;;  %v365_v44 = vld [vmem:[%s9391_s0 + $0x228] sm:$0xff] }
  0x4b   :  { %2800 = vmatprep.subr.bf16.mxu0 %v7541_v0  ;;  %v372_v28 = vld [vmem:[%s9391_s0 + $0x260] sm:$0xff] }
  0x4c   :  { %7092 = vmatpush1.bf16.msra.mxu1 %v7608_v2  ;;  %v320_v2 = vld [vmem:[%s9391_s0 + $0xc0] sm:$0xff] }
  0x4d   :  { %7077 = vmatprep.subr.bf16.mxu1 %v7541_v0  ;;  %v5852_v38 = vcombine.high %v320_v2, %v324_v34  ;;  %v5851_v45 = vcombine.low %v320_v2, %v324_v34  ;;  %v380_v2 = vld [vmem:[%s9391_s0 + $0x2a0] sm:$0xff]  ;;  %v409_v34 = vld [vmem:[%s9391_s0 + $0x388] sm:$0xff] }
  0x4e   :  { %2801 = vmatpush1.bf16.msra.mxu0 %v7447_v46  ;;  %2257 = vmatmul.mubr.bf16.gmra.mrb[4].mxu1 %v5835_v29 }
  0x4f   :  { %2802 = vmatprep.subr.bf16.mxu0 %v7541_v0  ;;  %2264 = vmatprep.mubr.bf16.mxu1 %v5844_v30  ;;  %v5900_v30 = vcombine.high %v368_v1, %v372_v28 }
  0x50   :  { %7093 = vmatpush1.bf16.msra.mxu1 %v7615_v3  ;;  %v353_v3 = vld [vmem:[%s9391_s0 + $0x1c8] sm:$0xff] }
  0x51   :  { %2554 = vmatmul.mubr.bf16.gmra.mrb[8].mxu0 %v5845_v50  ;;  %7078 = vmatprep.subr.bf16.mxu1 %v7541_v0  ;;  %v5886_v40 = vcombine.high %v353_v3, %v357_v36  ;;  %v5885_v47 = vcombine.low %v353_v3, %v357_v36  ;;  %v340_v50 = vld [vmem:[%s9391_s0 + $0x160] sm:$0xff] }
  0x52   :  { %2561 = vmatprep.mubr.bf16.mxu0 %v5854_v51  ;;  %2803 = vmatpush1.bf16.msra.mxu0 %v7448_v52  ;;  %v7474_v51 = vld [vmem:[%s9390_s1 + $0x178] sm:$0xff]   ;;  %v373_v52 = vld [vmem:[%s9391_s0 + $0x268] sm:$0xff] }
  0x53   :  { %2804 = vmatprep.subr.bf16.mxu0 %v7541_v0 }
  0x54   :  { %7094 = vmatpush1.bf16.msra.mxu1 %v7622_v4  ;;  %v328_v4 = vld [vmem:[%s9391_s0 + $0x100] sm:$0xff] }
  0x55   :  { %7079 = vmatprep.subr.bf16.mxu1 %v7541_v0  ;;  %v5860_v46 = vcombine.high %v328_v4, %v332_v42  ;;  %v5859_v53 = vcombine.low %v328_v4, %v332_v42 }
  0x56   :  { %2805 = vmatpush1.bf16.msra.mxu0 %v7449_v54  ;;  %2265 = vmatmul.mubr.bf16.gmra.mrb[8].mxu1 %v5843_v37 }
  0x57   :  { %2806 = vmatprep.subr.bf16.mxu0 %v7541_v0  ;;  %2272 = vmatprep.mubr.bf16.mxu1 %v5852_v38  ;;  %v384_v38 = vld [vmem:[%s9391_s0 + $0x2c0] sm:$0xff] }
  0x58   :  { %7095 = vmatpush1.bf16.msra.mxu1 %v7629_v5  ;;  %v361_v5 = vld [vmem:[%s9391_s0 + $0x208] sm:$0xff] }
  0x59   :  { %2562 = vmatmul.mubr.bf16.gmra.mrb[12].mxu0 %v5853_v58  ;;  %7080 = vmatprep.subr.bf16.mxu1 %v7541_v0  ;;  %v5894_v48 = vcombine.high %v361_v5, %v365_v44  ;;  %v5893_v55 = vcombine.low %v361_v5, %v365_v44  ;;  %v377_v58 = vld [vmem:[%s9391_s0 + $0x288] sm:$0xff]  ;;  %v392_v44 = vld [vmem:[%s9391_s0 + $0x300] sm:$0xff] }
  0x5a   :  { %2569 = vmatprep.mubr.bf16.mxu0 %v5862_v59  ;;  %2807 = vmatpush1.bf16.msra.mxu0 %v7450_v60 }
  0x5b   :  { %2808 = vmatprep.subr.bf16.mxu0 %v7541_v0 }
  0x5c   :  { %7096 = vmatpush1.bf16.msra.mxu1 %v7648_v9  ;;  %v336_v9 = vld [vmem:[%s9391_s0 + $0x140] sm:$0xff] }
  0x5d   :  { %7081 = vmatprep.subr.bf16.mxu1 %v7541_v0  ;;  %v5868_v54 = vcombine.high %v336_v9, %v340_v50  ;;  %v5867_v59 = vcombine.low %v336_v9, %v340_v50 }
  0x5e   :  { %2809 = vmatpush1.bf16.msra.mxu0 %v7451_v6  ;;  %2273 = vmatmul.mubr.bf16.gmra.mrb[12].mxu1 %v5851_v45  ;;  %v356_v6 = vld [vmem:[%s9391_s0 + $0x1e0] sm:$0xff] }
  0x5f   :  { %2810 = vmatprep.subr.bf16.mxu0 %v7541_v0  ;;  %2280 = vmatprep.mubr.bf16.mxu1 %v5860_v46  ;;  %v5884_v8 = vcombine.high %v352_v63, %v356_v6  ;;  %v396_v45 = vld [vmem:[%s9391_s0 + $0x320] sm:$0xff]  ;;  %v298_v46 = vld [vmem:[%s9391_s0 + $0x10] sm:$0xff] }
  0x60   :  { %7097 = vmatpush1.bf16.msra.mxu1 %v7655_v10  ;;  %v369_v10 = vld [vmem:[%s9391_s0 + $0x248] sm:$0xff] }
  0x61   :  { %2570 = vmatmul.mubr.bf16.gmra.mrb[16].mxu0 %v5861_v16  ;;  %7082 = vmatprep.subr.bf16.mxu1 %v7541_v0  ;;  %v5902_v56 = vcombine.high %v369_v10, %v373_v52  ;;  %v5901_v61 = vcombine.low %v369_v10, %v373_v52  ;;  %v360_v16 = vld [vmem:[%s9391_s0 + $0x200] sm:$0xff]  ;;  %v306_v52 = vld [vmem:[%s9391_s0 + $0x50] sm:$0xff] }
  0x62   :  { %2577 = vmatprep.mubr.bf16.mxu0 %v5870_v18  ;;  %2811 = vmatpush1.bf16.msra.mxu0 %v7453_v20  ;;  %v364_v18 = vld [vmem:[%s9391_s0 + $0x220] sm:$0xff]  ;;  %v5883_v20 = vcombine.low %v352_v63, %v356_v6 }
  0x63   :  { %2812 = vmatprep.subr.bf16.mxu0 %v7541_v0  ;;  %v5892_v22 = vcombine.high %v360_v16, %v364_v18  ;;  %v5891_v29 = vcombine.low %v360_v16, %v364_v18  ;;  %v404_v10 = vld [vmem:[%s9391_s0 + $0x360] sm:$0xff]  ;;  %v326_v16 = vld [vmem:[%s9391_s0 + $0xf0] sm:$0xff] }
  0x64   :  { %7098 = vmatpush1.bf16.msra.mxu1 %v7662_v11  ;;  %v348_v11 = vld [vmem:[%s9391_s0 + $0x1a0] sm:$0xff] }
  0x65   :  { %7083 = vmatprep.subr.bf16.mxu1 %v7541_v0  ;;  %v5876_v60 = vcombine.high %v344_v57, %v348_v11  ;;  %v5875_v7 = vcombine.low %v344_v57, %v348_v11  ;;  %v7476_v57 = vld [vmem:[%s9390_s1 + $0x180] sm:$0xff]  }
  0x66   :  { %2813 = vmatpush1.bf16.msra.mxu0 %v7456_v26  ;;  %2281 = vmatmul.mubr.bf16.gmra.mrb[16].mxu1 %v5859_v53  ;;  %v310_v53 = vld [vmem:[%s9391_s0 + $0x70] sm:$0xff] }
  0x67   :  { %2814 = vmatprep.subr.bf16.mxu0 %v7541_v0  ;;  %2288 = vmatprep.mubr.bf16.mxu1 %v5868_v54  ;;  %v5923_v54 = vcombine.low %v392_v44, %v396_v45  ;;  %v5840_v11 = vcombine.high %v306_v52, %v310_v53  ;;  %v5839_v6 = vcombine.low %v306_v52, %v310_v53 }
  0x68   :  { %7099 = vmatpush1.bf16.msra.mxu1 %v7669_v12  ;;  %v381_v12 = vld [vmem:[%s9391_s0 + $0x2a8] sm:$0xff] }
  0x69   :  { %2578 = vmatmul.mubr.bf16.gmra.mrb[20].mxu0 %v5869_v31  ;;  %7084 = vmatprep.subr.bf16.mxu1 %v7541_v0  ;;  %v5910_v62 = vcombine.high %v377_v58, %v381_v12  ;;  %v5909_v13 = vcombine.low %v377_v58, %v381_v12  ;;  %v408_v58 = vld [vmem:[%s9391_s0 + $0x380] sm:$0xff] }
  0x6a   :  { %2585 = vmatprep.mubr.bf16.mxu0 %v5878_v32  ;;  %2815 = vmatpush1.bf16.msra.mxu0 %v7459_v33  ;;  %v376_v33 = vld [vmem:[%s9391_s0 + $0x280] sm:$0xff] }
  0x6b   :  { %2816 = vmatprep.subr.bf16.mxu0 %v7541_v0  ;;  %v5908_v3 = vcombine.high %v376_v33, %v380_v2  ;;  %v5907_v4 = vcombine.low %v376_v33, %v380_v2  ;;  %v412_v12 = vld [vmem:[%s9391_s0 + $0x3a0] sm:$0xff] }
  0x6c   :  { %7100 = vmatpush1.bf16.msra.mxu1 %v7683_v15  ;;  %v385_v15 = vld [vmem:[%s9391_s0 + $0x2c8] sm:$0xff]  ;;  %v5940_v63 = vcombine.high %v408_v58, %v412_v12  ;;  %v5939_v18 = vcombine.low %v408_v58, %v412_v12  ;;  %v432_v33 = vld [vmem:[%s9391_s0 + $0x440] sm:$0xff] }
  0x6d   :  { %7085 = vmatprep.subr.bf16.mxu1 %v7541_v0  ;;  %v436_v2 = vld [vmem:[%s9391_s0 + $0x460] sm:$0xff] }
  0x6e   :  { %2817 = vmatpush1.bf16.msra.mxu0 %v7462_v35  ;;  %2289 = vmatmul.mubr.bf16.gmra.mrb[20].mxu1 %v5867_v59  ;;  %v5899_v35 = vcombine.low %v368_v1, %v372_v28  ;;  %v7477_v59 = vld [vmem:[%s9390_s1 + $0x188] sm:$0xff]   ;;  %v330_v28 = vld [vmem:[%s9391_s0 + $0x110] sm:$0xff] }
  0x6f   :  { %2818 = vmatprep.subr.bf16.mxu0 %v7541_v0  ;;  %2296 = vmatprep.mubr.bf16.mxu1 %v5876_v60  ;;  %v314_v60 = vld [vmem:[%s9391_s0 + $0x90] sm:$0xff]  ;;  %v7481_v1 = vld [vmem:[%s9390_s1 + $0x1a8] sm:$0xff]  }
  0x70   :  { %7101 = vmatpush1.bf16.msra.mxu1 %v7694_v17  ;;  %v389_v17 = vld [vmem:[%s9391_s0 + $0x2e8] sm:$0xff] }
  0x71   :  { %2586 = vmatmul.mubr.bf16.gmra.mrb[24].mxu0 %v5877_v39  ;;  %7086 = vmatprep.subr.bf16.mxu1 %v7541_v0  ;;  %v5918_v14 = vcombine.high %v385_v15, %v389_v17  ;;  %v5917_v24 = vcombine.low %v385_v15, %v389_v17  ;;  %v388_v39 = vld [vmem:[%s9391_s0 + $0x2e0] sm:$0xff]  ;;  %v7478_v17 = vld [vmem:[%s9390_s1 + $0x190] sm:$0xff]  }
  0x72   :  { %2593 = vmatprep.mubr.bf16.mxu0 %v5886_v40  ;;  %2819 = vmatpush1.bf16.msra.mxu0 %v7465_v41  ;;  %v417_v40 = vld [vmem:[%s9391_s0 + $0x3c8] sm:$0xff]  ;;  %v5916_v42 = vcombine.high %v384_v38, %v388_v39 }
  0x73   :  { %2820 = vmatprep.subr.bf16.mxu0 %v7541_v0  ;;  %v421_v41 = vld [vmem:[%s9391_s0 + $0x3e8] sm:$0xff] }
  0x74   :  { %7102 = vmatpush1.bf16.msra.mxu1 %v7705_v19  ;;  %v393_v19 = vld [vmem:[%s9391_s0 + $0x308] sm:$0xff]  ;;  %v5950_v5 = vcombine.high %v417_v40, %v421_v41  ;;  %v5949_v9 = vcombine.low %v417_v40, %v421_v41  ;;  %v440_v40 = vld [vmem:[%s9391_s0 + $0x480] sm:$0xff] }
  0x75   :  { %7087 = vmatprep.subr.bf16.mxu1 %v7541_v0  ;;  %v444_v41 = vld [vmem:[%s9391_s0 + $0x4a0] sm:$0xff] }
  0x76   :  { %2821 = vmatpush1.bf16.msra.mxu0 %v7468_v43  ;;  %2297 = vmatmul.mubr.bf16.gmra.mrb[24].mxu1 %v5875_v7  ;;  %v416_v7 = vld [vmem:[%s9391_s0 + $0x3c0] sm:$0xff] }
  0x77   :  { %2822 = vmatprep.subr.bf16.mxu0 %v7541_v0  ;;  %2304 = vmatprep.mubr.bf16.mxu1 %v5884_v8  ;;  %v420_v8 = vld [vmem:[%s9391_s0 + $0x3e0] sm:$0xff] }
  0x78   :  { %7103 = vmatpush1.bf16.msra.mxu1 %v7716_v21  ;;  %v397_v21 = vld [vmem:[%s9391_s0 + $0x328] sm:$0xff] }
  0x79   :  { %2594 = vmatmul.mubr.bf16.gmra.mrb[28].mxu0 %v5885_v47  ;;  %7088 = vmatprep.subr.bf16.mxu1 %v7541_v0  ;;  %v5926_v26 = vcombine.high %v393_v19, %v397_v21  ;;  %v5925_v31 = vcombine.low %v393_v19, %v397_v21  ;;  %v302_v47 = vld [vmem:[%s9391_s0 + $0x30] sm:$0xff]  ;;  %v5948_v19 = vcombine.high %v416_v7, %v420_v8 }
  0x7a   :  { %2601 = vmatprep.mubr.bf16.mxu0 %v5894_v48  ;;  %2823 = vmatpush1.bf16.msra.mxu0 %v7471_v49  ;;  %v5915_v48 = vcombine.low %v384_v38, %v388_v39  ;;  %v5924_v49 = vcombine.high %v392_v44, %v396_v45  ;;  %v5832_v50 = vcombine.high %v298_v46, %v302_v47  ;;  %v7484_v39 = vld [vmem:[%s9390_s1 + $0x1c0] sm:$0xff]  }
  0x7b   :  { %2824 = vmatprep.subr.bf16.mxu0 %v7541_v0  ;;  %v5972_v44 = vcombine.high %v440_v40, %v444_v41 }
  0x7c   :  { %7104 = vmatpush1.bf16.msra.mxu1 %v7727_v23  ;;  %v401_v23 = vld [vmem:[%s9391_s0 + $0x348] sm:$0xff] }
  0x7d   :  { %7089 = vmatprep.subr.bf16.mxu1 %v7541_v0 }
  0x7e   :  { %2825 = vmatpush1.bf16.msra.mxu0 %v7474_v51  ;;  %2305 = vmatmul.mubr.bf16.gmra.mrb[28].mxu1 %v5883_v20  ;;  %v400_v51 = vld [vmem:[%s9391_s0 + $0x340] sm:$0xff] }
  0x7f   :  { %3083 = vmatprep.subr.bf16.mxu0 %v7541_v0  ;;  %2312 = vmatprep.mubr.bf16.mxu1 %v5892_v22  ;;  %v7480_v22 = vld [vmem:[%s9390_s1 + $0x1a0] sm:$0xff]  }
  0x80   :  { %7105 = vmatpush1.bf16.msra.mxu1 %v7738_v25  ;;  %v405_v25 = vld [vmem:[%s9391_s0 + $0x368] sm:$0xff] }
  0x81   :  { %2602 = vmatmul.mubr.bf16.gmra.mrb[32].mxu0 %v5893_v55  ;;  %7090 = vmatprep.subr.bf16.mxu1 %v7541_v0  ;;  %v5934_v32 = vcombine.high %v401_v23, %v405_v25  ;;  %v5933_v36 = vcombine.low %v401_v23, %v405_v25  ;;  %v5932_v55 = vcombine.high %v400_v51, %v404_v10  ;;  %v334_v23 = vld [vmem:[%s9391_s0 + $0x130] sm:$0xff] }
  0x82   :  { %2609 = vmatprep.mubr.bf16.mxu0 %v5902_v56  ;;  %v5831_v56 = vcombine.low %v298_v46, %v302_v47  ;;  %v5947_v25 = vcombine.low %v416_v7, %v420_v8  ;;  %v7486_v47 = vld [vmem:[%s9390_s1 + $0x1d0] sm:$0xff]  }
  0x84   :  { %7106 = vmatpush1.bf16.msra.mxu1 %v7747_v27  ;;  %v413_v27 = vld [vmem:[%s9391_s0 + $0x3a8] sm:$0xff] }
  0x85   :  { %v5942_v37 = vcombine.high %v409_v34, %v413_v27  ;;  %v5941_v43 = vcombine.low %v409_v34, %v413_v27  ;;  %v7483_v34 = vld [vmem:[%s9390_s1 + $0x1b8] sm:$0xff]   ;;  %v338_v27 = vld [vmem:[%s9391_s0 + $0x150] sm:$0xff] }
  0x86   :  { %2313 = vmatmul.mubr.bf16.gmra.mrb[32].mxu1 %v5891_v29 }
  0x87   :  { %2320 = vmatprep.mubr.bf16.mxu1 %v5900_v30 }
  0x89   :  { %2610 = vmatmul.mubr.bf16.gmra.mrb[36].mxu0 %v5901_v61  ;;  %v318_v61 = vld [vmem:[%s9391_s0 + $0xb0] sm:$0xff] }
  0x8a   :  { %2617 = vmatprep.mubr.bf16.mxu0 %v5910_v62  ;;  %v5931_v62 = vcombine.low %v400_v51, %v404_v10  ;;  %v5848_v15 = vcombine.high %v314_v60, %v318_v61  ;;  %v5847_v21 = vcombine.low %v314_v60, %v318_v61  ;;  %v5971_v51 = vcombine.low %v440_v40, %v444_v41  ;;  %v464_v61 = vld [vmem:[%s9391_s0 + $0x540] sm:$0xff]  ;;  %v402_v40 = vld [vmem:[%s9391_s0 + $0x350] sm:$0xff] }
  0x8b   :  { %v406_v41 = vld [vmem:[%s9391_s0 + $0x370] sm:$0xff] }
  0x8e   :  { %2321 = vmatmul.mubr.bf16.gmra.mrb[36].mxu1 %v5899_v35  ;;  %v342_v35 = vld [vmem:[%s9391_s0 + $0x170] sm:$0xff] }
  0x8f   :  { %2328 = vmatprep.mubr.bf16.mxu1 %v5908_v3  ;;  %v5872_v38 = vcombine.high %v338_v27, %v342_v35  ;;  %v5871_v45 = vcombine.low %v338_v27, %v342_v35  ;;  %v398_v27 = vld [vmem:[%s9391_s0 + $0x330] sm:$0xff] }
  0x91   :  { %2618 = vmatmul.mubr.bf16.gmra.mrb[40].mxu0 %v5909_v13  ;;  %v7479_v13 = vld [vmem:[%s9390_s1 + $0x198] sm:$0xff]  }
  0x92   :  { %2625 = vmatprep.mubr.bf16.mxu0 %v5918_v14  ;;  %v322_v14 = vld [vmem:[%s9391_s0 + $0xd0] sm:$0xff] }
  0x93   :  { %v5856_v20 = vcombine.high %v322_v14, %v326_v16  ;;  %v5855_v30 = vcombine.low %v322_v14, %v326_v16  ;;  %v476_v14 = vld [vmem:[%s9391_s0 + $0x5a0] sm:$0xff] }
  0x94   :  { %v7488_v16 = vld [vmem:[%s9390_s1 + $0x1e0] sm:$0xff]  }
  0x96   :  { %2329 = vmatmul.mubr.bf16.gmra.mrb[40].mxu1 %v5907_v4  ;;  %v7485_v4 = vld [vmem:[%s9390_s1 + $0x1c8] sm:$0xff]  }
  0x97   :  { %2336 = vmatprep.mubr.bf16.mxu1 %v5916_v42  ;;  %v346_v42 = vld [vmem:[%s9391_s0 + $0x190] sm:$0xff] }
  0x99   :  { %2626 = vmatmul.mubr.bf16.gmra.mrb[44].mxu0 %v5917_v24  ;;  %v424_v24 = vld [vmem:[%s9391_s0 + $0x400] sm:$0xff] }
  0x9a   :  { %2633 = vmatprep.mubr.bf16.mxu0 %v5926_v26  ;;  %v428_v26 = vld [vmem:[%s9391_s0 + $0x420] sm:$0xff] }
  0x9b   :  { %v5956_v29 = vcombine.high %v424_v24, %v428_v26  ;;  %v5955_v3 = vcombine.low %v424_v24, %v428_v26  ;;  %v480_v26 = vld [vmem:[%s9391_s0 + $0x5c0] sm:$0xff] }
  0x9e   :  { %2337 = vmatmul.mubr.bf16.gmra.mrb[44].mxu1 %v5915_v48  ;;  %v448_v48 = vld [vmem:[%s9391_s0 + $0x4c0] sm:$0xff] }
  0x9f   :  { %2344 = vmatprep.mubr.bf16.mxu1 %v5924_v49  ;;  %v452_v49 = vld [vmem:[%s9391_s0 + $0x4e0] sm:$0xff] }
  0xa0   :  { %v5980_v10 = vcombine.high %v448_v48, %v452_v49  ;;  %v5979_v58 = vcombine.low %v448_v48, %v452_v49  ;;  %v414_v48 = vld [vmem:[%s9391_s0 + $0x3b0] sm:$0xff] }
  0xa1   :  { %2634 = vmatmul.mubr.bf16.gmra.mrb[48].mxu0 %v5925_v31  ;;  %v5864_v31 = vcombine.high %v330_v28, %v334_v23 }
  0xa2   :  { %2641 = vmatprep.mubr.bf16.mxu0 %v5934_v32  ;;  %v7482_v32 = vld [vmem:[%s9390_s1 + $0x1b0] sm:$0xff]  }
  0xa6   :  { %2345 = vmatmul.mubr.bf16.gmra.mrb[48].mxu1 %v5923_v54  ;;  %v456_v54 = vld [vmem:[%s9391_s0 + $0x500] sm:$0xff] }
  0xa7   :  { %2352 = vmatprep.mubr.bf16.mxu1 %v5932_v55  ;;  %v460_v55 = vld [vmem:[%s9391_s0 + $0x520] sm:$0xff] }
  0xa8   :  { %v5988_v12 = vcombine.high %v456_v54, %v460_v55 }
  0xa9   :  { %2642 = vmatmul.mubr.bf16.gmra.mrb[52].mxu0 %v5933_v36  ;;  %v5964_v36 = vcombine.high %v432_v33, %v436_v2 }
  0xaa   :  { %2649 = vmatprep.mubr.bf16.mxu0 %v5942_v37  ;;  %v5863_v37 = vcombine.low %v330_v28, %v334_v23  ;;  %v386_v28 = vld [vmem:[%s9391_s0 + $0x2d0] sm:$0xff] }
  0xab   :  { %v390_v23 = vld [vmem:[%s9391_s0 + $0x2f0] sm:$0xff] }
  0xae   :  { %2353 = vmatmul.mubr.bf16.gmra.mrb[52].mxu1 %v5931_v62  ;;  %v468_v62 = vld [vmem:[%s9391_s0 + $0x560] sm:$0xff] }
  0xaf   :  { %2360 = vmatprep.mubr.bf16.mxu1 %v5940_v63  ;;  %v370_v63 = vld [vmem:[%s9391_s0 + $0x250] sm:$0xff] }
  0xb1   :  { %2650 = vmatmul.mubr.bf16.gmra.mrb[56].mxu0 %v5941_v43  ;;  %v350_v43 = vld [vmem:[%s9391_s0 + $0x1b0] sm:$0xff] }
  0xb2   :  { %2657 = vmatprep.mubr.bf16.mxu0 %v5950_v5  ;;  %v5963_v5 = vcombine.low %v432_v33, %v436_v2  ;;  %v5880_v46 = vcombine.high %v346_v42, %v350_v43  ;;  %v5879_v52 = vcombine.low %v346_v42, %v350_v43  ;;  %v492_v33 = vld [vmem:[%s9391_s0 + $0x620] sm:$0xff]  ;;  %v7489_v2 = vld [vmem:[%s9390_s1 + $0x1e8] sm:$0xff]  }
  0xb6   :  { %2361 = vmatmul.mubr.bf16.gmra.mrb[56].mxu1 %v5939_v18  ;;  %v378_v18 = vld [vmem:[%s9391_s0 + $0x290] sm:$0xff] }
  0xb7   :  { %2368 = vmatprep.mubr.bf16.mxu1 %v5948_v19  ;;  %v382_v19 = vld [vmem:[%s9391_s0 + $0x2b0] sm:$0xff] }
  0xb8   :  { %v5912_v24 = vcombine.high %v378_v18, %v382_v19 }
  0xb9   :  { %2658 = vmatmul.mubr.bf16.gmra.mrb[60].mxu0 %v5949_v9  ;;  %v354_v9 = vld [vmem:[%s9391_s0 + $0x1d0] sm:$0xff] }
  0xba   :  { %2826 = vmatprep.mubr.bf16.mxu0 %v5832_v50  ;;  %v358_v50 = vld [vmem:[%s9391_s0 + $0x1f0] sm:$0xff] }
  0xbb   :  { %v5888_v53 = vcombine.high %v354_v9, %v358_v50 }
  0xbe   :  { %2369 = vmatmul.mubr.bf16.gmra.mrb[60].mxu1 %v5947_v25 }
  0xbf   :  { %2376 = vmatprep.mubr.bf16.mxu1 %v5956_v29 }
  0xc1   :  { %2827 = vmatmul.mubr.bf16.vlgmr.msra.gmra.mrb[0].mxu0 %v5831_v56  ;;  %v7487_v56 = vld [vmem:[%s9390_s1 + $0x1d8] sm:$0xff]  }
  0xc2   :  { %3084 = vmatpush1.bf16.msra.mxu0 %v7476_v57  ;;  %2834 = vmatprep.mubr.bf16.mxu0 %v5840_v11  ;;  %v362_v57 = vld [vmem:[%s9391_s0 + $0x210] sm:$0xff] }
  0xc3   :  { %3085 = vmatprep.subr.bf16.mxu0 %v7541_v0  ;;  %v366_v11 = vld [vmem:[%s9391_s0 + $0x230] sm:$0xff] }
  0xc4   :  { %v5896_v60 = vcombine.high %v362_v57, %v366_v11  ;;  %v5895_v7 = vcombine.low %v362_v57, %v366_v11  ;;  %v520_v11 = vld [vmem:[%s9391_s0 + $0x700] sm:$0xff] }
  0xc6   :  { %3086 = vmatpush1.bf16.msra.mxu0 %v7477_v59  ;;  %2377 = vmatmul.mubr.bf16.gmra.mrb[64].mxu1 %v5955_v3  ;;  %v5887_v59 = vcombine.low %v354_v9, %v358_v50  ;;  %v5935_v50 = vcombine.low %v402_v40, %v406_v41 }
  0xc7   :  { %3087 = vmatprep.subr.bf16.mxu0 %v7541_v0  ;;  %2384 = vmatprep.mubr.bf16.mxu1 %v5964_v36  ;;  %v5919_v36 = vcombine.low %v386_v28, %v390_v23 }
  0xc9   :  { %2835 = vmatmul.mubr.bf16.gmra.mrb[4].mxu0 %v5839_v6  ;;  %v374_v6 = vld [vmem:[%s9391_s0 + $0x270] sm:$0xff] }
  0xca   :  { %2842 = vmatprep.mubr.bf16.mxu0 %v5848_v15  ;;  %3088 = vmatpush1.bf16.msra.mxu0 %v7478_v17  ;;  %v5987_v15 = vcombine.low %v456_v54, %v460_v55  ;;  %v5996_v17 = vcombine.high %v464_v61, %v468_v62  ;;  %v5904_v8 = vcombine.high %v370_v63, %v374_v6 }
  0xcb   :  { %3089 = vmatprep.subr.bf16.mxu0 %v7541_v0 }
  0xce   :  { %3090 = vmatpush1.bf16.msra.mxu0 %v7479_v13  ;;  %2385 = vmatmul.mubr.bf16.gmra.mrb[68].mxu1 %v5963_v5  ;;  %v472_v13 = vld [vmem:[%s9391_s0 + $0x580] sm:$0xff]  ;;  %v5936_v5 = vcombine.high %v402_v40, %v406_v41  ;;  %v433_v40 = vld [vmem:[%s9391_s0 + $0x448] sm:$0xff] }
  0xcf   :  { %3091 = vmatprep.subr.bf16.mxu0 %v7541_v0  ;;  %2392 = vmatprep.mubr.bf16.mxu1 %v5972_v44  ;;  %v6003_v25 = vcombine.low %v472_v13, %v476_v14  ;;  %v504_v44 = vld [vmem:[%s9391_s0 + $0x680] sm:$0xff]  ;;  %v437_v41 = vld [vmem:[%s9391_s0 + $0x468] sm:$0xff] }
  0xd1   :  { %2843 = vmatmul.mubr.bf16.gmra.mrb[8].mxu0 %v5847_v21  ;;  %v5995_v21 = vcombine.low %v464_v61, %v468_v62 }
  0xd2   :  { %2850 = vmatprep.mubr.bf16.mxu0 %v5856_v20  ;;  %3092 = vmatpush1.bf16.msra.mxu0 %v7480_v22  ;;  %v6004_v20 = vcombine.high %v472_v13, %v476_v14  ;;  %v5903_v22 = vcombine.low %v370_v63, %v374_v6 }
  0xd3   :  { %3093 = vmatprep.subr.bf16.mxu0 %v7541_v0 }
  0xd6   :  { %3094 = vmatpush1.bf16.msra.mxu0 %v7481_v1  ;;  %2393 = vmatmul.mubr.bf16.gmra.mrb[72].mxu1 %v5971_v51  ;;  %v484_v1 = vld [vmem:[%s9391_s0 + $0x5e0] sm:$0xff] }
  0xd7   :  { %3095 = vmatprep.subr.bf16.mxu0 %v7541_v0  ;;  %2400 = vmatprep.mubr.bf16.mxu1 %v5980_v10  ;;  %v6012_v29 = vcombine.high %v480_v26, %v484_v1  ;;  %v6011_v35 = vcombine.low %v480_v26, %v484_v1  ;;  %v512_v10 = vld [vmem:[%s9391_s0 + $0x6c0] sm:$0xff] }
  0xd9   :  { %2851 = vmatmul.mubr.bf16.gmra.mrb[12].mxu0 %v5855_v30  ;;  %v5911_v30 = vcombine.low %v378_v18, %v382_v19  ;;  %v536_v19 = vld [vmem:[%s9391_s0 + $0x780] sm:$0xff] }
  0xda   :  { %2858 = vmatprep.mubr.bf16.mxu0 %v5864_v31  ;;  %3096 = vmatpush1.bf16.msra.mxu0 %v7482_v32  ;;  %v5920_v31 = vcombine.high %v386_v28, %v390_v23  ;;  %v488_v32 = vld [vmem:[%s9391_s0 + $0x600] sm:$0xff] }
  0xdb   :  { %3097 = vmatprep.subr.bf16.mxu0 %v7541_v0  ;;  %v6020_v3 = vcombine.high %v488_v32, %v492_v33  ;;  %v544_v23 = vld [vmem:[%s9391_s0 + $0x7c0] sm:$0xff] }
  0xde   :  { %3098 = vmatpush1.bf16.msra.mxu0 %v7483_v34  ;;  %2401 = vmatmul.mubr.bf16.gmra.mrb[76].mxu1 %v5979_v58  ;;  %v394_v34 = vld [vmem:[%s9391_s0 + $0x310] sm:$0xff]  ;;  %v524_v58 = vld [vmem:[%s9391_s0 + $0x720] sm:$0xff] }
  0xdf   :  { %3099 = vmatprep.subr.bf16.mxu0 %v7541_v0  ;;  %2408 = vmatprep.mubr.bf16.mxu1 %v5988_v12  ;;  %v5927_v43 = vcombine.low %v394_v34, %v398_v27  ;;  %v7491_v12 = vld [vmem:[%s9390_s1 + $0x1f8] sm:$0xff]   ;;  %v6052_v62 = vcombine.high %v520_v11, %v524_v58  ;;  %v6051_v13 = vcombine.low %v520_v11, %v524_v58  ;;  %v457_v58 = vld [vmem:[%s9391_s0 + $0x508] sm:$0xff] }
  0xe1   :  { %2859 = vmatmul.mubr.bf16.gmra.mrb[16].mxu0 %v5863_v37  ;;  %v5928_v37 = vcombine.high %v394_v34, %v398_v27  ;;  %v425_v34 = vld [vmem:[%s9391_s0 + $0x408] sm:$0xff] }
  0xe2   :  { %2866 = vmatprep.mubr.bf16.mxu0 %v5872_v38  ;;  %3100 = vmatpush1.bf16.msra.mxu0 %v7484_v39  ;;  %v496_v38 = vld [vmem:[%s9391_s0 + $0x640] sm:$0xff]  ;;  %v429_v27 = vld [vmem:[%s9391_s0 + $0x428] sm:$0xff] }
  0xe3   :  { %3101 = vmatprep.subr.bf16.mxu0 %v7541_v0  ;;  %v500_v39 = vld [vmem:[%s9391_s0 + $0x660] sm:$0xff] }
  0xe4   :  { %v6028_v42 = vcombine.high %v496_v38, %v500_v39  ;;  %v6027_v49 = vcombine.low %v496_v38, %v500_v39 }
  0xe6   :  { %3102 = vmatpush1.bf16.msra.mxu0 %v7485_v4  ;;  %2409 = vmatmul.mubr.bf16.gmra.mrb[80].mxu1 %v5987_v15  ;;  %v6019_v4 = vcombine.low %v488_v32, %v492_v33  ;;  %v528_v15 = vld [vmem:[%s9391_s0 + $0x740] sm:$0xff] }
  0xe7   :  { %3103 = vmatprep.subr.bf16.mxu0 %v7541_v0  ;;  %2416 = vmatprep.mubr.bf16.mxu1 %v5996_v17  ;;  %v532_v17 = vld [vmem:[%s9391_s0 + $0x760] sm:$0xff] }
  0xe8   :  { %v6060_v14 = vcombine.high %v528_v15, %v532_v17 }
  0xe9   :  { %2867 = vmatmul.mubr.bf16.gmra.mrb[20].mxu0 %v5871_v45  ;;  %v508_v45 = vld [vmem:[%s9391_s0 + $0x6a0] sm:$0xff] }
  0xea   :  { %2874 = vmatprep.mubr.bf16.mxu0 %v5880_v46  ;;  %3104 = vmatpush1.bf16.msra.mxu0 %v7486_v47  ;;  %v7490_v46 = vld [vmem:[%s9390_s1 + $0x1f0] sm:$0xff]   ;;  %v6036_v9 = vcombine.high %v504_v44, %v508_v45  ;;  %v6035_v54 = vcombine.low %v504_v44, %v508_v45 }
  0xeb   :  { %3105 = vmatprep.subr.bf16.mxu0 %v7541_v0  ;;  %v410_v47 = vld [vmem:[%s9391_s0 + $0x390] sm:$0xff] }
  0xec   :  { %v5944_v51 = vcombine.high %v410_v47, %v414_v48 }
  0xee   :  { %3106 = vmatpush1.bf16.msra.mxu0 %v7487_v56  ;;  %2417 = vmatmul.mubr.bf16.gmra.mrb[84].mxu1 %v5995_v21  ;;  %v5943_v56 = vcombine.low %v410_v47, %v414_v48  ;;  %v540_v21 = vld [vmem:[%s9391_s0 + $0x7a0] sm:$0xff]  ;;  %v445_v47 = vld [vmem:[%s9391_s0 + $0x4a8] sm:$0xff]  ;;  %v474_v48 = vld [vmem:[%s9391_s0 + $0x590] sm:$0xff] }
  0xef   :  { %3107 = vmatprep.subr.bf16.mxu0 %v7541_v0  ;;  %2424 = vmatprep.mubr.bf16.mxu1 %v6004_v20  ;;  %v442_v20 = vld [vmem:[%s9391_s0 + $0x490] sm:$0xff]  ;;  %v6068_v26 = vcombine.high %v536_v19, %v540_v21 }
  0xf1   :  { %2875 = vmatmul.mubr.bf16.gmra.mrb[24].mxu0 %v5879_v52  ;;  %v516_v52 = vld [vmem:[%s9391_s0 + $0x6e0] sm:$0xff] }
  0xf2   :  { %2882 = vmatprep.mubr.bf16.mxu0 %v5888_v53  ;;  %3108 = vmatpush1.bf16.msra.mxu0 %v7488_v16  ;;  %v418_v53 = vld [vmem:[%s9391_s0 + $0x3d0] sm:$0xff]  ;;  %v6044_v55 = vcombine.high %v512_v10, %v516_v52  ;;  %v6043_v61 = vcombine.low %v512_v10, %v516_v52  ;;  %v449_v52 = vld [vmem:[%s9391_s0 + $0x4c8] sm:$0xff] }
  0xf3   :  { %3109 = vmatprep.subr.bf16.mxu0 %v7541_v0 }
  0xf6   :  { %2425 = vmatmul.mubr.bf16.gmra.mrb[88].mxu1 %v6003_v25  ;;  %3110 = vmatpush1.bf16.msra.mxu0 %v7489_v2  ;;  %v548_v25 = vld [vmem:[%s9391_s0 + $0x7e0] sm:$0xff] }
  0xf7   :  { %2432 = vmatprep.mubr.bf16.mxu1 %v6012_v29  ;;  %3111 = vmatprep.subr.bf16.mxu0 %v7541_v0  ;;  %v450_v29 = vld [vmem:[%s9391_s0 + $0x4d0] sm:$0xff]  ;;  %v6076_v32 = vcombine.high %v544_v23, %v548_v25 }
  0xf9   :  { %2883 = vmatmul.mubr.bf16.gmra.mrb[28].mxu0 %v5887_v59  ;;  %v426_v59 = vld [vmem:[%s9391_s0 + $0x410] sm:$0xff] }
  0xfa   :  { %2890 = vmatprep.mubr.bf16.mxu0 %v5896_v60  ;;  %3112 = vmatpush1.bf16.msra.mxu0 %v7490_v46  ;;  %v430_v60 = vld [vmem:[%s9391_s0 + $0x430] sm:$0xff]  ;;  %v441_v46 = vld [vmem:[%s9391_s0 + $0x488] sm:$0xff] }
  0xfb   :  { %3113 = vmatprep.subr.bf16.mxu0 %v7541_v0  ;;  %v422_v0 = vld [vmem:[%s9391_s0 + $0x3f0] sm:$0xff]  ;;  %v5960_v6 = vcombine.high %v426_v59, %v430_v60  ;;  %v5959_v16 = vcombine.low %v426_v59, %v430_v60 }
  0xfc   :  { %v5952_v57 = vcombine.high %v418_v53, %v422_v0  ;;  %v5951_v63 = vcombine.low %v418_v53, %v422_v0  ;;  %v453_v53 = vld [vmem:[%s9391_s0 + $0x4e8] sm:$0xff]  ;;  %v482_v0 = vld [vmem:[%s9391_s0 + $0x5d0] sm:$0xff] }
  0xfd   :  { %v490_v59 = vld [vmem:[%s9391_s0 + $0x610] sm:$0xff] }
  0xfe   :  { %2433 = vmatmul.mubr.bf16.gmra.mrb[92].mxu1 %v6011_v35  ;;  %3114 = vmatpush1.bf16.msra.mxu0 %v7491_v12  ;;  %v458_v35 = vld [vmem:[%s9391_s0 + $0x510] sm:$0xff]  ;;  %v461_v12 = vld [vmem:[%s9391_s0 + $0x528] sm:$0xff] }
  0xff   :  { %2440 = vmatprep.mubr.bf16.mxu1 %v6020_v3  ;;  %v462_v3 = vld [vmem:[%s9391_s0 + $0x530] sm:$0xff] }
 0x100   :  { %v5992_v39 = vcombine.high %v458_v35, %v462_v3  ;;  %v5991_v44 = vcombine.low %v458_v35, %v462_v3  ;;  %v494_v60 = vld [vmem:[%s9391_s0 + $0x630] sm:$0xff] }
 0x101   :  { %2891 = vmatmul.mubr.bf16.gmra.mrb[32].mxu0 %v5895_v7  ;;  %v434_v7 = vld [vmem:[%s9391_s0 + $0x450] sm:$0xff] }
 0x102   :  { %2898 = vmatprep.mubr.bf16.mxu0 %v5904_v8  ;;  %v438_v8 = vld [vmem:[%s9391_s0 + $0x470] sm:$0xff] }
 0x103   :  { %v5968_v18 = vcombine.high %v434_v7, %v438_v8  ;;  %v5967_v1 = vcombine.low %v434_v7, %v438_v8  ;;  %v498_v7 = vld [vmem:[%s9391_s0 + $0x650] sm:$0xff] }
 0x104   :  { %v502_v8 = vld [vmem:[%s9391_s0 + $0x670] sm:$0xff] }
 0x106   :  { %2441 = vmatmul.mubr.bf16.gmra.mrb[96].mxu1 %v6019_v4  ;;  %v466_v4 = vld [vmem:[%s9391_s0 + $0x550] sm:$0xff] }
 0x107   :  { %2448 = vmatprep.mubr.bf16.mxu1 %v6028_v42  ;;  %v470_v42 = vld [vmem:[%s9391_s0 + $0x570] sm:$0xff] }
 0x108   :  { %v6000_v45 = vcombine.high %v466_v4, %v470_v42 }
 0x109   :  { %2899 = vmatmul.mubr.bf16.gmra.mrb[36].mxu0 %v5903_v22  ;;  %v446_v22 = vld [vmem:[%s9391_s0 + $0x4b0] sm:$0xff] }
 0x10a   :  { %2906 = vmatprep.mubr.bf16.mxu0 %v5912_v24  ;;  %v6059_v24 = vcombine.low %v528_v15, %v532_v17  ;;  %v5976_v28 = vcombine.high %v442_v20, %v446_v22  ;;  %v5975_v33 = vcombine.low %v442_v20, %v446_v22  ;;  %v465_v15 = vld [vmem:[%s9391_s0 + $0x548] sm:$0xff]  ;;  %v506_v20 = vld [vmem:[%s9391_s0 + $0x690] sm:$0xff] }
 0x10b   :  { %v469_v17 = vld [vmem:[%s9391_s0 + $0x568] sm:$0xff]  ;;  %v510_v22 = vld [vmem:[%s9391_s0 + $0x6b0] sm:$0xff] }
 0x10e   :  { %2449 = vmatmul.mubr.bf16.gmra.mrb[100].mxu1 %v6027_v49  ;;  %v478_v49 = vld [vmem:[%s9391_s0 + $0x5b0] sm:$0xff] }
 0x10f   :  { %2456 = vmatprep.mubr.bf16.mxu1 %v6036_v9  ;;  %v5965_v9 = vcombine.low %v433_v40, %v437_v41  ;;  %v6008_v10 = vcombine.high %v474_v48, %v478_v49 }
 0x111   :  { %2907 = vmatmul.mubr.bf16.gmra.mrb[40].mxu0 %v5911_v30  ;;  %v454_v30 = vld [vmem:[%s9391_s0 + $0x4f0] sm:$0xff] }
 0x112   :  { %2914 = vmatprep.mubr.bf16.mxu0 %v5920_v31  ;;  %v6067_v31 = vcombine.low %v536_v19, %v540_v21  ;;  %v5984_v2 = vcombine.high %v450_v29, %v454_v30  ;;  %v5983_v38 = vcombine.low %v450_v29, %v454_v30  ;;  %v473_v19 = vld [vmem:[%s9391_s0 + $0x588] sm:$0xff]  ;;  %v514_v29 = vld [vmem:[%s9391_s0 + $0x6d0] sm:$0xff] }
 0x113   :  { %v477_v21 = vld [vmem:[%s9391_s0 + $0x5a8] sm:$0xff]  ;;  %v518_v30 = vld [vmem:[%s9391_s0 + $0x6f0] sm:$0xff] }
 0x116   :  { %2457 = vmatmul.mubr.bf16.gmra.mrb[104].mxu1 %v6035_v54  ;;  %v486_v54 = vld [vmem:[%s9391_s0 + $0x5f0] sm:$0xff] }
 0x117   :  { %2464 = vmatprep.mubr.bf16.mxu1 %v6044_v55  ;;  %v5973_v55 = vcombine.low %v441_v46, %v445_v47  ;;  %v6016_v11 = vcombine.high %v482_v0, %v486_v54 }
 0x119   :  { %2915 = vmatmul.mubr.bf16.gmra.mrb[44].mxu0 %v5919_v36  ;;  %v6075_v36 = vcombine.low %v544_v23, %v548_v25  ;;  %v481_v23 = vld [vmem:[%s9391_s0 + $0x5c8] sm:$0xff]  ;;  %v8459_v35 = vpop.f32.mrb[0].mxu1 }
 0x11a   :  { %2922 = vmatprep.mubr.bf16.mxu0 %v5928_v37  ;;  %v5958_v37 = vcombine.high %v425_v34, %v429_v27  ;;  %v485_v25 = vld [vmem:[%s9391_s0 + $0x5e8] sm:$0xff]  ;;  %v2252_v3 = vpop.f32.mrb[1].mxu1 }
 0x11e   :  { %2465 = vmatmul.mubr.bf16.gmra.mrb[108].mxu1 %v6043_v61  ;;  %v5981_v61 = vcombine.low %v449_v52, %v453_v53 }
 0x11f   :  { %2472 = vmatprep.mubr.bf16.mxu1 %v6052_v62  ;;  %v5990_v62 = vcombine.high %v457_v58, %v461_v12 }
 0x121   :  { %2923 = vmatmul.mubr.bf16.gmra.mrb[48].mxu0 %v5927_v43  ;;  %v5957_v43 = vcombine.low %v425_v34, %v429_v27  ;;  %v489_v34 = vld [vmem:[%s9391_s0 + $0x608] sm:$0xff] }
 0x122   :  { %2930 = vmatprep.mubr.bf16.mxu0 %v5936_v5  ;;  %v5966_v5 = vcombine.high %v433_v40, %v437_v41  ;;  %v493_v27 = vld [vmem:[%s9391_s0 + $0x628] sm:$0xff] }
 0x123   :  { %v6022_v40 = vcombine.high %v489_v34, %v493_v27 }
 0x126   :  { %2473 = vmatmul.mubr.bf16.gmra.mrb[112].mxu1 %v6051_v13  ;;  %v5989_v13 = vcombine.low %v457_v58, %v461_v12 }
 0x127   :  { %2480 = vmatprep.mubr.bf16.mxu1 %v6060_v14  ;;  %v5998_v14 = vcombine.high %v465_v15, %v469_v17 }
 0x129   :  { %2931 = vmatmul.mubr.bf16.gmra.mrb[52].mxu0 %v5935_v50  ;;  %v5974_v50 = vcombine.high %v441_v46, %v445_v47  ;;  %v530_v46 = vld [vmem:[%s9391_s0 + $0x750] sm:$0xff] }
 0x12a   :  { %2938 = vmatprep.mubr.bf16.mxu0 %v5944_v51  ;;  %v5999_v51 = vcombine.low %v466_v4, %v470_v42  ;;  %v6047_v4 = vcombine.low %v514_v29, %v518_v30  ;;  %v534_v47 = vld [vmem:[%s9391_s0 + $0x770] sm:$0xff] }
 0x12e   :  { %2481 = vmatmul.mubr.bf16.gmra.mrb[116].mxu1 %v6059_v24  ;;  %v5997_v24 = vcombine.low %v465_v15, %v469_v17  ;;  %v546_v15 = vld [vmem:[%s9391_s0 + $0x7d0] sm:$0xff] }
 0x12f   :  { %2488 = vmatprep.mubr.bf16.mxu1 %v6068_v26  ;;  %v6006_v26 = vcombine.high %v473_v19, %v477_v21  ;;  %v550_v17 = vld [vmem:[%s9391_s0 + $0x7f0] sm:$0xff] }
 0x131   :  { %2939 = vmatmul.mubr.bf16.gmra.mrb[56].mxu0 %v5943_v56  ;;  %v5982_v56 = vcombine.high %v449_v52, %v453_v53  ;;  %v505_v52 = vld [vmem:[%s9391_s0 + $0x688] sm:$0xff] }
 0x132   :  { %2946 = vmatprep.mubr.bf16.mxu0 %v5952_v57  ;;  %v6007_v57 = vcombine.low %v474_v48, %v478_v49  ;;  %v6021_v48 = vcombine.low %v489_v34, %v493_v27  ;;  %v509_v53 = vld [vmem:[%s9391_s0 + $0x6a8] sm:$0xff]  ;;  %v307_v34 = vld [vmem:[%s9391_s0 + $0x58] sm:$0xff] }
 0x133   :  { %v6038_v58 = vcombine.high %v505_v52, %v509_v53  ;;  %v311_v27 = vld [vmem:[%s9391_s0 + $0x78] sm:$0xff] }
 0x136   :  { %2489 = vmatmul.mubr.bf16.gmra.mrb[120].mxu1 %v6067_v31  ;;  %v6005_v31 = vcombine.low %v473_v19, %v477_v21  ;;  %v521_v19 = vld [vmem:[%s9391_s0 + $0x708] sm:$0xff] }
 0x137   :  { %2496 = vmatprep.mubr.bf16.mxu1 %v6076_v32  ;;  %v6014_v32 = vcombine.high %v481_v23, %v485_v25  ;;  %v525_v21 = vld [vmem:[%s9391_s0 + $0x728] sm:$0xff] }
 0x138   :  { %v6053_v3 = vcombine.low %v521_v19, %v525_v21 }
 0x139   :  { %2947 = vmatmul.mubr.bf16.gmra.mrb[60].mxu0 %v5951_v63  ;;  %v6015_v63 = vcombine.low %v482_v0, %v486_v54 }
 0x13a   :  { %2954 = vmatprep.mubr.bf16.mxu0 %v5960_v6  ;;  %v6024_v6 = vcombine.high %v490_v59, %v494_v60 }
 0x13e   :  { %2497 = vmatmul.mubr.bf16.gmra.mrb[124].mxu1 %v6075_v36  ;;  %v522_v36 = vld [vmem:[%s9391_s0 + $0x710] sm:$0xff] }
 0x13f   :  { %2665 = vmatprep.mubr.bf16.mxu1 %v5958_v37  ;;  %v526_v37 = vld [vmem:[%s9391_s0 + $0x730] sm:$0xff] }
 0x140   :  { %v6056_v42 = vcombine.high %v522_v36, %v526_v37 }
 0x141   :  { %2955 = vmatmul.mubr.bf16.gmra.mrb[64].mxu0 %v5959_v16  ;;  %v6023_v16 = vcombine.low %v490_v59, %v494_v60  ;;  %v6063_v59 = vcombine.low %v530_v46, %v534_v47 }
 0x142   :  { %2962 = vmatprep.mubr.bf16.mxu0 %v5968_v18  ;;  %v6032_v18 = vcombine.high %v498_v7, %v502_v8 }
 0x146   :  { %2666 = vmatmul.mubr.bf16.vlgmr.msra.gmra.mrb[64].mxu1 %v5957_v43  ;;  %v497_v43 = vld [vmem:[%s9391_s0 + $0x648] sm:$0xff] }
 0x147   :  { %2673 = vmatprep.mubr.bf16.mxu1 %v5966_v5  ;;  %v501_v5 = vld [vmem:[%s9391_s0 + $0x668] sm:$0xff] }
 0x149   :  { %2963 = vmatmul.mubr.bf16.gmra.mrb[68].mxu0 %v5967_v1  ;;  %v6031_v1 = vcombine.low %v498_v7, %v502_v8  ;;  %v6037_v7 = vcombine.low %v505_v52, %v509_v53  ;;  %v545_v52 = vld [vmem:[%s9391_s0 + $0x7c8] sm:$0xff] }
 0x14a   :  { %2970 = vmatprep.mubr.bf16.mxu0 %v5976_v28  ;;  %v6040_v28 = vcombine.high %v506_v20, %v510_v22  ;;  %v549_v53 = vld [vmem:[%s9391_s0 + $0x7e8] sm:$0xff] }
 0x14e   :  { %2674 = vmatmul.mubr.bf16.gmra.mrb[68].mxu1 %v5965_v9  ;;  %v6030_v9 = vcombine.high %v497_v43, %v501_v5 }
 0x14f   :  { %2681 = vmatprep.mubr.bf16.mxu1 %v5974_v50 }
 0x151   :  { %2971 = vmatmul.mubr.bf16.gmra.mrb[72].mxu0 %v5975_v33  ;;  %v6039_v33 = vcombine.low %v506_v20, %v510_v22 }
 0x152   :  { %2978 = vmatprep.mubr.bf16.mxu0 %v5984_v2  ;;  %v6048_v2 = vcombine.high %v514_v29, %v518_v30  ;;  %v6079_v29 = vcombine.low %v546_v15, %v550_v17 }
 0x156   :  { %2682 = vmatmul.mubr.bf16.gmra.mrb[72].mxu1 %v5973_v55  ;;  %v538_v55 = vld [vmem:[%s9391_s0 + $0x790] sm:$0xff] }
 0x157   :  { %2689 = vmatprep.mubr.bf16.mxu1 %v5982_v56  ;;  %v542_v56 = vld [vmem:[%s9391_s0 + $0x7b0] sm:$0xff] }
 0x158   :  { %v6072_v60 = vcombine.high %v538_v55, %v542_v56 }
 0x159   :  { %2979 = vmatmul.mubr.bf16.gmra.mrb[76].mxu0 %v5983_v38  ;;  %v6013_v38 = vcombine.low %v481_v23, %v485_v25  ;;  %v6054_v23 = vcombine.high %v521_v19, %v525_v21 }
 0x15a   :  { %2986 = vmatprep.mubr.bf16.mxu0 %v5992_v39  ;;  %v8467_v39 = vpop.f32.mrb[2].mxu1 }
 0x15b   :  { %v2255_v41 = vpop.f32.mrb[3].mxu1 }
 0x15c   :  { %v5842_v41 = vcombine.high %v307_v34, %v311_v27 }
 0x15e   :  { %2690 = vmatmul.mubr.bf16.gmra.mrb[76].mxu1 %v5981_v61  ;;  %v513_v61 = vld [vmem:[%s9391_s0 + $0x6c8] sm:$0xff] }
 0x15f   :  { %2697 = vmatprep.mubr.bf16.mxu1 %v5990_v62  ;;  %v517_v62 = vld [vmem:[%s9391_s0 + $0x6e8] sm:$0xff] }
 0x161   :  { %2987 = vmatmul.mubr.bf16.gmra.mrb[80].mxu0 %v5991_v44  ;;  %v8475_v44 = vpop.f32.mrb[4].mxu1 }
 0x162   :  { %2994 = vmatprep.mubr.bf16.mxu0 %v6000_v45  ;;  %v2260_v45 = vpop.f32.mrb[5].mxu1 }
 0x163   :  { %v8483_v49 = vpop.f32.mrb[6].mxu1  ;;  %v315_v45 = vld [vmem:[%s9391_s0 + $0x98] sm:$0xff] }
 0x164   :  { %v2263_v50 = vpop.f32.mrb[7].mxu1 }
 0x165   :  { %v8491_v0 = vpop.f32.mrb[8].mxu1 }
 0x166   :  { %2698 = vmatmul.mubr.bf16.gmra.mrb[80].mxu1 %v5989_v13  ;;  %v2268_v54 = vpop.f32.mrb[9].mxu1  ;;  %v6046_v13 = vcombine.high %v513_v61, %v517_v62 }
 0x167   :  { %2705 = vmatprep.mubr.bf16.mxu1 %v5998_v14 }
 0x169   :  { %2995 = vmatmul.mubr.bf16.gmra.mrb[84].mxu0 %v5999_v51  ;;  %v6055_v51 = vcombine.low %v522_v36, %v526_v37 }
 0x16a   :  { %3002 = vmatprep.mubr.bf16.mxu0 %v6008_v10  ;;  %v6064_v10 = vcombine.high %v530_v46, %v534_v47  ;;  %v319_v46 = vld [vmem:[%s9391_s0 + $0xb8] sm:$0xff] }
 0x16e   :  { %2706 = vmatmul.mubr.bf16.gmra.mrb[84].mxu1 %v5997_v24  ;;  %v299_v24 = vld [vmem:[%s9391_s0 + $0x18] sm:$0xff] }
 0x16f   :  { %2713 = vmatprep.mubr.bf16.mxu1 %v6006_v26  ;;  %v303_v26 = vld [vmem:[%s9391_s0 + $0x38] sm:$0xff] }
 0x170   :  { %v5834_v30 = vcombine.high %v299_v24, %v303_v26 }
 0x171   :  { %3003 = vmatmul.mubr.bf16.gmra.mrb[88].mxu0 %v6007_v57  ;;  %v6029_v57 = vcombine.low %v497_v43, %v501_v5 }
 0x172   :  { %3010 = vmatprep.mubr.bf16.mxu0 %v6016_v11  ;;  %v8499_v11 = vpop.f32.mrb[10].mxu1 }
 0x173   :  { %v2271_v12 = vpop.f32.mrb[11].mxu1 }
 0x176   :  { %2714 = vmatmul.mubr.bf16.gmra.mrb[88].mxu1 %v6005_v31  ;;  %v529_v31 = vld [vmem:[%s9391_s0 + $0x748] sm:$0xff] }
 0x177   :  { %2721 = vmatprep.mubr.bf16.mxu1 %v6014_v32  ;;  %v533_v32 = vld [vmem:[%s9391_s0 + $0x768] sm:$0xff] }
 0x178   :  { %v6062_v37 = vcombine.high %v529_v31, %v533_v32  ;;  %v6061_v47 = vcombine.low %v529_v31, %v533_v32  ;;  %v347_v32 = vld [vmem:[%s9391_s0 + $0x198] sm:$0xff] }
 0x179   :  { %3011 = vmatmul.mubr.bf16.gmra.mrb[92].mxu0 %v6015_v63  ;;  %v8507_v63 = vpop.f32.mrb[12].mxu1 }
 0x17a   :  { %3018 = vmatprep.mubr.bf16.mxu0 %v6024_v6  ;;  %v2276_v6 = vpop.f32.mrb[13].mxu1 }
 0x17b   :  { %v8515_v8 = vpop.f32.mrb[14].mxu1 }
 0x17c   :  { %v2279_v14 = vpop.f32.mrb[15].mxu1 }
 0x17d   :  { %v8523_v20 = vpop.f32.mrb[16].mxu1 }
 0x17e   :  { %2722 = vmatmul.mubr.bf16.gmra.mrb[92].mxu1 %v6013_v38  ;;  %v2284_v22 = vpop.f32.mrb[17].mxu1 }
 0x17f   :  { %2729 = vmatprep.mubr.bf16.mxu1 %v6022_v40  ;;  %v5833_v40 = vcombine.low %v299_v24, %v303_v26  ;;  %v339_v24 = vld [vmem:[%s9391_s0 + $0x158] sm:$0xff] }
 0x180   :  { %v343_v26 = vld [vmem:[%s9391_s0 + $0x178] sm:$0xff] }
 0x181   :  { %3019 = vmatmul.mubr.bf16.gmra.mrb[96].mxu0 %v6023_v16  ;;  %v6071_v16 = vcombine.low %v538_v55, %v542_v56  ;;  %v323_v56 = vld [vmem:[%s9391_s0 + $0xd8] sm:$0xff] }
 0x182   :  { %3026 = vmatprep.mubr.bf16.mxu0 %v6032_v18  ;;  %v6080_v18 = vcombine.high %v546_v15, %v550_v17  ;;  %v331_v17 = vld [vmem:[%s9391_s0 + $0x118] sm:$0xff] }
 0x186   :  { %2730 = vmatmul.mubr.bf16.gmra.mrb[96].mxu1 %v6021_v48 }
 0x187   :  { %2737 = vmatprep.mubr.bf16.mxu1 %v6030_v9 }
 0x189   :  { %3027 = vmatmul.mubr.bf16.gmra.mrb[100].mxu0 %v6031_v1  ;;  %v6045_v1 = vcombine.low %v513_v61, %v517_v62  ;;  %v5849_v61 = vcombine.low %v315_v45, %v319_v46 }
 0x18a   :  { %3034 = vmatprep.mubr.bf16.mxu0 %v6040_v28  ;;  %v8531_v28 = vpop.f32.mrb[18].mxu1 }
 0x18b   :  { %v2287_v25 = vpop.f32.mrb[19].mxu1 }
 0x18e   :  { %2738 = vmatmul.mubr.bf16.gmra.mrb[100].mxu1 %v6029_v57  ;;  %v327_v57 = vld [vmem:[%s9391_s0 + $0xf8] sm:$0xff] }
 0x18f   :  { %2745 = vmatprep.mubr.bf16.mxu1 %v6038_v58  ;;  %v5858_v62 = vcombine.high %v323_v56, %v327_v57 }
 0x191   :  { %3035 = vmatmul.mubr.bf16.gmra.mrb[104].mxu0 %v6039_v33  ;;  %v8539_v33 = vpop.f32.mrb[20].mxu1 }
 0x192   :  { %3042 = vmatprep.mubr.bf16.mxu0 %v6048_v2  ;;  %v2292_v2 = vpop.f32.mrb[21].mxu1 }
 0x193   :  { %v8547_v36 = vpop.f32.mrb[22].mxu1  ;;  %v351_v2 = vld [vmem:[%s9391_s0 + $0x1b8] sm:$0xff] }
 0x194   :  { %v2295_v38 = vpop.f32.mrb[23].mxu1 }
 0x195   :  { %v8555_v43 = vpop.f32.mrb[24].mxu1 }
 0x196   :  { %2746 = vmatmul.mubr.bf16.gmra.mrb[104].mxu1 %v6037_v7  ;;  %v2300_v5 = vpop.f32.mrb[25].mxu1  ;;  %v335_v7 = vld [vmem:[%s9391_s0 + $0x138] sm:$0xff] }
 0x197   :  { %2753 = vmatprep.mubr.bf16.mxu1 %v6046_v13  ;;  %v8563_v48 = vpop.f32.mrb[26].mxu1  ;;  %v6077_v13 = vcombine.low %v545_v52, %v549_v53  ;;  %v5866_v19 = vcombine.high %v331_v17, %v335_v7  ;;  %v5865_v25 = vcombine.low %v331_v17, %v335_v7  ;;  %v7492_v7 = vld [vmem:[%s9392_s3] sm:$0xff]  }
 0x198   :  { %v2303_v50 = vpop.f32.mrb[27].mxu1  ;;  %6915 = vmatprep.subr.bf16.mxu1 %v7492_v7 }
 0x199   :  { %3043 = vmatmul.mubr.bf16.gmra.mrb[108].mxu0 %v6047_v4  ;;  %v537_v4 = vld [vmem:[%s9391_s0 + $0x788] sm:$0xff]  ;;  %v8571_v54 = vpop.f32.mrb[28].mxu1  ;;  %v363_v50 = vld [vmem:[%s9391_s0 + $0x218] sm:$0xff]  ;;  %6916 = vmatpush3.bf16.msra.mxu1 %v7492_v7 }
 0x19a   :  { %3050 = vmatprep.mubr.bf16.mxu0 %v6056_v42  ;;  %v541_v42 = vld [vmem:[%s9391_s0 + $0x7a8] sm:$0xff]  ;;  %v2308_v55 = vpop.f32.mrb[29].mxu1  ;;  %v419_v7 = vld [vmem:[%s9391_s0 + $0x3d8] sm:$0xff] }
 0x19b   :  { %v6070_v9 = vcombine.high %v537_v4, %v541_v42  ;;  %v6069_v58 = vcombine.low %v537_v4, %v541_v42  ;;  %v8579_v12 = vpop.f32.mrb[30].mxu1  ;;  %v359_v4 = vld [vmem:[%s9391_s0 + $0x1f8] sm:$0xff] }
 0x19e   :  { %2754 = vmatmul.mubr.bf16.gmra.mrb[108].mxu1 %v6045_v1 }
 0x19f   :  { %2761 = vmatprep.mubr.bf16.mxu1 %v6054_v23 }
 0x1a1   :  { %3051 = vmatmul.mubr.bf16.gmra.mrb[112].mxu0 %v6055_v51  ;;  %v5841_v51 = vcombine.low %v307_v34, %v311_v27 }
 0x1a2   :  { %3058 = vmatprep.mubr.bf16.mxu0 %v6064_v10  ;;  %v5850_v10 = vcombine.high %v315_v45, %v319_v46  ;;  %v5881_v45 = vcombine.low %v347_v32, %v351_v2 }
 0x1a6   :  { %2762 = vmatmul.mubr.bf16.gmra.mrb[112].mxu1 %v6053_v3  ;;  %v5873_v3 = vcombine.low %v339_v24, %v343_v26 }
 0x1a7   :  { %2769 = vmatprep.mubr.bf16.mxu1 %v6062_v37  ;;  %v5882_v37 = vcombine.high %v347_v32, %v351_v2  ;;  %v387_v2 = vld [vmem:[%s9391_s0 + $0x2d8] sm:$0xff] }
 0x1a9   :  { %3059 = vmatmul.mubr.bf16.gmra.mrb[116].mxu0 %v6063_v59  ;;  %v6078_v59 = vcombine.high %v545_v52, %v549_v53 }
 0x1aa   :  { %3066 = vmatprep.mubr.bf16.mxu0 %v6072_v60  ;;  %v2311_v60 = vpop.f32.mrb[31].mxu1 }
 0x1ab   :  { %v8581_v6 = vpop.f32.mrb[32].mxu1 }
 0x1ac   :  { %v2316_v15 = vpop.f32.mrb[33].mxu1 }
 0x1ad   :  { %v8589_v14 = vpop.f32.mrb[34].mxu1 }
 0x1ae   :  { %2770 = vmatmul.mubr.bf16.gmra.mrb[116].mxu1 %v6061_v47 }
 0x1af   :  { %2777 = vmatprep.mubr.bf16.mxu1 %v6070_v9 }
 0x1b1   :  { %3067 = vmatmul.mubr.bf16.gmra.mrb[120].mxu0 %v6071_v16  ;;  %v2319_v16 = vpop.f32.mrb[35].mxu1 }
 0x1b2   :  { %3074 = vmatprep.mubr.bf16.mxu0 %v6080_v18  ;;  %v5857_v18 = vcombine.low %v323_v56, %v327_v57  ;;  %v8591_v21 = vpop.f32.mrb[36].mxu1  ;;  %v7493_v16 = vld [vmem:[%s9392_s3 + $0x8] sm:$0xff]  }
 0x1b3   :  { %v2324_v22 = vpop.f32.mrb[37].mxu1  ;;  %6917 = vmatprep.subr.bf16.mxu1 %v7493_v16 }
 0x1b4   :  { %v8599_v1 = vpop.f32.mrb[38].mxu1  ;;  %6918 = vmatpush3.bf16.msra.mxu1 %v7493_v16 }
 0x1b5   :  { %v2327_v23 = vpop.f32.mrb[39].mxu1 }
 0x1b6   :  { %2778 = vmatmul.mubr.bf16.gmra.mrb[120].mxu1 %v6069_v58  ;;  %v371_v58 = vld [vmem:[%s9391_s0 + $0x258] sm:$0xff] }
 0x1b7   :  { %2785 = vmatprep.mubr.bf16.mxu1 %v6078_v59  ;;  %v375_v59 = vld [vmem:[%s9391_s0 + $0x278] sm:$0xff] }
 0x1b8   :  { %v5906_v15 = vcombine.high %v371_v58, %v375_v59 }
 0x1b9   :  { %3075 = vmatmul.mubr.bf16.gmra.mrb[124].mxu0 %v6079_v29  ;;  %v5874_v29 = vcombine.high %v339_v24, %v343_v26  ;;  %v5905_v26 = vcombine.low %v371_v58, %v375_v59  ;;  %v411_v59 = vld [vmem:[%s9391_s0 + $0x398] sm:$0xff] }
 0x1ba   :  { %3115 = vmatprep.mubr.bf16.mxu0 %v5834_v30  ;;  %v8601_v30 = vpop.f32.mrb[40].mxu1 }
 0x1bb   :  { %v2332_v31 = vpop.f32.mrb[41].mxu1 }
 0x1bc   :  { %v8609_v34 = vpop.f32.mrb[42].mxu1  ;;  %v7495_v31 = vld [vmem:[%s9392_s3 + $0x18] sm:$0xff]  }
 0x1bd   :  { %v2335_v27 = vpop.f32.mrb[43].mxu1 }
 0x1be   :  { %2786 = vmatmul.mubr.bf16.gmra.mrb[124].mxu1 %v6077_v13  ;;  %v8611_v38 = vpop.f32.mrb[44].mxu1  ;;  %v391_v27 = vld [vmem:[%s9391_s0 + $0x2f8] sm:$0xff] }
 0x1c1   :  { %3116 = vmatmul.mubr.bf16.vlgmr.msra.gmra.mrb[0].mxu0 %v5833_v40  ;;  %v2340_v40 = vpop.f32.mrb[45].mxu1 }
 0x1c2   :  { %3123 = vmatprep.mubr.bf16.mxu0 %v5842_v41  ;;  %v355_v41 = vld [vmem:[%s9391_s0 + $0x1d8] sm:$0xff]  ;;  %v8619_v42 = vpop.f32.mrb[46].mxu1 }
 0x1c3   :  { %v2343_v5 = vpop.f32.mrb[47].mxu1  ;;  %v5890_v46 = vcombine.high %v355_v41, %v359_v4  ;;  %v5889_v53 = vcombine.low %v355_v41, %v359_v4  ;;  %v5922_v41 = vcombine.high %v387_v2, %v391_v27  ;;  %v7496_v4 = vld [vmem:[%s9392_s3 + $0x20] sm:$0xff]  }
 0x1c4   :  { %v8621_v47 = vpop.f32.mrb[48].mxu1  ;;  %v395_v5 = vld [vmem:[%s9391_s0 + $0x318] sm:$0xff] }
 0x1c5   :  { %v2348_v9 = vpop.f32.mrb[49].mxu1 }
 0x1c6   :  { %v7497_v9 = vld [vmem:[%s9392_s3 + $0x28] sm:$0xff]  }
 0x1c9   :  { %3124 = vmatmul.mubr.bf16.gmra.mrb[4].mxu0 %v5841_v51  ;;  %v367_v51 = vld [vmem:[%s9391_s0 + $0x238] sm:$0xff] }
 0x1ca   :  { %3131 = vmatprep.mubr.bf16.mxu0 %v5850_v10  ;;  %v8629_v10 = vpop.f32.mrb[50].mxu1  ;;  %v5898_v55 = vcombine.high %v363_v50, %v367_v51 }
 0x1cb   :  { %v2351_v52 = vpop.f32.mrb[51].mxu1 }
 0x1cc   :  { %v8631_v56 = vpop.f32.mrb[52].mxu1  ;;  %v403_v52 = vld [vmem:[%s9391_s0 + $0x358] sm:$0xff] }
 0x1cd   :  { %v2356_v57 = vpop.f32.mrb[53].mxu1 }
 0x1ce   :  { %v8639_v60 = vpop.f32.mrb[54].mxu1  ;;  %v7499_v57 = vld [vmem:[%s9392_s3 + $0x38] sm:$0xff]  }
 0x1d1   :  { %3132 = vmatmul.mubr.bf16.gmra.mrb[8].mxu0 %v5849_v61  ;;  %v2359_v61 = vpop.f32.mrb[55].mxu1 }
 0x1d2   :  { %3139 = vmatprep.mubr.bf16.mxu0 %v5858_v62  ;;  %v5897_v62 = vcombine.low %v363_v50, %v367_v51  ;;  %v8641_v17 = vpop.f32.mrb[56].mxu1  ;;  %v7498_v51 = vld [vmem:[%s9392_s3 + $0x30] sm:$0xff]   ;;  %v415_v61 = vld [vmem:[%s9391_s0 + $0x3b8] sm:$0xff] }
 0x1d3   :  { %v2364_v13 = vpop.f32.mrb[57].mxu1  ;;  %v5945_v16 = vcombine.low %v411_v59, %v415_v61 }
 0x1d4   :  { %v8655_v22 = vpop.f32.mrb[58].mxu1  ;;  %v423_v13 = vld [vmem:[%s9391_s0 + $0x3f8] sm:$0xff] }
 0x1d5   :  { %v2367_v24 = vpop.f32.mrb[59].mxu1 }
 0x1d6   :  { %v427_v24 = vld [vmem:[%s9391_s0 + $0x418] sm:$0xff] }
 0x1d9   :  { %3140 = vmatmul.mubr.bf16.gmra.mrb[12].mxu0 %v5857_v18  ;;  %v379_v18 = vld [vmem:[%s9391_s0 + $0x298] sm:$0xff] }
 0x1da   :  { %3147 = vmatprep.mubr.bf16.mxu0 %v5866_v19  ;;  %v383_v19 = vld [vmem:[%s9391_s0 + $0x2b8] sm:$0xff] }
 0x1db   :  { %v5914_v23 = vcombine.high %v379_v18, %v383_v19  ;;  %v5913_v40 = vcombine.low %v379_v18, %v383_v19  ;;  %v5954_v18 = vcombine.high %v419_v7, %v423_v13 }
 0x1e1   :  { %3148 = vmatmul.mubr.bf16.gmra.mrb[16].mxu0 %v5865_v25  ;;  %v8657_v25 = vpop.f32.mrb[60].mxu1 }
 0x1e2   :  { %3155 = vmatprep.mubr.bf16.mxu0 %v5874_v29  ;;  %v7494_v29 = vld [vmem:[%s9392_s3 + $0x10] sm:$0xff]   ;;  %v2372_v32 = vpop.f32.mrb[61].mxu1 }
 0x1e3   :  { %6919 = vmatprep.subr.bf16.mxu1 %v7494_v29 }
 0x1e4   :  { %6920 = vmatpush3.bf16.msra.mxu1 %v7494_v29 }
 0x1e5   :  { %6921 = vmatprep.subr.bf16.mxu1 %v7495_v31 }
 0x1e8   :  { %6922 = vmatpush3.bf16.msra.mxu1 %v7495_v31  ;;  %v5953_v31 = vcombine.low %v419_v7, %v423_v13 }
 0x1e9   :  { %3156 = vmatmul.mubr.bf16.gmra.mrb[20].mxu0 %v5873_v3  ;;  %v8671_v3 = vpop.f32.mrb[62].mxu1  ;;  %6923 = vmatprep.subr.bf16.mxu1 %v7496_v4 }
 0x1ea   :  { %3163 = vmatprep.mubr.bf16.mxu0 %v5882_v37  ;;  %v2375_v37 = vpop.f32.mrb[63].mxu1 }
 0x1eb   :  { %v435_v37 = vld [vmem:[%s9391_s0 + $0x458] sm:$0xff] }
 0x1ec   :  { %6924 = vmatpush3.bf16.msra.mxu1 %v7496_v4 }
 0x1ed   :  { %6925 = vmatprep.subr.bf16.mxu1 %v7497_v9 }
 0x1f0   :  { %6926 = vmatpush3.bf16.msra.mxu1 %v7497_v9 }
 0x1f1   :  { %3164 = vmatmul.mubr.bf16.gmra.mrb[24].mxu0 %v5881_v45  ;;  %v399_v45 = vld [vmem:[%s9391_s0 + $0x338] sm:$0xff]  ;;  %6927 = vmatprep.subr.bf16.mxu1 %v7498_v51 }
 0x1f2   :  { %3171 = vmatprep.mubr.bf16.mxu0 %v5890_v46  ;;  %v5921_v46 = vcombine.low %v387_v2, %v391_v27  ;;  %v5930_v50 = vcombine.high %v395_v5, %v399_v45 }
 0x1f4   :  { %6928 = vmatpush3.bf16.msra.mxu1 %v7498_v51  ;;  %v447_v51 = vld [vmem:[%s9391_s0 + $0x4b8] sm:$0xff] }
 0x1f5   :  { %6929 = vmatprep.subr.bf16.mxu1 %v7499_v57 }
 0x1f8   :  { %6930 = vmatpush3.bf16.msra.mxu1 %v7499_v57 }
 0x1f9   :  { %3172 = vmatmul.mubr.bf16.gmra.mrb[28].mxu0 %v5889_v53  ;;  %v407_v53 = vld [vmem:[%s9391_s0 + $0x378] sm:$0xff] }
 0x1fa   :  { %3179 = vmatprep.mubr.bf16.mxu0 %v5898_v55  ;;  %v5929_v55 = vcombine.low %v395_v5, %v399_v45  ;;  %v5938_v58 = vcombine.high %v403_v52, %v407_v53 }
 0x201   :  { %3180 = vmatmul.mubr.bf16.gmra.mrb[32].mxu0 %v5897_v62  ;;  %v5937_v62 = vcombine.low %v403_v52, %v407_v53 }
 0x202   :  { %3187 = vmatprep.mubr.bf16.mxu0 %v5906_v15  ;;  %v5946_v15 = vcombine.high %v411_v59, %v415_v61  ;;  %v451_v61 = vld [vmem:[%s9391_s0 + $0x4d8] sm:$0xff] }
 0x209   :  { %3188 = vmatmul.mubr.bf16.gmra.mrb[36].mxu0 %v5905_v26  ;;  %v431_v26 = vld [vmem:[%s9391_s0 + $0x438] sm:$0xff] }
 0x20a   :  { %3195 = vmatprep.mubr.bf16.mxu0 %v5914_v23  ;;  %v5962_v2 = vcombine.high %v427_v24, %v431_v26  ;;  %v5961_v5 = vcombine.low %v427_v24, %v431_v26  ;;  %v459_v26 = vld [vmem:[%s9391_s0 + $0x518] sm:$0xff] }
 0x211   :  { %3196 = vmatmul.mubr.bf16.gmra.mrb[40].mxu0 %v5913_v40  ;;  %v439_v40 = vld [vmem:[%s9391_s0 + $0x478] sm:$0xff] }
 0x212   :  { %3203 = vmatprep.mubr.bf16.mxu0 %v5922_v41 }
 0x219   :  { %3204 = vmatmul.mubr.bf16.gmra.mrb[44].mxu0 %v5921_v46  ;;  %v8709_v19 = vpop.f32.mrb[64].mxu1  ;;  %v5970_v46 = vcombine.high %v435_v37, %v439_v40 }
 0x21a   :  { %3211 = vmatprep.mubr.bf16.mxu0 %v5930_v50  ;;  %v2669_v23 = vpop.f32.mrb[65].mxu1  ;;  %v443_v50 = vld [vmem:[%s9391_s0 + $0x498] sm:$0xff] }
 0x21b   :  { %v8717_v29 = vpop.f32.mrb[66].mxu1  ;;  %v5977_v13 = vcombine.low %v443_v50, %v447_v51  ;;  %v463_v23 = vld [vmem:[%s9391_s0 + $0x538] sm:$0xff] }
 0x21c   :  { %v2672_v32 = vpop.f32.mrb[67].mxu1 }
 0x221   :  { %3212 = vmatmul.mubr.bf16.gmra.mrb[48].mxu0 %v5929_v55  ;;  %v8719_v27 = vpop.f32.mrb[68].mxu1  ;;  %v5969_v55 = vcombine.low %v435_v37, %v439_v40  ;;  %v5994_v40 = vcombine.high %v459_v26, %v463_v23 }
 0x222   :  { %3219 = vmatprep.mubr.bf16.mxu0 %v5938_v58  ;;  %v2677_v41 = vpop.f32.mrb[69].mxu1  ;;  %v5978_v58 = vcombine.high %v443_v50, %v447_v51  ;;  %v5993_v51 = vcombine.low %v459_v26, %v463_v23  ;;  %v483_v23 = vld [vmem:[%s9391_s0 + $0x5d8] sm:$0xff] }
 0x223   :  { %v8727_v4 = vpop.f32.mrb[70].mxu1 }
 0x224   :  { %v2680_v45 = vpop.f32.mrb[71].mxu1 }
 0x225   :  { %v471_v45 = vld [vmem:[%s9391_s0 + $0x578] sm:$0xff] }
 0x229   :  { %3220 = vmatmul.mubr.bf16.gmra.mrb[52].mxu0 %v5937_v62  ;;  %v8729_v9 = vpop.f32.mrb[72].mxu1  ;;  %v455_v62 = vld [vmem:[%s9391_s0 + $0x4f8] sm:$0xff] }
 0x22a   :  { %3227 = vmatprep.mubr.bf16.mxu0 %v5946_v15  ;;  %v2685_v52 = vpop.f32.mrb[73].mxu1 }
 0x22b   :  { %v8737_v53 = vpop.f32.mrb[74].mxu1 }
 0x22c   :  { %v2688_v57 = vpop.f32.mrb[75].mxu1 }
 0x231   :  { %3228 = vmatmul.mubr.bf16.gmra.mrb[56].mxu0 %v5945_v16  ;;  %v8739_v59 = vpop.f32.mrb[76].mxu1 }
 0x232   :  { %3235 = vmatprep.mubr.bf16.mxu0 %v5954_v18  ;;  %v2693_v15 = vpop.f32.mrb[77].mxu1  ;;  %v5986_v18 = vcombine.high %v451_v61, %v455_v62 }
 0x233   :  { %v8747_v7 = vpop.f32.mrb[78].mxu1 }
 0x234   :  { %v2696_v16 = vpop.f32.mrb[79].mxu1 }
 0x239   :  { %3236 = vmatmul.mubr.bf16.gmra.mrb[60].mxu0 %v5953_v31  ;;  %v8749_v24 = vpop.f32.mrb[80].mxu1 }
 0x23a   :  { %3243 = vmatprep.mubr.bf16.mxu0 %v5962_v2  ;;  %v2701_v31 = vpop.f32.mrb[81].mxu1  ;;  %v5985_v2 = vcombine.low %v451_v61, %v455_v62  ;;  %v479_v61 = vld [vmem:[%s9391_s0 + $0x5b8] sm:$0xff] }
 0x23b   :  { %v8757_v32 = vpop.f32.mrb[82].mxu1  ;;  %v487_v31 = vld [vmem:[%s9391_s0 + $0x5f8] sm:$0xff] }
 0x23c   :  { %v2704_v37 = vpop.f32.mrb[83].mxu1 }
 0x241   :  { %3244 = vmatmul.mubr.bf16.gmra.mrb[64].mxu0 %v5961_v5  ;;  %v8759_v41 = vpop.f32.mrb[84].mxu1  ;;  %v467_v5 = vld [vmem:[%s9391_s0 + $0x558] sm:$0xff] }
 0x242   :  { %3251 = vmatprep.mubr.bf16.mxu0 %v5970_v46  ;;  %v2709_v46 = vpop.f32.mrb[85].mxu1 }
 0x243   :  { %v8767_v50 = vpop.f32.mrb[86].mxu1 }
 0x244   :  { %v2712_v52 = vpop.f32.mrb[87].mxu1 }
 0x245   :  { %v495_v52 = vld [vmem:[%s9391_s0 + $0x638] sm:$0xff] }
 0x249   :  { %3252 = vmatmul.mubr.bf16.gmra.mrb[68].mxu0 %v5969_v55  ;;  %v6002_v55 = vcombine.high %v467_v5, %v471_v45  ;;  %v8769_v57 = vpop.f32.mrb[88].mxu1 }
 0x24a   :  { %3259 = vmatprep.mubr.bf16.mxu0 %v5978_v58  ;;  %v475_v58 = vld [vmem:[%s9391_s0 + $0x598] sm:$0xff]  ;;  %v2717_v62 = vpop.f32.mrb[89].mxu1 }
 0x24b   :  { %v8777_v15 = vpop.f32.mrb[90].mxu1 }
 0x24c   :  { %v2720_v16 = vpop.f32.mrb[91].mxu1 }
 0x251   :  { %3260 = vmatmul.mubr.bf16.gmra.mrb[72].mxu0 %v5977_v13  ;;  %v6001_v13 = vcombine.low %v467_v5, %v471_v45  ;;  %v8779_v26 = vpop.f32.mrb[92].mxu1  ;;  %v6018_v5 = vcombine.high %v483_v23, %v487_v31 }
 0x252   :  { %3267 = vmatprep.mubr.bf16.mxu0 %v5986_v18  ;;  %v6010_v18 = vcombine.high %v475_v58, %v479_v61 }
 0x259   :  { %3268 = vmatmul.mubr.bf16.gmra.mrb[76].mxu0 %v5985_v2  ;;  %v2725_v2 = vpop.f32.mrb[93].mxu1 }
 0x25a   :  { %3275 = vmatprep.mubr.bf16.mxu0 %v5994_v40  ;;  %v8787_v37 = vpop.f32.mrb[94].mxu1  ;;  %v6009_v40 = vcombine.low %v475_v58, %v479_v61  ;;  %v503_v2 = vld [vmem:[%s9391_s0 + $0x678] sm:$0xff] }
 0x25b   :  { %9401 = vst [vmem:[#allocation3_spill] sm:$0xff] %v8787_v37  ;;  %v2728_v46 = vpop.f32.mrb[95].mxu1 }
 0x25c   :  { %v8789_v45 = vpop.f32.mrb[96].mxu1 }
 0x25d   :  { %9402 = vst [vmem:[#allocation4_spill] sm:$0xff] %v8789_v45 }
 0x261   :  { %3276 = vmatmul.mubr.bf16.gmra.mrb[80].mxu0 %v5993_v51  ;;  %v491_v51 = vld [vmem:[%s9391_s0 + $0x618] sm:$0xff] }
 0x262   :  { %3283 = vmatprep.mubr.bf16.mxu0 %v6002_v55  ;;  %v2733_v55 = vpop.f32.mrb[97].mxu1  ;;  %v6026_v58 = vcombine.high %v491_v51, %v495_v52 }
 0x263   :  { %v8797_v62 = vpop.f32.mrb[98].mxu1 }
 0x264   :  { %9403 = vst [vmem:[#allocation5_spill] sm:$0xff] %v8797_v62  ;;  %v2736_v16 = vpop.f32.mrb[99].mxu1 }
 0x265   :  { %v8799_v61 = vpop.f32.mrb[100].mxu1  ;;  %v511_v16 = vld [vmem:[%s9391_s0 + $0x6b8] sm:$0xff] }
 0x266   :  { %9404 = vst [vmem:[#allocation6_spill] sm:$0xff] %v8799_v61 }
 0x269   :  { %3284 = vmatmul.mubr.bf16.gmra.mrb[84].mxu0 %v6001_v13  ;;  %v6017_v13 = vcombine.low %v483_v23, %v487_v31 }
 0x26a   :  { %3291 = vmatprep.mubr.bf16.mxu0 %v6010_v18  ;;  %v499_v18 = vld [vmem:[%s9391_s0 + $0x658] sm:$0xff] }
 0x26b   :  { %v6034_v23 = vcombine.high %v499_v18, %v503_v2 }
 0x271   :  { %3292 = vmatmul.mubr.bf16.gmra.mrb[88].mxu0 %v6009_v40  ;;  %v2741_v40 = vpop.f32.mrb[101].mxu1 }
 0x272   :  { %3299 = vmatprep.mubr.bf16.mxu0 %v6018_v5  ;;  %v8807_v46 = vpop.f32.mrb[102].mxu1  ;;  %v6025_v5 = vcombine.low %v491_v51, %v495_v52  ;;  %v6033_v40 = vcombine.low %v499_v18, %v503_v2 }
 0x273   :  { %9405 = vst [vmem:[#allocation7_spill] sm:$0xff] %v8807_v46  ;;  %v2744_v55 = vpop.f32.mrb[103].mxu1 }
 0x274   :  { %v8809_v31 = vpop.f32.mrb[104].mxu1  ;;  %v519_v55 = vld [vmem:[%s9391_s0 + $0x6f8] sm:$0xff] }
 0x275   :  { %9406 = vst [vmem:[#allocation8_spill] sm:$0xff] %v8809_v31 }
 0x279   :  { %3300 = vmatmul.mubr.bf16.gmra.mrb[92].mxu0 %v6017_v13  ;;  %v507_v13 = vld [vmem:[%s9391_s0 + $0x698] sm:$0xff] }
 0x27a   :  { %3307 = vmatprep.mubr.bf16.mxu0 %v6026_v58  ;;  %v2749_v58 = vpop.f32.mrb[105].mxu1  ;;  %v6042_v51 = vcombine.high %v507_v13, %v511_v16 }
 0x27b   :  { %v8817_v61 = vpop.f32.mrb[106].mxu1  ;;  %v6041_v58 = vcombine.low %v507_v13, %v511_v16 }
 0x27c   :  { %9407 = vst [vmem:[#allocation9_spill] sm:$0xff] %v8817_v61  ;;  %v2752_v46 = vpop.f32.mrb[107].mxu1 }
 0x27d   :  { %v8819_v52 = vpop.f32.mrb[108].mxu1  ;;  %v523_v46 = vld [vmem:[%s9391_s0 + $0x718] sm:$0xff] }
 0x27e   :  { %9408 = vst [vmem:[#allocation10_spill] sm:$0xff] %v8819_v52 }
 0x281   :  { %3308 = vmatmul.mubr.bf16.gmra.mrb[96].mxu0 %v6025_v5  ;;  %v515_v5 = vld [vmem:[%s9391_s0 + $0x6d8] sm:$0xff] }
 0x282   :  { %3315 = vmatprep.mubr.bf16.mxu0 %v6034_v23  ;;  %v2757_v23 = vpop.f32.mrb[109].mxu1  ;;  %v6050_v18 = vcombine.high %v515_v5, %v519_v55  ;;  %v6049_v16 = vcombine.low %v515_v5, %v519_v55 }
 0x283   :  { %v8827_v31 = vpop.f32.mrb[110].mxu1 }
 0x284   :  { %9409 = vst [vmem:[#allocation11_spill] sm:$0xff] %v8827_v31  ;;  %v2760_v61 = vpop.f32.mrb[111].mxu1 }
 0x285   :  { %v8829_v2 = vpop.f32.mrb[112].mxu1 }
 0x286   :  { %9410 = vst [vmem:[#allocation12_spill] sm:$0xff] %v8829_v2 }
 0x289   :  { %3316 = vmatmul.mubr.bf16.gmra.mrb[100].mxu0 %v6033_v40  ;;  %v527_v40 = vld [vmem:[%s9391_s0 + $0x738] sm:$0xff] }
 0x28a   :  { %3323 = vmatprep.mubr.bf16.mxu0 %v6042_v51  ;;  %v2765_v51 = vpop.f32.mrb[113].mxu1  ;;  %v6058_v31 = vcombine.high %v523_v46, %v527_v40 }
 0x28b   :  { %v8837_v23 = vpop.f32.mrb[114].mxu1  ;;  %v531_v51 = vld [vmem:[%s9391_s0 + $0x758] sm:$0xff] }
 0x291   :  { %3324 = vmatmul.mubr.bf16.gmra.mrb[104].mxu0 %v6041_v58  ;;  %v2768_v58 = vpop.f32.mrb[115].mxu1 }
 0x292   :  { %3331 = vmatprep.mubr.bf16.mxu0 %v6050_v18  ;;  %v8841_v37 = vpop.f32.mrb[116].mxu1 }
 0x294   :  { %v3117_v52 = vpop.f32.mrb[0].mxu0 }
 0x295   :  { %v7107_v13 = vadd.f32 %v3117_v52, %v8459_v35  ;;  %v3119_v61 = vpop.f32.mrb[1].mxu0  ;;  %v535_v35 = vld [vmem:[%s9391_s0 + $0x778] sm:$0xff]  ;;  %v2773_v52 = vpop.f32.mrb[117].mxu1 }
 0x296   :  { %v3120_v18 = vpop.f32.mrb[2].mxu0  ;;  %v8849_v55 = vpop.f32.mrb[118].mxu1  ;;  %v6066_v61 = vcombine.high %v531_v51, %v535_v35 }
 0x297   :  { %v7108_v2 = vadd.f32 %v3120_v18, %v8467_v39  ;;  %v3122_v62 = vpop.f32.mrb[3].mxu0 }
 0x299   :  { %v3567_v45 = vpack.c.bf16 %v7108_v2, %v7107_v13  ;;  %3332 = vmatmul.mubr.bf16.gmra.mrb[108].mxu0 %v6049_v16  ;;  %v6057_v2 = vcombine.low %v523_v46, %v527_v40  ;;  %v543_v46 = vld [vmem:[%s9391_s0 + $0x7b8] sm:$0xff] }
 0x29a   :  { %3339 = vmatprep.mubr.bf16.mxu0 %v6058_v31  ;;  %v2776_v31 = vpop.f32.mrb[119].mxu1 }
 0x29b   :  { %6931 = vmatprep.mubr.bf16.mxu1 %v3567_v45  ;;  %v7500_v45 = vld [vmem:[%s9393_s5] sm:$0xff]   ;;  %v8856_v52 = vpop.f32.mrb[120].mxu1 }
 0x29c   :  { %v3125_v5 = vpop.f32.mrb[4].mxu0  ;;  %6995 = vmatprep.subr.bf16.mxu1 %v7500_v45  ;;  %9411 = vst [vmem:[#allocation13_spill] sm:$0xff] %v8856_v52  ;;  %v2781_v40 = vpop.f32.mrb[121].mxu1 }
 0x29d   :  { %v7109_v39 = vadd.f32 %v3125_v5, %v8475_v44  ;;  %v3127_v62 = vpop.f32.mrb[5].mxu0  ;;  %v539_v44 = vld [vmem:[%s9391_s0 + $0x798] sm:$0xff] }
 0x29e   :  { %v3128_v13 = vpop.f32.mrb[6].mxu0  ;;  %v8864_v62 = vpop.f32.mrb[122].mxu1 }
 0x29f   :  { %v7110_v16 = vadd.f32 %v3128_v13, %v8483_v49  ;;  %v3130_v58 = vpop.f32.mrb[7].mxu0  ;;  %v2784_v31 = vpop.f32.mrb[123].mxu1 }
 0x2a0   :  { %v8868_v52 = vpop.f32.mrb[124].mxu1 }
 0x2a1   :  { %v3568_v18 = vpack.c.bf16 %v7110_v16, %v7109_v39  ;;  %3340 = vmatmul.mubr.bf16.gmra.mrb[112].mxu0 %v6057_v2  ;;  %v6065_v2 = vcombine.low %v531_v51, %v535_v35  ;;  %9412 = vst [vmem:[#allocation14_spill] sm:$0xff] %v8868_v52  ;;  %v2789_v51 = vpop.f32.mrb[125].mxu1 }
 0x2a2   :  { %3347 = vmatprep.mubr.bf16.mxu0 %v6066_v61  ;;  %v6074_v61 = vcombine.high %v539_v44, %v543_v46  ;;  %v8879_v40 = vpop.f32.mrb[126].mxu1 }
 0x2a3   :  { %6932 = vmatmul.mubr.bf16.vlgmr.msra.gmra.mrb[128].mxu1 %v3568_v18  ;;  %9413 = vst [vmem:[#allocation15_spill] sm:$0xff] %v8879_v40 }
 0x2a4   :  { %v3133_v5 = vpop.f32.mrb[8].mxu0  ;;  %6996 = vmatpush3.bf16.msra.mxu1 %v7500_v45  ;;  %v547_v45 = vld [vmem:[%s9391_s0 + $0x7d8] sm:$0xff] }
 0x2a5   :  { %v7111_v49 = vadd.f32 %v3133_v5, %v8491_v0  ;;  %v3135_v39 = vpop.f32.mrb[9].mxu0  ;;  %v551_v0 = vld [vmem:[%s9391_s0 + $0x7f8] sm:$0xff] }
 0x2a6   :  { %v3136_v13 = vpop.f32.mrb[10].mxu0  ;;  %v6073_v39 = vcombine.low %v539_v44, %v543_v46  ;;  %v6081_v52 = vcombine.low %v547_v45, %v551_v0 }
 0x2a7   :  { %v7112_v16 = vadd.f32 %v3136_v13, %v8499_v11  ;;  %v3138_v58 = vpop.f32.mrb[11].mxu0  ;;  %v7501_v11 = vld [vmem:[%s9393_s5 + $0x8] sm:$0xff]   ;;  %v6082_v13 = vcombine.high %v547_v45, %v551_v0 }
 0x2a8   :  { %6997 = vmatprep.subr.bf16.mxu1 %v7501_v11 }
 0x2a9   :  { %v3569_v18 = vpack.c.bf16 %v7112_v16, %v7111_v49  ;;  %3348 = vmatmul.mubr.bf16.gmra.mrb[116].mxu0 %v6065_v2  ;;  %v2792_v2 = vpop.f32.mrb[127].mxu1  ;;  %6998 = vmatpush3.bf16.msra.mxu1 %v7501_v11 }
 0x2aa   :  { %3355 = vmatprep.mubr.bf16.mxu0 %v6074_v61 }
 0x2ab   :  { %6935 = vmatprep.mubr.bf16.mxu1 %v3569_v18 }
 0x2ac   :  { %v3141_v35 = vpop.f32.mrb[12].mxu0 }
 0x2ad   :  { %v7113_v5 = vadd.f32 %v3141_v35, %v8507_v63  ;;  %v3143_v49 = vpop.f32.mrb[13].mxu0 }
 0x2ae   :  { %v3144_v31 = vpop.f32.mrb[14].mxu0 }
 0x2af   :  { %v7114_v61 = vadd.f32 %v3144_v31, %v8515_v8  ;;  %v3146_v16 = vpop.f32.mrb[15].mxu0  ;;  %v7502_v8 = vld [vmem:[%s9393_s5 + $0x10] sm:$0xff]  }
 0x2b0   :  { %6999 = vmatprep.subr.bf16.mxu1 %v7502_v8 }
 0x2b1   :  { %v3570_v58 = vpack.c.bf16 %v7114_v61, %v7113_v5  ;;  %3356 = vmatmul.mubr.bf16.gmra.mrb[120].mxu0 %v6073_v39  ;;  %7000 = vmatpush3.bf16.msra.mxu1 %v7502_v8 }
 0x2b2   :  { %3363 = vmatprep.mubr.bf16.mxu0 %v6082_v13 }
 0x2b3   :  { %6936 = vmatmul.mubr.bf16.gmra.mrb[132].mxu1 %v3570_v58 }
 0x2b4   :  { %v3149_v18 = vpop.f32.mrb[16].mxu0 }
 0x2b5   :  { %v7115_v51 = vadd.f32 %v3149_v18, %v8523_v20  ;;  %v3151_v40 = vpop.f32.mrb[17].mxu0 }
 0x2b6   :  { %v3152_v63 = vpop.f32.mrb[18].mxu0 }
 0x2b7   :  { %v7116_v44 = vadd.f32 %v3152_v63, %v8531_v28  ;;  %v3154_v46 = vpop.f32.mrb[19].mxu0 }
 0x2b9   :  { %v3571_v35 = vpack.c.bf16 %v7116_v44, %v7115_v51  ;;  %3364 = vmatmul.mubr.bf16.gmra.mrb[124].mxu0 %v6081_v52 }
 0x2bb   :  { %6939 = vmatprep.mubr.bf16.mxu1 %v3571_v35 }
 0x2bc   :  { %v3157_v11 = vpop.f32.mrb[20].mxu0 }
 0x2bd   :  { %v7117_v5 = vadd.f32 %v3157_v11, %v8539_v33  ;;  %v3159_v49 = vpop.f32.mrb[21].mxu0  ;;  %v7503_v33 = vld [vmem:[%s9393_s5 + $0x18] sm:$0xff]  }
 0x2be   :  { %v3160_v39 = vpop.f32.mrb[22].mxu0  ;;  %7001 = vmatprep.subr.bf16.mxu1 %v7503_v33 }
 0x2bf   :  { %v7118_v20 = vadd.f32 %v3160_v39, %v8547_v36  ;;  %v3162_v45 = vpop.f32.mrb[23].mxu0  ;;  %7002 = vmatpush3.bf16.msra.mxu1 %v7503_v33 }
 0x2c1   :  { %v3572_v0 = vpack.c.bf16 %v7118_v20, %v7117_v5 }
 0x2c3   :  { %6940 = vmatmul.mubr.bf16.gmra.mrb[136].mxu1 %v3572_v0 }
 0x2c4   :  { %v3165_v28 = vpop.f32.mrb[24].mxu0 }
 0x2c5   :  { %v7119_v52 = vadd.f32 %v3165_v28, %v8555_v43  ;;  %v3167_v40 = vpop.f32.mrb[25].mxu0 }
 0x2c6   :  { %v3168_v2 = vpop.f32.mrb[26].mxu0 }
 0x2c7   :  { %v7120_v31 = vadd.f32 %v3168_v2, %v8563_v48  ;;  %v3170_v13 = vpop.f32.mrb[27].mxu0 }
 0x2c9   :  { %v3573_v61 = vpack.c.bf16 %v7120_v31, %v7119_v52 }
 0x2cb   :  { %6943 = vmatprep.mubr.bf16.mxu1 %v3573_v61 }
 0x2cc   :  { %v3173_v16 = vpop.f32.mrb[28].mxu0 }
 0x2cd   :  { %v7121_v36 = vadd.f32 %v3173_v16, %v8571_v54  ;;  %v3175_v58 = vpop.f32.mrb[29].mxu0  ;;  %v7504_v54 = vld [vmem:[%s9393_s5 + $0x20] sm:$0xff]  }
 0x2ce   :  { %v3176_v18 = vpop.f32.mrb[30].mxu0  ;;  %7003 = vmatprep.subr.bf16.mxu1 %v7504_v54 }
 0x2cf   :  { %v7122_v43 = vadd.f32 %v3176_v18, %v8579_v12  ;;  %v3178_v51 = vpop.f32.mrb[31].mxu0  ;;  %7004 = vmatpush3.bf16.msra.mxu1 %v7504_v54 }
 0x2d1   :  { %v3574_v63 = vpack.c.bf16 %v7122_v43, %v7121_v36 }
 0x2d3   :  { %6944 = vmatmul.mubr.bf16.gmra.mrb[140].mxu1 %v3574_v63 }
 0x2d4   :  { %v3181_v48 = vpop.f32.mrb[32].mxu0 }
 0x2d5   :  { %v7123_v44 = vadd.f32 %v3181_v48, %v8581_v6  ;;  %v3183_v46 = vpop.f32.mrb[33].mxu0 }
 0x2d6   :  { %v3184_v35 = vpop.f32.mrb[34].mxu0 }
 0x2d7   :  { %v7124_v8 = vadd.f32 %v3184_v35, %v8589_v14  ;;  %v3186_v11 = vpop.f32.mrb[35].mxu0 }
 0x2d9   :  { %v3575_v5 = vpack.c.bf16 %v7124_v8, %v7123_v44 }
 0x2db   :  { %6947 = vmatprep.mubr.bf16.mxu1 %v3575_v5  ;;  %v7506_v5 = vld [vmem:[%s9393_s5 + $0x30] sm:$0xff]  }
 0x2dc   :  { %v3189_v49 = vpop.f32.mrb[36].mxu0 }
 0x2dd   :  { %v7125_v12 = vadd.f32 %v3189_v49, %v8591_v21  ;;  %v3191_v39 = vpop.f32.mrb[37].mxu0  ;;  %v7505_v21 = vld [vmem:[%s9393_s5 + $0x28] sm:$0xff]  }
 0x2de   :  { %v3192_v20 = vpop.f32.mrb[38].mxu0  ;;  %7005 = vmatprep.subr.bf16.mxu1 %v7505_v21 }
 0x2df   :  { %v7126_v6 = vadd.f32 %v3192_v20, %v8599_v1  ;;  %v3194_v45 = vpop.f32.mrb[39].mxu0  ;;  %7006 = vmatpush3.bf16.msra.mxu1 %v7505_v21 }
 0x2e0   :  { %7007 = vmatprep.subr.bf16.mxu1 %v7506_v5 }
 0x2e1   :  { %v3576_v0 = vpack.c.bf16 %v7126_v6, %v7125_v12 }
 0x2e3   :  { %6948 = vmatmul.mubr.bf16.gmra.mrb[144].mxu1 %v3576_v0 }
 0x2e4   :  { %v3197_v14 = vpop.f32.mrb[40].mxu0  ;;  %7008 = vmatpush3.bf16.msra.mxu1 %v7506_v5 }
 0x2e5   :  { %v7127_v28 = vadd.f32 %v3197_v14, %v8601_v30  ;;  %v3199_v52 = vpop.f32.mrb[41].mxu0 }
 0x2e6   :  { %v3200_v40 = vpop.f32.mrb[42].mxu0 }
 0x2e7   :  { %v7128_v2 = vadd.f32 %v3200_v40, %v8609_v34  ;;  %v3202_v31 = vpop.f32.mrb[43].mxu0 }
 0x2e9   :  { %v3577_v13 = vpack.c.bf16 %v7128_v2, %v7127_v28 }
 0x2eb   :  { %6951 = vmatprep.mubr.bf16.mxu1 %v3577_v13 }
 0x2ec   :  { %v3205_v61 = vpop.f32.mrb[44].mxu0 }
 0x2ed   :  { %v7129_v1 = vadd.f32 %v3205_v61, %v8611_v38  ;;  %v3207_v33 = vpop.f32.mrb[45].mxu0 }
 0x2ee   :  { %v3208_v16 = vpop.f32.mrb[46].mxu0 }
 0x2ef   :  { %v7130_v30 = vadd.f32 %v3208_v16, %v8619_v42  ;;  %v3210_v36 = vpop.f32.mrb[47].mxu0 }
 0x2f1   :  { %v3578_v58 = vpack.c.bf16 %v7130_v30, %v7129_v1 }
 0x2f3   :  { %6952 = vmatmul.mubr.bf16.gmra.mrb[148].mxu1 %v3578_v58 }
 0x2f4   :  { %v3213_v34 = vpop.f32.mrb[48].mxu0 }
 0x2f5   :  { %v7131_v18 = vadd.f32 %v3213_v34, %v8621_v47  ;;  %v3215_v43 = vpop.f32.mrb[49].mxu0 }
 0x2f6   :  { %v3216_v51 = vpop.f32.mrb[50].mxu0 }
 0x2f7   :  { %v7132_v63 = vadd.f32 %v3216_v51, %v8629_v10  ;;  %v3218_v48 = vpop.f32.mrb[51].mxu0 }
 0x2f9   :  { %v3579_v44 = vpack.c.bf16 %v7132_v63, %v7131_v18 }
 0x2fb   :  { %6955 = vmatprep.mubr.bf16.mxu1 %v3579_v44 }
 0x2fc   :  { %v3221_v38 = vpop.f32.mrb[52].mxu0 }
 0x2fd   :  { %v7133_v46 = vadd.f32 %v3221_v38, %v8631_v56  ;;  %v3223_v35 = vpop.f32.mrb[53].mxu0 }
 0x2fe   :  { %v3224_v8 = vpop.f32.mrb[54].mxu0 }
 0x2ff   :  { %v7134_v42 = vadd.f32 %v3224_v8, %v8639_v60  ;;  %v3226_v11 = vpop.f32.mrb[55].mxu0 }
 0x301   :  { %v3580_v47 = vpack.c.bf16 %v7134_v42, %v7133_v46 }
 0x303   :  { %6956 = vmatmul.mubr.bf16.gmra.mrb[152].mxu1 %v3580_v47 }
 0x304   :  { %v3229_v54 = vpop.f32.mrb[56].mxu0 }
 0x305   :  { %v7135_v10 = vadd.f32 %v3229_v54, %v8641_v17  ;;  %v3231_v49 = vpop.f32.mrb[57].mxu0  ;;  %v7507_v17 = vld [vmem:[%s9393_s5 + $0x38] sm:$0xff]  }
 0x306   :  { %v3232_v12 = vpop.f32.mrb[58].mxu0  ;;  %7009 = vmatprep.subr.bf16.mxu1 %v7507_v17 }
 0x307   :  { %v7136_v56 = vadd.f32 %v3232_v12, %v8655_v22  ;;  %v3234_v39 = vpop.f32.mrb[59].mxu0  ;;  %7010 = vmatpush3.bf16.msra.mxu1 %v7507_v17 }
 0x309   :  { %v3581_v20 = vpack.c.bf16 %v7136_v56, %v7135_v10 }
 0x30b   :  { %6959 = vmatprep.mubr.bf16.mxu1 %v3581_v20 }
 0x30c   :  { %v3237_v60 = vpop.f32.mrb[60].mxu0 }
 0x30d   :  { %v7137_v6 = vadd.f32 %v3237_v60, %v8657_v25  ;;  %v3239_v45 = vpop.f32.mrb[61].mxu0 }
 0x30e   :  { %v3240_v0 = vpop.f32.mrb[62].mxu0 }
 0x30f   :  { %v7138_v14 = vadd.f32 %v3240_v0, %v8671_v3  ;;  %v3242_v28 = vpop.f32.mrb[63].mxu0 }
 0x310   :  { %v9414_v28 = vld [vmem:[#allocation3_spill] sm:$0xff] }
 0x311   :  { %v3582_v52 = vpack.c.bf16 %v7138_v14, %v7137_v6 }
 0x313   :  { %6960 = vmatmul.mubr.bf16.gmra.mrb[156].mxu1 %v3582_v52 }
 0x314   :  { %v3245_v40 = vpop.f32.mrb[64].mxu0 }
 0x315   :  { %v7139_v22 = vadd.f32 %v3245_v40, %v8709_v19  ;;  %v3247_v2 = vpop.f32.mrb[65].mxu0 }
 0x316   :  { %v3248_v31 = vpop.f32.mrb[66].mxu0 }
 0x317   :  { %v7140_v25 = vadd.f32 %v3248_v31, %v8717_v29  ;;  %v3250_v13 = vpop.f32.mrb[67].mxu0 }
 0x319   :  { %v3583_v21 = vpack.c.bf16 %v7140_v25, %v7139_v22  ;;  %v9415_v22 = vld [vmem:[#allocation4_spill] sm:$0xff]  ;;  %v9416_v25 = vld [vmem:[#allocation5_spill] sm:$0xff] }
 0x31b   :  { %6963 = vmatprep.mubr.bf16.mxu1 %v3583_v21 }
 0x31c   :  { %v3253_v3 = vpop.f32.mrb[68].mxu0 }
 0x31d   :  { %v7141_v61 = vadd.f32 %v3253_v3, %v8719_v27  ;;  %v3255_v1 = vpop.f32.mrb[69].mxu0 }
 0x31e   :  { %v3256_v33 = vpop.f32.mrb[70].mxu0 }
 0x31f   :  { %v7142_v16 = vadd.f32 %v3256_v33, %v8727_v4  ;;  %v3258_v30 = vpop.f32.mrb[71].mxu0 }
 0x321   :  { %v3584_v36 = vpack.c.bf16 %v7142_v16, %v7141_v61  ;;  %v9417_v61 = vld [vmem:[#allocation6_spill] sm:$0xff]  ;;  %v9418_v16 = vld [vmem:[#allocation7_spill] sm:$0xff] }
 0x323   :  { %6964 = vmatmul.mubr.bf16.gmra.mrb[160].mxu1 %v3584_v36 }
 0x324   :  { %v3261_v58 = vpop.f32.mrb[72].mxu0 }
 0x325   :  { %v7143_v19 = vadd.f32 %v3261_v58, %v8729_v9  ;;  %v3263_v34 = vpop.f32.mrb[73].mxu0 }
 0x326   :  { %v3264_v18 = vpop.f32.mrb[74].mxu0  ;;  %v9419_v34 = vld [vmem:[#allocation8_spill] sm:$0xff] }
 0x327   :  { %v7144_v29 = vadd.f32 %v3264_v18, %v8737_v53  ;;  %v3266_v43 = vpop.f32.mrb[75].mxu0 }
 0x329   :  { %v3585_v51 = vpack.c.bf16 %v7144_v29, %v7143_v19 }
 0x32b   :  { %6967 = vmatprep.mubr.bf16.mxu1 %v3585_v51  ;;  %v9420_v51 = vld [vmem:[#allocation9_spill] sm:$0xff] }
 0x32c   :  { %v3269_v63 = vpop.f32.mrb[76].mxu0 }
 0x32d   :  { %v7145_v27 = vadd.f32 %v3269_v63, %v8739_v59  ;;  %v3271_v48 = vpop.f32.mrb[77].mxu0 }
 0x32e   :  { %v3272_v44 = vpop.f32.mrb[78].mxu0 }
 0x32f   :  { %v7146_v4 = vadd.f32 %v3272_v44, %v8747_v7  ;;  %v3274_v38 = vpop.f32.mrb[79].mxu0 }
 0x331   :  { %v3586_v46 = vpack.c.bf16 %v7146_v4, %v7145_v27  ;;  %v9421_v4 = vld [vmem:[#allocation10_spill] sm:$0xff] }
 0x333   :  { %6968 = vmatmul.mubr.bf16.gmra.mrb[164].mxu1 %v3586_v46 }
 0x334   :  { %v3277_v35 = vpop.f32.mrb[80].mxu0 }
 0x335   :  { %v7147_v9 = vadd.f32 %v3277_v35, %v8749_v24  ;;  %v3279_v8 = vpop.f32.mrb[81].mxu0 }
 0x336   :  { %v3280_v42 = vpop.f32.mrb[82].mxu0 }
 0x337   :  { %v7148_v53 = vadd.f32 %v3280_v42, %v8757_v32  ;;  %v3282_v11 = vpop.f32.mrb[83].mxu0 }
 0x339   :  { %v3587_v5 = vpack.c.bf16 %v7148_v53, %v7147_v9  ;;  %v9422_v9 = vld [vmem:[#allocation11_spill] sm:$0xff] }
 0x33b   :  { %6971 = vmatprep.mubr.bf16.mxu1 %v3587_v5  ;;  %v8952_v5 = vld [vmem:[%s9395_s4] ss:$0 sm:$0xff] }
 0x33c   :  { %v3285_v47 = vpop.f32.mrb[84].mxu0 }
 0x33d   :  { %v7149_v59 = vadd.f32 %v3285_v47, %v8759_v41  ;;  %v3287_v54 = vpop.f32.mrb[85].mxu0  ;;  %v9423_v47 = vld [vmem:[#allocation12_spill] sm:$0xff] }
 0x33e   :  { %v3288_v10 = vpop.f32.mrb[86].mxu0 }
 0x33f   :  { %v7150_v7 = vadd.f32 %v3288_v10, %v8767_v50  ;;  %v3290_v49 = vpop.f32.mrb[87].mxu0 }
 0x341   :  { %v3588_v12 = vpack.c.bf16 %v7150_v7, %v7149_v59 }
 0x343   :  { %6972 = vmatmul.mubr.bf16.gmra.mrb[168].mxu1 %v3588_v12 }
 0x344   :  { %v3293_v56 = vpop.f32.mrb[88].mxu0 }
 0x345   :  { %v7151_v24 = vadd.f32 %v3293_v56, %v8769_v57  ;;  %v3295_v39 = vpop.f32.mrb[89].mxu0 }
 0x346   :  { %v3296_v20 = vpop.f32.mrb[90].mxu0 }
 0x347   :  { %v7152_v32 = vadd.f32 %v3296_v20, %v8777_v15  ;;  %v3298_v60 = vpop.f32.mrb[91].mxu0 }
 0x349   :  { %v3589_v6 = vpack.c.bf16 %v7152_v32, %v7151_v24 }
 0x34b   :  { %6975 = vmatprep.mubr.bf16.mxu1 %v3589_v6 }
 0x34c   :  { %v3301_v45 = vpop.f32.mrb[92].mxu0 }
 0x34d   :  { %v7153_v41 = vadd.f32 %v3301_v45, %v8779_v26  ;;  %v3303_v0 = vpop.f32.mrb[93].mxu0 }
 0x34e   :  { %v3304_v14 = vpop.f32.mrb[94].mxu0 }
 0x34f   :  { %v7154_v50 = vadd.f32 %v3304_v14, %v9414_v28  ;;  %v3306_v52 = vpop.f32.mrb[95].mxu0 }
 0x351   :  { %v3590_v17 = vpack.c.bf16 %v7154_v50, %v7153_v41 }
 0x353   :  { %6976 = vmatmul.mubr.bf16.gmra.mrb[172].mxu1 %v3590_v17 }
 0x354   :  { %v3309_v40 = vpop.f32.mrb[96].mxu0 }
 0x355   :  { %v7155_v57 = vadd.f32 %v3309_v40, %v9415_v22  ;;  %v3311_v2 = vpop.f32.mrb[97].mxu0 }
 0x356   :  { %v3312_v31 = vpop.f32.mrb[98].mxu0 }
 0x357   :  { %v7156_v15 = vadd.f32 %v3312_v31, %v9416_v25  ;;  %v3314_v13 = vpop.f32.mrb[99].mxu0 }
 0x359   :  { %v3591_v21 = vpack.c.bf16 %v7156_v15, %v7155_v57 }
 0x35b   :  { %6979 = vmatprep.mubr.bf16.mxu1 %v3591_v21 }
 0x35c   :  { %v3317_v3 = vpop.f32.mrb[100].mxu0 }
 0x35d   :  { %v7157_v26 = vadd.f32 %v3317_v3, %v9417_v61  ;;  %v3319_v1 = vpop.f32.mrb[101].mxu0 }
 0x35e   :  { %v3320_v33 = vpop.f32.mrb[102].mxu0 }
 0x35f   :  { %v7158_v30 = vadd.f32 %v3320_v33, %v9418_v16  ;;  %v3322_v36 = vpop.f32.mrb[103].mxu0 }
 0x361   :  { %v3592_v58 = vpack.c.bf16 %v7158_v30, %v7157_v26 }
 0x363   :  { %6980 = vmatmul.mubr.bf16.gmra.mrb[176].mxu1 %v3592_v58 }
 0x364   :  { %v3325_v19 = vpop.f32.mrb[104].mxu0 }
 0x365   :  { %v7159_v18 = vadd.f32 %v3325_v19, %v9419_v34  ;;  %v3327_v29 = vpop.f32.mrb[105].mxu0 }
 0x366   :  { %v3328_v43 = vpop.f32.mrb[106].mxu0 }
 0x367   :  { %v7160_v63 = vadd.f32 %v3328_v43, %v9420_v51  ;;  %v3330_v27 = vpop.f32.mrb[107].mxu0 }
 0x369   :  { %v3593_v48 = vpack.c.bf16 %v7160_v63, %v7159_v18 }
 0x36b   :  { %6983 = vmatprep.mubr.bf16.mxu1 %v3593_v48 }
 0x36c   :  { %v3333_v44 = vpop.f32.mrb[108].mxu0 }
 0x36d   :  { %v7161_v38 = vadd.f32 %v3333_v44, %v9421_v4  ;;  %v3335_v46 = vpop.f32.mrb[109].mxu0 }
 0x36e   :  { %v3336_v35 = vpop.f32.mrb[110].mxu0 }
 0x36f   :  { %v7162_v8 = vadd.f32 %v3336_v35, %v9422_v9  ;;  %v3338_v42 = vpop.f32.mrb[111].mxu0 }
 0x370   :  { %v9425_v42 = vld [vmem:[#allocation14_spill] sm:$0xff] }
 0x371   :  { %v3594_v53 = vpack.c.bf16 %v7162_v8, %v7161_v38 }
 0x373   :  { %6984 = vmatmul.mubr.bf16.gmra.mrb[180].mxu1 %v3594_v53 }
 0x374   :  { %v3341_v11 = vpop.f32.mrb[112].mxu0 }
 0x375   :  { %v7163_v59 = vadd.f32 %v3341_v11, %v9423_v47  ;;  %v3343_v54 = vpop.f32.mrb[113].mxu0 }
 0x376   :  { %v3344_v10 = vpop.f32.mrb[114].mxu0  ;;  %v6933_v7 = vpop.f32.mrb[128].mxu1 }
 0x377   :  { %v7164_v49 = vadd.f32 %v3344_v10, %v8837_v23  ;;  %v3713_v12 = vadd.f32 %v6933_v7, %v8952_v5  ;;  %v3346_v56 = vpop.f32.mrb[115].mxu0  ;;  %v3704_v24 = vpop.f32.mrb[129].mxu1 }
 0x378   :  { %v3705_v39 = vadd.f32 %v8952_v5, %v3704_v24  ;;  %v6934_v20 = vpop.f32.mrb[130].mxu1 }
 0x379   :  { %v3595_v32 = vpack.c.bf16 %v7164_v49, %v7163_v59  ;;  %v3716_v60 = vadd.f32 %v6934_v20, %v8952_v5  ;;  %v3707_v6 = vpop.f32.mrb[131].mxu1  ;;  %v5540_v45 = vmul.f32 0.0, %v3713_v12  ;;  %v9426_v49 = vld [vmem:[#allocation15_spill] sm:$0xff] }
 0x37a   :  { %v3708_v41 = vadd.f32 %v8952_v5, %v3707_v6  ;;  %v5671_v0 = vmul.f32 %v3705_v39, %v3705_v39 }
 0x37b   :  { %v6461_v14 = vpack.c.bf16 %v3716_v60, %v3713_v12  ;;  %6987 = vmatprep.mubr.bf16.mxu1 %v3595_v32  ;;  %v5541_v28 = vmul.f32 0.0, %v3716_v60  ;;  %v5673_v57 = vmul.f32 %v5540_v45, %v5540_v45  ;;  %v7508_v32 = vld [vmem:[%s9394_s2] sm:$0xff]  }
 0x37c   :  { %v6456_v50 = vpack.c.bf16 %v3708_v41, %v3705_v39  ;;  %v5602_v23 = vadd.f32 %v3708_v41, %v3705_v39  ;;  %v5672_v52 = vmul.f32 %v3708_v41, %v3708_v41  ;;  %v3349_v17 = vpop.f32.mrb[116].mxu0 }
 0x37d   :  { %6773 = vst [vmem:[%s9396_s7 + $0x8] sm:$0xff] %v6461_v14   ;;  %v7165_v40 = vadd.f32 %v3349_v17, %v8841_v37  ;;  %v3351_v22 = vpop.f32.mrb[117].mxu0  ;;  %v5674_v21 = vmul.f32 %v5541_v28, %v5541_v28  ;;  %v9424_v37 = vld [vmem:[#allocation13_spill] sm:$0xff] }
 0x37e   :  { %6457 = vst [vmem:[%s9396_s7] sm:$0xff] %v6456_v50   ;;  %v5603_v2 = vadd.f32 %v5602_v23, %v5540_v45  ;;  %v5735_v31 = vadd.f32 %v5672_v52, %v5671_v0  ;;  %v3352_v25 = vpop.f32.mrb[118].mxu0  ;;  %v7509_v23 = vld [vmem:[%s9394_s2 + $0x8] sm:$0xff]  }
 0x37f   :  { %v7166_v15 = vadd.f32 %v3352_v25, %v8849_v55  ;;  %v3354_v13 = vpop.f32.mrb[119].mxu0 }
 0x380   :  { %v5736_v3 = vadd.f32 %v5735_v31, %v5673_v57  ;;  %v5604_v61 = vadd.f32 %v5603_v2, %v5541_v28 }
 0x381   :  { %v3596_v26 = vpack.c.bf16 %v7166_v15, %v7165_v40  ;;  %v7510_v40 = vld [vmem:[%s9394_s2 + $0x10] sm:$0xff]  }
 0x382   :  { %v5737_v1 = vadd.f32 %v5736_v3, %v5674_v21 }
 0x383   :  { %6988 = vmatmul.mubr.bf16.gmra.mrb[184].mxu1 %v3596_v26 }
 0x384   :  { %v3357_v33 = vpop.f32.mrb[120].mxu0 }
 0x385   :  { %v7167_v16 = vadd.f32 %v3357_v33, %v9424_v37  ;;  %v3359_v30 = vpop.f32.mrb[121].mxu0 }
 0x386   :  { %v3360_v36 = vpop.f32.mrb[122].mxu0  ;;  %v6937_v58 = vpop.f32.mrb[132].mxu1 }
 0x387   :  { %v7168_v19 = vadd.f32 %v3360_v36, %v8864_v62  ;;  %v3729_v34 = vadd.f32 %v6937_v58, %v8952_v5  ;;  %v3362_v18 = vpop.f32.mrb[123].mxu0  ;;  %v3720_v29 = vpop.f32.mrb[133].mxu1 }
 0x388   :  { %v3721_v55 = vadd.f32 %v8952_v5, %v3720_v29  ;;  %v6938_v43 = vpop.f32.mrb[134].mxu1 }
 0x389   :  { %v3597_v51 = vpack.c.bf16 %v7168_v19, %v7167_v16  ;;  %v3732_v63 = vadd.f32 %v6938_v43, %v8952_v5  ;;  %v3723_v27 = vpop.f32.mrb[135].mxu1  ;;  %v5544_v4 = vmul.f32 0.0, %v3729_v34  ;;  %v7511_v16 = vld [vmem:[%s9394_s2 + $0x18] sm:$0xff]   ;;  %v7512_v19 = vld [vmem:[%s9394_s2 + $0x20] sm:$0xff]  }
 0x38a   :  { %v5542_v48 = vmul.f32 0.0, %v3721_v55  ;;  %v3724_v44 = vadd.f32 %v8952_v5, %v3723_v27  ;;  %v7513_v27 = vld [vmem:[%s9394_s2 + $0x28] sm:$0xff]  }
 0x38b   :  { %v6471_v38 = vpack.c.bf16 %v3732_v63, %v3729_v34  ;;  %6991 = vmatprep.mubr.bf16.mxu1 %v3597_v51  ;;  %v5545_v59 = vmul.f32 0.0, %v3732_v63  ;;  %v5677_v24 = vmul.f32 %v5544_v4, %v5544_v4 }
 0x38c   :  { %v5605_v46 = vadd.f32 %v5604_v61, %v5542_v48  ;;  %v5675_v35 = vmul.f32 %v5542_v48, %v5542_v48  ;;  %v6466_v62 = vpack.c.bf16 %v3724_v44, %v3721_v55  ;;  %v5543_v9 = vmul.f32 0.0, %v3724_v44  ;;  %v3365_v8 = vpop.f32.mrb[124].mxu0 }
 0x38d   :  { %6775 = vst [vmem:[%s9396_s7 + $0x18] sm:$0xff] %v6471_v38   ;;  %v7169_v53 = vadd.f32 %v3365_v8, %v9425_v42  ;;  %v3367_v11 = vpop.f32.mrb[125].mxu0  ;;  %v5678_v6 = vmul.f32 %v5545_v59, %v5545_v59 }
 0x38e   :  { %v5738_v47 = vadd.f32 %v5737_v1, %v5675_v35  ;;  %6774 = vst [vmem:[%s9396_s7 + $0x10] sm:$0xff] %v6466_v62   ;;  %v5606_v54 = vadd.f32 %v5605_v46, %v5543_v9  ;;  %v5676_v10 = vmul.f32 %v5543_v9, %v5543_v9  ;;  %v3368_v7 = vpop.f32.mrb[126].mxu0 }
 0x38f   :  { %v7170_v12 = vadd.f32 %v3368_v7, %v9426_v49  ;;  %v3370_v56 = vpop.f32.mrb[127].mxu0  ;;  %v7515_v49 = vld [vmem:[%s9394_s2 + $0x38] sm:$0xff]  }
 0x390   :  { %v5607_v39 = vadd.f32 %v5606_v54, %v5544_v4  ;;  %v5739_v20 = vadd.f32 %v5738_v47, %v5676_v10  ;;  %v7514_v4 = vld [vmem:[%s9394_s2 + $0x30] sm:$0xff]  }
 0x391   :  { %v3598_v60 = vpack.c.bf16 %v7170_v12, %v7169_v53 }
 0x392   :  { %v5740_v45 = vadd.f32 %v5739_v20, %v5677_v24  ;;  %v5608_v41 = vadd.f32 %v5607_v39, %v5545_v59  ;;  %v7516_v39 = vld [vmem:[%s9394_s2 + $0x40] sm:$0xff]  }
 0x393   :  { %6992 = vmatmul.mubr.bf16.gmra.mrb[188].mxu1 %v3598_v60 }
 0x394   :  { %v5741_v0 = vadd.f32 %v5740_v45, %v5678_v6  ;;  %7011 = vmatprep.mubr.bf16.mxu1 %v7508_v32 }
 0x396   :  { %v6941_v14 = vpop.f32.mrb[136].mxu1 }
 0x397   :  { %v3745_v28 = vadd.f32 %v6941_v14, %v8952_v5  ;;  %v3736_v50 = vpop.f32.mrb[137].mxu1  ;;  %v7517_v14 = vld [vmem:[%s9394_s2 + $0x48] sm:$0xff]  }
 0x398   :  { %v3737_v52 = vadd.f32 %v8952_v5, %v3736_v50  ;;  %v6942_v17 = vpop.f32.mrb[138].mxu1 }
 0x399   :  { %v3748_v22 = vadd.f32 %v6942_v17, %v8952_v5  ;;  %v3739_v57 = vpop.f32.mrb[139].mxu1  ;;  %v5548_v25 = vmul.f32 0.0, %v3745_v28 }
 0x39a   :  { %v5546_v2 = vmul.f32 0.0, %v3737_v52  ;;  %v3740_v31 = vadd.f32 %v8952_v5, %v3739_v57 }
 0x39b   :  { %v6481_v15 = vpack.c.bf16 %v3748_v22, %v3745_v28  ;;  %7012 = vmatmul.mubr.bf16.vlgmr.msra.gmra.mrb[192].mxu1 %v7509_v23  ;;  %v5549_v1 = vmul.f32 0.0, %v3748_v22  ;;  %v5681_v30 = vmul.f32 %v5548_v25, %v5548_v25  ;;  %v7518_v23 = vld [vmem:[%s9394_s2 + $0x50] sm:$0xff]  }
 0x39c   :  { %v5609_v13 = vadd.f32 %v5608_v41, %v5546_v2  ;;  %v5679_v21 = vmul.f32 %v5546_v2, %v5546_v2  ;;  %v6476_v3 = vpack.c.bf16 %v3740_v31, %v3737_v52  ;;  %v5547_v61 = vmul.f32 0.0, %v3740_v31  ;;  %7015 = vmatprep.mubr.bf16.mxu1 %v7510_v40 }
 0x39d   :  { %6777 = vst [vmem:[%s9396_s7 + $0x28] sm:$0xff] %v6481_v15   ;;  %v5682_v34 = vmul.f32 %v5549_v1, %v5549_v1 }
 0x39e   :  { %v5742_v26 = vadd.f32 %v5741_v0, %v5679_v21  ;;  %6776 = vst [vmem:[%s9396_s7 + $0x20] sm:$0xff] %v6476_v3   ;;  %v5610_v33 = vadd.f32 %v5609_v13, %v5547_v61  ;;  %v5680_v37 = vmul.f32 %v5547_v61, %v5547_v61 }
 0x3a0   :  { %v5611_v36 = vadd.f32 %v5610_v33, %v5548_v25  ;;  %v5743_v58 = vadd.f32 %v5742_v26, %v5680_v37 }
 0x3a2   :  { %v5744_v18 = vadd.f32 %v5743_v58, %v5681_v30  ;;  %v5612_v29 = vadd.f32 %v5611_v36, %v5549_v1  ;;  %v7519_v1 = vld [vmem:[%s9394_s2 + $0x58] sm:$0xff]   ;;  %v7520_v30 = vld [vmem:[%s9394_s2 + $0x60] sm:$0xff]  }
 0x3a3   :  { %7016 = vmatmul.mubr.bf16.gmra.mrb[196].mxu1 %v7511_v16 }
 0x3a4   :  { %v5745_v55 = vadd.f32 %v5744_v18, %v5682_v34  ;;  %7019 = vmatprep.mubr.bf16.mxu1 %v7512_v19 }
 0x3a6   :  { %v6945_v43 = vpop.f32.mrb[140].mxu1 }
 0x3a7   :  { %v3761_v51 = vadd.f32 %v6945_v43, %v8952_v5  ;;  %v3752_v63 = vpop.f32.mrb[141].mxu1  ;;  %v7521_v43 = vld [vmem:[%s9394_s2 + $0x68] sm:$0xff]  }
 0x3a8   :  { %v3753_v48 = vadd.f32 %v8952_v5, %v3752_v63  ;;  %v6946_v44 = vpop.f32.mrb[142].mxu1 }
 0x3a9   :  { %v3764_v38 = vadd.f32 %v6946_v44, %v8952_v5  ;;  %v3755_v46 = vpop.f32.mrb[143].mxu1  ;;  %v5552_v9 = vmul.f32 0.0, %v3761_v51 }
 0x3aa   :  { %v5550_v35 = vmul.f32 0.0, %v3753_v48  ;;  %v3756_v62 = vadd.f32 %v8952_v5, %v3755_v46 }
 0x3ab   :  { %v6491_v8 = vpack.c.bf16 %v3764_v38, %v3761_v51  ;;  %7020 = vmatmul.mubr.bf16.gmra.mrb[200].mxu1 %v7513_v27  ;;  %v5553_v54 = vmul.f32 0.0, %v3764_v38  ;;  %v5685_v12 = vmul.f32 %v5552_v9, %v5552_v9  ;;  %v7522_v27 = vld [vmem:[%s9394_s2 + $0x70] sm:$0xff]  }
 0x3ac   :  { %v5613_v42 = vadd.f32 %v5612_v29, %v5550_v35  ;;  %v5683_v53 = vmul.f32 %v5550_v35, %v5550_v35  ;;  %v6486_v11 = vpack.c.bf16 %v3756_v62, %v3753_v48  ;;  %v5551_v47 = vmul.f32 0.0, %v3756_v62  ;;  %7023 = vmatprep.mubr.bf16.mxu1 %v7514_v4 }
 0x3ad   :  { %6779 = vst [vmem:[%s9396_s7 + $0x38] sm:$0xff] %v6491_v8   ;;  %v5686_v20 = vmul.f32 %v5553_v54, %v5553_v54 }
 0x3ae   :  { %v5746_v59 = vadd.f32 %v5745_v55, %v5683_v53  ;;  %6778 = vst [vmem:[%s9396_s7 + $0x30] sm:$0xff] %v6486_v11   ;;  %v5614_v10 = vadd.f32 %v5613_v42, %v5551_v47  ;;  %v5684_v7 = vmul.f32 %v5551_v47, %v5551_v47 }
 0x3b0   :  { %v5615_v56 = vadd.f32 %v5614_v10, %v5552_v9  ;;  %v5747_v24 = vadd.f32 %v5746_v59, %v5684_v7 }
 0x3b2   :  { %v5748_v32 = vadd.f32 %v5747_v24, %v5685_v12  ;;  %v5616_v60 = vadd.f32 %v5615_v56, %v5553_v54  ;;  %v7523_v54 = vld [vmem:[%s9394_s2 + $0x78] sm:$0xff]   ;;  %v7524_v12 = vld [vmem:[%s9394_s2 + $0x80] sm:$0xff]  }
 0x3b3   :  { %7024 = vmatmul.mubr.bf16.gmra.mrb[204].mxu1 %v7515_v49 }
 0x3b4   :  { %v5749_v6 = vadd.f32 %v5748_v32, %v5686_v20  ;;  %7027 = vmatprep.mubr.bf16.mxu1 %v7516_v39 }
 0x3b6   :  { %v6949_v45 = vpop.f32.mrb[144].mxu1 }
 0x3b7   :  { %v3777_v41 = vadd.f32 %v6949_v45, %v8952_v5  ;;  %v3768_v0 = vpop.f32.mrb[145].mxu1  ;;  %v7525_v45 = vld [vmem:[%s9394_s2 + $0x88] sm:$0xff]  }
 0x3b8   :  { %v3769_v28 = vadd.f32 %v8952_v5, %v3768_v0  ;;  %v6950_v50 = vpop.f32.mrb[146].mxu1 }
 0x3b9   :  { %v3780_v52 = vadd.f32 %v6950_v50, %v8952_v5  ;;  %v3771_v17 = vpop.f32.mrb[147].mxu1  ;;  %v5556_v57 = vmul.f32 0.0, %v3777_v41 }
 0x3ba   :  { %v5554_v40 = vmul.f32 0.0, %v3769_v28  ;;  %v3772_v22 = vadd.f32 %v8952_v5, %v3771_v17 }
 0x3bb   :  { %v6501_v2 = vpack.c.bf16 %v3780_v52, %v3777_v41  ;;  %7028 = vmatmul.mubr.bf16.gmra.mrb[208].mxu1 %v7517_v14  ;;  %v5557_v3 = vmul.f32 0.0, %v3780_v52  ;;  %v5689_v33 = vmul.f32 %v5556_v57, %v5556_v57  ;;  %v7526_v14 = vld [vmem:[%s9394_s2 + $0x90] sm:$0xff]  }
 0x3bc   :  { %v5617_v31 = vadd.f32 %v5616_v60, %v5554_v40  ;;  %v5687_v25 = vmul.f32 %v5554_v40, %v5554_v40  ;;  %v6496_v15 = vpack.c.bf16 %v3772_v22, %v3769_v28  ;;  %v5555_v13 = vmul.f32 0.0, %v3772_v22  ;;  %7031 = vmatprep.mubr.bf16.mxu1 %v7518_v23 }
 0x3bd   :  { %6781 = vst [vmem:[%s9396_s7 + $0x48] sm:$0xff] %v6501_v2   ;;  %v5690_v36 = vmul.f32 %v5557_v3, %v5557_v3 }
 0x3be   :  { %v5750_v21 = vadd.f32 %v5749_v6, %v5687_v25  ;;  %6780 = vst [vmem:[%s9396_s7 + $0x40] sm:$0xff] %v6496_v15   ;;  %v5618_v61 = vadd.f32 %v5617_v31, %v5555_v13  ;;  %v5688_v26 = vmul.f32 %v5555_v13, %v5555_v13 }
 0x3c0   :  { %v5619_v37 = vadd.f32 %v5618_v61, %v5556_v57  ;;  %v5751_v16 = vadd.f32 %v5750_v21, %v5688_v26 }
 0x3c2   :  { %v5752_v58 = vadd.f32 %v5751_v16, %v5689_v33  ;;  %v5620_v19 = vadd.f32 %v5619_v37, %v5557_v3  ;;  %v7527_v3 = vld [vmem:[%s9394_s2 + $0x98] sm:$0xff]   ;;  %v7528_v33 = vld [vmem:[%s9394_s2 + $0xa0] sm:$0xff]  }
 0x3c3   :  { %7032 = vmatmul.mubr.bf16.gmra.mrb[212].mxu1 %v7519_v1 }
 0x3c4   :  { %v5753_v34 = vadd.f32 %v5752_v58, %v5690_v36  ;;  %7035 = vmatprep.mubr.bf16.mxu1 %v7520_v30 }
 0x3c6   :  { %v6953_v18 = vpop.f32.mrb[148].mxu1 }
 0x3c7   :  { %v3793_v29 = vadd.f32 %v6953_v18, %v8952_v5  ;;  %v3784_v55 = vpop.f32.mrb[149].mxu1  ;;  %v7529_v18 = vld [vmem:[%s9394_s2 + $0xa8] sm:$0xff]  }
 0x3c8   :  { %v3785_v51 = vadd.f32 %v8952_v5, %v3784_v55  ;;  %v6954_v63 = vpop.f32.mrb[150].mxu1 }
 0x3c9   :  { %v3796_v48 = vadd.f32 %v6954_v63, %v8952_v5  ;;  %v3787_v44 = vpop.f32.mrb[151].mxu1  ;;  %v5560_v46 = vmul.f32 0.0, %v3793_v29 }
 0x3ca   :  { %v5558_v4 = vmul.f32 0.0, %v3785_v51  ;;  %v3788_v38 = vadd.f32 %v8952_v5, %v3787_v44 }
 0x3cb   :  { %v6511_v35 = vpack.c.bf16 %v3796_v48, %v3793_v29  ;;  %7036 = vmatmul.mubr.bf16.gmra.mrb[216].mxu1 %v7521_v43  ;;  %v5561_v11 = vmul.f32 0.0, %v3796_v48  ;;  %v5693_v10 = vmul.f32 %v5560_v46, %v5560_v46  ;;  %v7530_v43 = vld [vmem:[%s9394_s2 + $0xb0] sm:$0xff]  }
 0x3cc   :  { %v5621_v62 = vadd.f32 %v5620_v19, %v5558_v4  ;;  %v5691_v9 = vmul.f32 %v5558_v4, %v5558_v4  ;;  %v6506_v8 = vpack.c.bf16 %v3788_v38, %v3785_v51  ;;  %v5559_v42 = vmul.f32 0.0, %v3788_v38  ;;  %7039 = vmatprep.mubr.bf16.mxu1 %v7522_v27 }
 0x3cd   :  { %6783 = vst [vmem:[%s9396_s7 + $0x58] sm:$0xff] %v6511_v35   ;;  %v5694_v56 = vmul.f32 %v5561_v11, %v5561_v11 }
 0x3ce   :  { %v5754_v53 = vadd.f32 %v5753_v34, %v5691_v9  ;;  %6782 = vst [vmem:[%s9396_s7 + $0x50] sm:$0xff] %v6506_v8   ;;  %v5622_v47 = vadd.f32 %v5621_v62, %v5559_v42  ;;  %v5692_v59 = vmul.f32 %v5559_v42, %v5559_v42 }
 0x3d0   :  { %v5623_v7 = vadd.f32 %v5622_v47, %v5560_v46  ;;  %v5755_v49 = vadd.f32 %v5754_v53, %v5692_v59 }
 0x3d2   :  { %v5756_v24 = vadd.f32 %v5755_v49, %v5693_v10  ;;  %v5624_v39 = vadd.f32 %v5623_v7, %v5561_v11  ;;  %v7531_v11 = vld [vmem:[%s9394_s2 + $0xb8] sm:$0xff]   ;;  %v7532_v10 = vld [vmem:[%s9394_s2 + $0xc0] sm:$0xff]  }
 0x3d3   :  { %7040 = vmatmul.mubr.bf16.gmra.mrb[220].mxu1 %v7523_v54 }
 0x3d4   :  { %v5757_v20 = vadd.f32 %v5756_v24, %v5694_v56  ;;  %7043 = vmatprep.mubr.bf16.mxu1 %v7524_v12 }
 0x3d6   :  { %v6957_v32 = vpop.f32.mrb[152].mxu1 }
 0x3d7   :  { %v3809_v60 = vadd.f32 %v6957_v32, %v8952_v5  ;;  %v3800_v6 = vpop.f32.mrb[153].mxu1  ;;  %v7533_v32 = vld [vmem:[%s9394_s2 + $0xc8] sm:$0xff]  }
 0x3d8   :  { %v3801_v41 = vadd.f32 %v8952_v5, %v3800_v6  ;;  %v6958_v0 = vpop.f32.mrb[154].mxu1 }
 0x3d9   :  { %v3812_v28 = vadd.f32 %v6958_v0, %v8952_v5  ;;  %v3803_v50 = vpop.f32.mrb[155].mxu1  ;;  %v5564_v17 = vmul.f32 0.0, %v3809_v60 }
 0x3da   :  { %v5562_v23 = vmul.f32 0.0, %v3801_v41  ;;  %v3804_v52 = vadd.f32 %v8952_v5, %v3803_v50 }
 0x3db   :  { %v6521_v40 = vpack.c.bf16 %v3812_v28, %v3809_v60  ;;  %7044 = vmatmul.mubr.bf16.gmra.mrb[224].mxu1 %v7525_v45  ;;  %v5565_v15 = vmul.f32 0.0, %v3812_v28  ;;  %v5697_v61 = vmul.f32 %v5564_v17, %v5564_v17  ;;  %v7534_v45 = vld [vmem:[%s9394_s2 + $0xd0] sm:$0xff]  }
 0x3dc   :  { %v5625_v22 = vadd.f32 %v5624_v39, %v5562_v23  ;;  %v5695_v57 = vmul.f32 %v5562_v23, %v5562_v23  ;;  %v6516_v2 = vpack.c.bf16 %v3804_v52, %v3801_v41  ;;  %v5563_v31 = vmul.f32 0.0, %v3804_v52  ;;  %7047 = vmatprep.mubr.bf16.mxu1 %v7526_v14 }
 0x3dd   :  { %6785 = vst [vmem:[%s9396_s7 + $0x68] sm:$0xff] %v6521_v40   ;;  %v5698_v37 = vmul.f32 %v5565_v15, %v5565_v15 }
 0x3de   :  { %v5758_v25 = vadd.f32 %v5757_v20, %v5695_v57  ;;  %6784 = vst [vmem:[%s9396_s7 + $0x60] sm:$0xff] %v6516_v2   ;;  %v5626_v13 = vadd.f32 %v5625_v22, %v5563_v31  ;;  %v5696_v21 = vmul.f32 %v5563_v31, %v5563_v31 }
 0x3e0   :  { %v5627_v26 = vadd.f32 %v5626_v13, %v5564_v17  ;;  %v5759_v1 = vadd.f32 %v5758_v25, %v5696_v21 }
 0x3e2   :  { %v5760_v16 = vadd.f32 %v5759_v1, %v5697_v61  ;;  %v5628_v30 = vadd.f32 %v5627_v26, %v5565_v15  ;;  %v7535_v15 = vld [vmem:[%s9394_s2 + $0xd8] sm:$0xff]   ;;  %v7536_v61 = vld [vmem:[%s9394_s2 + $0xe0] sm:$0xff]  }
 0x3e3   :  { %7048 = vmatmul.mubr.bf16.gmra.mrb[228].mxu1 %v7527_v3 }
 0x3e4   :  { %v5761_v36 = vadd.f32 %v5760_v16, %v5698_v37  ;;  %7051 = vmatprep.mubr.bf16.mxu1 %v7528_v33 }
 0x3e6   :  { %v6961_v58 = vpop.f32.mrb[156].mxu1 }
 0x3e7   :  { %v3825_v19 = vadd.f32 %v6961_v58, %v8952_v5  ;;  %v3816_v34 = vpop.f32.mrb[157].mxu1  ;;  %v7537_v58 = vld [vmem:[%s9394_s2 + $0xe8] sm:$0xff]  }
 0x3e8   :  { %v3817_v29 = vadd.f32 %v8952_v5, %v3816_v34  ;;  %v6962_v55 = vpop.f32.mrb[158].mxu1 }
 0x3e9   :  { %v3828_v51 = vadd.f32 %v6962_v55, %v8952_v5  ;;  %v3819_v63 = vpop.f32.mrb[159].mxu1  ;;  %v5568_v44 = vmul.f32 0.0, %v3825_v19 }
 0x3ea   :  { %v5566_v27 = vmul.f32 0.0, %v3817_v29  ;;  %v3820_v48 = vadd.f32 %v8952_v5, %v3819_v63 }
 0x3eb   :  { %v6531_v4 = vpack.c.bf16 %v3828_v51, %v3825_v19  ;;  %7052 = vmatmul.mubr.bf16.gmra.mrb[232].mxu1 %v7529_v18  ;;  %v5569_v8 = vmul.f32 0.0, %v3828_v51  ;;  %v5701_v47 = vmul.f32 %v5568_v44, %v5568_v44  ;;  %v7538_v18 = vld [vmem:[%s9394_s2 + $0xf0] sm:$0xff]  }
 0x3ec   :  { %v5629_v38 = vadd.f32 %v5628_v30, %v5566_v27  ;;  %v5699_v46 = vmul.f32 %v5566_v27, %v5566_v27  ;;  %v6526_v35 = vpack.c.bf16 %v3820_v48, %v3817_v29  ;;  %v5567_v62 = vmul.f32 0.0, %v3820_v48  ;;  %7055 = vmatprep.mubr.bf16.mxu1 %v7530_v43 }
 0x3ed   :  { %6787 = vst [vmem:[%s9396_s7 + $0x78] sm:$0xff] %v6531_v4   ;;  %v5702_v7 = vmul.f32 %v5569_v8, %v5569_v8 }
 0x3ee   :  { %v5762_v9 = vadd.f32 %v5761_v36, %v5699_v46  ;;  %6786 = vst [vmem:[%s9396_s7 + $0x70] sm:$0xff] %v6526_v35   ;;  %v5630_v42 = vadd.f32 %v5629_v38, %v5567_v62  ;;  %v5700_v53 = vmul.f32 %v5567_v62, %v5567_v62 }
 0x3f0   :  { %v5631_v59 = vadd.f32 %v5630_v42, %v5568_v44  ;;  %v5763_v54 = vadd.f32 %v5762_v9, %v5700_v53 }
 0x3f2   :  { %v5764_v49 = vadd.f32 %v5763_v54, %v5701_v47  ;;  %v5632_v12 = vadd.f32 %v5631_v59, %v5569_v8  ;;  %v7539_v8 = vld [vmem:[%s9394_s2 + $0xf8] sm:$0xff]  }
 0x3f3   :  { %7056 = vmatmul.mubr.bf16.gmra.mrb[236].mxu1 %v7531_v11 }
 0x3f4   :  { %v5765_v56 = vadd.f32 %v5764_v49, %v5702_v7  ;;  %7059 = vmatprep.mubr.bf16.mxu1 %v7532_v10 }
 0x3f6   :  { %v6965_v24 = vpop.f32.mrb[160].mxu1 }
 0x3f7   :  { %v3841_v39 = vadd.f32 %v6965_v24, %v8952_v5  ;;  %v3832_v20 = vpop.f32.mrb[161].mxu1 }
 0x3f8   :  { %v3833_v60 = vadd.f32 %v8952_v5, %v3832_v20  ;;  %v6966_v6 = vpop.f32.mrb[162].mxu1 }
 0x3f9   :  { %v3844_v41 = vadd.f32 %v6966_v6, %v8952_v5  ;;  %v3835_v0 = vpop.f32.mrb[163].mxu1  ;;  %v5572_v50 = vmul.f32 0.0, %v3841_v39 }
 0x3fa   :  { %v5570_v14 = vmul.f32 0.0, %v3833_v60  ;;  %v3836_v28 = vadd.f32 %v8952_v5, %v3835_v0 }
 0x3fb   :  { %v6541_v23 = vpack.c.bf16 %v3844_v41, %v3841_v39  ;;  %7060 = vmatmul.mubr.bf16.gmra.mrb[240].mxu1 %v7533_v32  ;;  %v5573_v2 = vmul.f32 0.0, %v3844_v41  ;;  %v5705_v13 = vmul.f32 %v5572_v50, %v5572_v50 }
 0x3fc   :  { %v5633_v52 = vadd.f32 %v5632_v12, %v5570_v14  ;;  %v5703_v17 = vmul.f32 %v5570_v14, %v5570_v14  ;;  %v6536_v40 = vpack.c.bf16 %v3836_v28, %v3833_v60  ;;  %v5571_v22 = vmul.f32 0.0, %v3836_v28  ;;  %7063 = vmatprep.mubr.bf16.mxu1 %v7534_v45 }
 0x3fd   :  { %6789 = vst [vmem:[%s9396_s7 + $0x88] sm:$0xff] %v6541_v23   ;;  %v5706_v26 = vmul.f32 %v5573_v2, %v5573_v2 }
 0x3fe   :  { %v5766_v57 = vadd.f32 %v5765_v56, %v5703_v17  ;;  %6788 = vst [vmem:[%s9396_s7 + $0x80] sm:$0xff] %v6536_v40   ;;  %v5634_v31 = vadd.f32 %v5633_v52, %v5571_v22  ;;  %v5704_v25 = vmul.f32 %v5571_v22, %v5571_v22 }
 0x400   :  { %v5635_v21 = vadd.f32 %v5634_v31, %v5572_v50  ;;  %v5767_v3 = vadd.f32 %v5766_v57, %v5704_v25 }
 0x402   :  { %v5768_v1 = vadd.f32 %v5767_v3, %v5705_v13  ;;  %v5636_v33 = vadd.f32 %v5635_v21, %v5573_v2 }
 0x403   :  { %7064 = vmatmul.mubr.bf16.gmra.mrb[244].mxu1 %v7535_v15 }
 0x404   :  { %v5769_v37 = vadd.f32 %v5768_v1, %v5706_v26  ;;  %7067 = vmatprep.mubr.bf16.mxu1 %v7536_v61 }
 0x406   :  { %v6969_v16 = vpop.f32.mrb[164].mxu1 }
 0x407   :  { %v3857_v30 = vadd.f32 %v6969_v16, %v8952_v5  ;;  %v3848_v36 = vpop.f32.mrb[165].mxu1 }
 0x408   :  { %v3849_v19 = vadd.f32 %v8952_v5, %v3848_v36  ;;  %v6970_v34 = vpop.f32.mrb[166].mxu1 }
 0x409   :  { %v3860_v29 = vadd.f32 %v6970_v34, %v8952_v5  ;;  %v3851_v55 = vpop.f32.mrb[167].mxu1  ;;  %v5576_v63 = vmul.f32 0.0, %v3857_v30 }
 0x40a   :  { %v5574_v43 = vmul.f32 0.0, %v3849_v19  ;;  %v3852_v51 = vadd.f32 %v8952_v5, %v3851_v55 }
 0x40b   :  { %v6551_v27 = vpack.c.bf16 %v3860_v29, %v3857_v30  ;;  %7068 = vmatmul.mubr.bf16.gmra.mrb[248].mxu1 %v7537_v58  ;;  %v5577_v35 = vmul.f32 0.0, %v3860_v29  ;;  %v5709_v42 = vmul.f32 %v5576_v63, %v5576_v63 }
 0x40c   :  { %v5637_v48 = vadd.f32 %v5636_v33, %v5574_v43  ;;  %v5707_v44 = vmul.f32 %v5574_v43, %v5574_v43  ;;  %v6546_v4 = vpack.c.bf16 %v3852_v51, %v3849_v19  ;;  %v5575_v38 = vmul.f32 0.0, %v3852_v51  ;;  %7071 = vmatprep.mubr.bf16.mxu1 %v7538_v18 }
 0x40d   :  { %6791 = vst [vmem:[%s9396_s7 + $0x98] sm:$0xff] %v6551_v27   ;;  %v5710_v47 = vmul.f32 %v5577_v35, %v5577_v35 }
 0x40e   :  { %v5770_v46 = vadd.f32 %v5769_v37, %v5707_v44  ;;  %6790 = vst [vmem:[%s9396_s7 + $0x90] sm:$0xff] %v6546_v4   ;;  %v5638_v62 = vadd.f32 %v5637_v48, %v5575_v38  ;;  %v5708_v9 = vmul.f32 %v5575_v38, %v5575_v38 }
 0x410   :  { %v5639_v53 = vadd.f32 %v5638_v62, %v5576_v63  ;;  %v5771_v11 = vadd.f32 %v5770_v46, %v5708_v9 }
 0x412   :  { %v5772_v59 = vadd.f32 %v5771_v11, %v5709_v42  ;;  %v5640_v54 = vadd.f32 %v5639_v53, %v5577_v35 }
 0x413   :  { %7072 = vmatmul.mubr.bf16.gmra.mrb[252].mxu1 %v7539_v8 }
 0x414   :  { %v5773_v10 = vadd.f32 %v5772_v59, %v5710_v47 }
 0x416   :  { %v6973_v7 = vpop.f32.mrb[168].mxu1 }
 0x417   :  { %v3873_v49 = vadd.f32 %v6973_v7, %v8952_v5  ;;  %v3864_v12 = vpop.f32.mrb[169].mxu1 }
 0x418   :  { %v3865_v56 = vadd.f32 %v8952_v5, %v3864_v12  ;;  %v6974_v24 = vpop.f32.mrb[170].mxu1 }
 0x419   :  { %v3876_v39 = vadd.f32 %v6974_v24, %v8952_v5  ;;  %v3867_v20 = vpop.f32.mrb[171].mxu1  ;;  %v5580_v6 = vmul.f32 0.0, %v3873_v49 }
 0x41a   :  { %v5578_v32 = vmul.f32 0.0, %v3865_v56  ;;  %v3868_v60 = vadd.f32 %v8952_v5, %v3867_v20 }
 0x41b   :  { %v6561_v45 = vpack.c.bf16 %v3876_v39, %v3873_v49  ;;  %v5581_v23 = vmul.f32 0.0, %v3876_v39  ;;  %v5713_v40 = vmul.f32 %v5580_v6, %v5580_v6 }
 0x41c   :  { %v5641_v41 = vadd.f32 %v5640_v54, %v5578_v32  ;;  %v5711_v0 = vmul.f32 %v5578_v32, %v5578_v32  ;;  %v6556_v14 = vpack.c.bf16 %v3868_v60, %v3865_v56  ;;  %v5579_v28 = vmul.f32 0.0, %v3868_v60 }
 0x41d   :  { %6793 = vst [vmem:[%s9396_s7 + $0xa8] sm:$0xff] %v6561_v45   ;;  %v5714_v2 = vmul.f32 %v5581_v23, %v5581_v23 }
 0x41e   :  { %v5774_v50 = vadd.f32 %v5773_v10, %v5711_v0  ;;  %6792 = vst [vmem:[%s9396_s7 + $0xa0] sm:$0xff] %v6556_v14   ;;  %v5642_v52 = vadd.f32 %v5641_v41, %v5579_v28  ;;  %v5712_v17 = vmul.f32 %v5579_v28, %v5579_v28 }
 0x420   :  { %v5643_v22 = vadd.f32 %v5642_v52, %v5580_v6  ;;  %v5775_v57 = vadd.f32 %v5774_v50, %v5712_v17 }
 0x422   :  { %v5776_v31 = vadd.f32 %v5775_v57, %v5713_v40  ;;  %v5644_v25 = vadd.f32 %v5643_v22, %v5581_v23 }
 0x424   :  { %v5777_v15 = vadd.f32 %v5776_v31, %v5714_v2 }
 0x426   :  { %v6977_v13 = vpop.f32.mrb[172].mxu1 }
 0x427   :  { %v3889_v21 = vadd.f32 %v6977_v13, %v8952_v5  ;;  %v3880_v3 = vpop.f32.mrb[173].mxu1 }
 0x428   :  { %v3881_v61 = vadd.f32 %v8952_v5, %v3880_v3  ;;  %v6978_v26 = vpop.f32.mrb[174].mxu1 }
 0x429   :  { %v3892_v1 = vadd.f32 %v6978_v26, %v8952_v5  ;;  %v3883_v33 = vpop.f32.mrb[175].mxu1  ;;  %v5584_v30 = vmul.f32 0.0, %v3889_v21 }
 0x42a   :  { %v5582_v37 = vmul.f32 0.0, %v3881_v61  ;;  %v3884_v16 = vadd.f32 %v8952_v5, %v3883_v33 }
 0x42b   :  { %v6571_v36 = vpack.c.bf16 %v3892_v1, %v3889_v21  ;;  %v5585_v55 = vmul.f32 0.0, %v3892_v1  ;;  %v5717_v63 = vmul.f32 %v5584_v30, %v5584_v30 }
 0x42c   :  { %v5645_v58 = vadd.f32 %v5644_v25, %v5582_v37  ;;  %v5715_v19 = vmul.f32 %v5582_v37, %v5582_v37  ;;  %v6566_v34 = vpack.c.bf16 %v3884_v16, %v3881_v61  ;;  %v5583_v18 = vmul.f32 0.0, %v3884_v16 }
 0x42d   :  { %6795 = vst [vmem:[%s9396_s7 + $0xb8] sm:$0xff] %v6571_v36   ;;  %v5718_v44 = vmul.f32 %v5585_v55, %v5585_v55 }
 0x42e   :  { %v5778_v29 = vadd.f32 %v5777_v15, %v5715_v19  ;;  %6794 = vst [vmem:[%s9396_s7 + $0xb0] sm:$0xff] %v6566_v34   ;;  %v5646_v43 = vadd.f32 %v5645_v58, %v5583_v18  ;;  %v5716_v51 = vmul.f32 %v5583_v18, %v5583_v18 }
 0x430   :  { %v5647_v27 = vadd.f32 %v5646_v43, %v5584_v30  ;;  %v5779_v48 = vadd.f32 %v5778_v29, %v5716_v51 }
 0x432   :  { %v5780_v4 = vadd.f32 %v5779_v48, %v5717_v63  ;;  %v5648_v38 = vadd.f32 %v5647_v27, %v5585_v55 }
 0x434   :  { %v5781_v46 = vadd.f32 %v5780_v4, %v5718_v44 }
 0x436   :  { %v6981_v35 = vpop.f32.mrb[176].mxu1 }
 0x437   :  { %v3905_v62 = vadd.f32 %v6981_v35, %v8952_v5  ;;  %v3896_v9 = vpop.f32.mrb[177].mxu1 }
 0x438   :  { %v3897_v8 = vadd.f32 %v8952_v5, %v3896_v9  ;;  %v6982_v42 = vpop.f32.mrb[178].mxu1 }
 0x439   :  { %v3908_v53 = vadd.f32 %v6982_v42, %v8952_v5  ;;  %v3899_v11 = vpop.f32.mrb[179].mxu1  ;;  %v5588_v54 = vmul.f32 0.0, %v3905_v62 }
 0x43a   :  { %v5586_v47 = vmul.f32 0.0, %v3897_v8  ;;  %v3900_v59 = vadd.f32 %v8952_v5, %v3899_v11 }
 0x43b   :  { %v6581_v10 = vpack.c.bf16 %v3908_v53, %v3905_v62  ;;  %v5589_v39 = vmul.f32 0.0, %v3908_v53  ;;  %v5721_v60 = vmul.f32 %v5588_v54, %v5588_v54 }
 0x43c   :  { %v5649_v7 = vadd.f32 %v5648_v38, %v5586_v47  ;;  %v5719_v49 = vmul.f32 %v5586_v47, %v5586_v47  ;;  %v6576_v12 = vpack.c.bf16 %v3900_v59, %v3897_v8  ;;  %v5587_v56 = vmul.f32 0.0, %v3900_v59 }
 0x43d   :  { %6797 = vst [vmem:[%s9396_s7 + $0xc8] sm:$0xff] %v6581_v10   ;;  %v5722_v41 = vmul.f32 %v5589_v39, %v5589_v39 }
 0x43e   :  { %v5782_v24 = vadd.f32 %v5781_v46, %v5719_v49  ;;  %6796 = vst [vmem:[%s9396_s7 + $0xc0] sm:$0xff] %v6576_v12   ;;  %v5650_v20 = vadd.f32 %v5649_v7, %v5587_v56  ;;  %v5720_v32 = vmul.f32 %v5587_v56, %v5587_v56 }
 0x440   :  { %v5651_v6 = vadd.f32 %v5650_v20, %v5588_v54  ;;  %v5783_v45 = vadd.f32 %v5782_v24, %v5720_v32  ;;  %v7540_v24 = vld [vmem:[%s9395_s4] ss:$0 sm:$0xff] }
 0x442   :  { %v5784_v0 = vadd.f32 %v5783_v45, %v5721_v60  ;;  %v5652_v14 = vadd.f32 %v5651_v6, %v5589_v39 }
 0x444   :  { %v5785_v28 = vadd.f32 %v5784_v0, %v5722_v41 }
 0x446   :  { %v6985_v50 = vpop.f32.mrb[180].mxu1 }
 0x447   :  { %v3921_v23 = vadd.f32 %v6985_v50, %v8952_v5  ;;  %v3912_v52 = vpop.f32.mrb[181].mxu1 }
 0x448   :  { %v3913_v17 = vadd.f32 %v8952_v5, %v3912_v52  ;;  %v6986_v40 = vpop.f32.mrb[182].mxu1 }
 0x449   :  { %v3924_v22 = vadd.f32 %v6986_v40, %v8952_v5  ;;  %v3915_v57 = vpop.f32.mrb[183].mxu1  ;;  %v5592_v25 = vmul.f32 0.0, %v3921_v23 }
 0x44a   :  { %v5590_v2 = vmul.f32 0.0, %v3913_v17  ;;  %v3916_v31 = vadd.f32 %v8952_v5, %v3915_v57 }
 0x44b   :  { %v6591_v15 = vpack.c.bf16 %v3924_v22, %v3921_v23  ;;  %v5593_v1 = vmul.f32 0.0, %v3924_v22  ;;  %v5725_v16 = vmul.f32 %v5592_v25, %v5592_v25 }
 0x44c   :  { %v5653_v13 = vadd.f32 %v5652_v14, %v5590_v2  ;;  %v5723_v21 = vmul.f32 %v5590_v2, %v5590_v2  ;;  %v6586_v3 = vpack.c.bf16 %v3916_v31, %v3913_v17  ;;  %v5591_v61 = vmul.f32 0.0, %v3916_v31 }
 0x44d   :  { %6799 = vst [vmem:[%s9396_s7 + $0xd8] sm:$0xff] %v6591_v15   ;;  %v5726_v58 = vmul.f32 %v5593_v1, %v5593_v1 }
 0x44e   :  { %v5786_v26 = vadd.f32 %v5785_v28, %v5723_v21  ;;  %6798 = vst [vmem:[%s9396_s7 + $0xd0] sm:$0xff] %v6586_v3   ;;  %v5654_v33 = vadd.f32 %v5653_v13, %v5591_v61  ;;  %v5724_v37 = vmul.f32 %v5591_v61, %v5591_v61 }
 0x450   :  { %v5655_v30 = vadd.f32 %v5654_v33, %v5592_v25  ;;  %v5787_v36 = vadd.f32 %v5786_v26, %v5724_v37  ;;  %v9220_v25 = vld [vmem:[%s9397_s6] ss:$0 sm:$0xff] }
 0x452   :  { %v5788_v19 = vadd.f32 %v5787_v36, %v5725_v16  ;;  %v5656_v34 = vadd.f32 %v5655_v30, %v5593_v1 }
 0x454   :  { %v5789_v18 = vadd.f32 %v5788_v19, %v5726_v58 }
 0x456   :  { %v6989_v29 = vpop.f32.mrb[184].mxu1 }
 0x457   :  { %v3937_v55 = vadd.f32 %v6989_v29, %v8952_v5  ;;  %v3928_v43 = vpop.f32.mrb[185].mxu1 }
 0x458   :  { %v3929_v51 = vadd.f32 %v8952_v5, %v3928_v43  ;;  %v6990_v63 = vpop.f32.mrb[186].mxu1 }
 0x459   :  { %v3940_v27 = vadd.f32 %v6990_v63, %v8952_v5  ;;  %v3931_v48 = vpop.f32.mrb[187].mxu1  ;;  %v5596_v38 = vmul.f32 0.0, %v3937_v55 }
 0x45a   :  { %v5594_v44 = vmul.f32 0.0, %v3929_v51  ;;  %v3932_v4 = vadd.f32 %v8952_v5, %v3931_v48 }
 0x45b   :  { %v6601_v46 = vpack.c.bf16 %v3940_v27, %v3937_v55  ;;  %v5597_v53 = vmul.f32 0.0, %v3940_v27  ;;  %v5729_v59 = vmul.f32 %v5596_v38, %v5596_v38  ;;  %v5215_v55 = vlaneseq }
 0x45c   :  { %v5657_v35 = vadd.f32 %v5656_v34, %v5594_v44  ;;  %v5727_v62 = vmul.f32 %v5594_v44, %v5594_v44  ;;  %v6596_v9 = vpack.c.bf16 %v3932_v4, %v3929_v51  ;;  %v5595_v8 = vmul.f32 0.0, %v3932_v4 }
 0x45d   :  { %6801 = vst [vmem:[%s9396_s7 + $0xe8] sm:$0xff] %v6601_v46   ;;  %v5730_v10 = vmul.f32 %v5597_v53, %v5597_v53 }
 0x45e   :  { %v5790_v42 = vadd.f32 %v5789_v18, %v5727_v62  ;;  %6800 = vst [vmem:[%s9396_s7 + $0xe0] sm:$0xff] %v6596_v9   ;;  %v5658_v11 = vadd.f32 %v5657_v35, %v5595_v8  ;;  %v5728_v47 = vmul.f32 %v5595_v8, %v5595_v8 }
 0x460   :  { %v5659_v5 = vadd.f32 %v5658_v11, %v5596_v38  ;;  %v5791_v54 = vadd.f32 %v5790_v42, %v5728_v47  ;;  %v5216_v38 = vshrl.u32 %v5215_v55, 7 }
 0x462   :  { %v5792_v7 = vadd.f32 %v5791_v54, %v5729_v59  ;;  %v5660_v49 = vadd.f32 %v5659_v5, %v5597_v53  ;;  %vm5804_vm0 = vcmp.eq.s32.totalorder %v5216_v38, 0 }
 0x464   :  { %v5793_v12 = vadd.f32 %v5792_v7, %v5730_v10 }
 0x466   :  { %v6993_v56 = vpop.f32.mrb[188].mxu1 }
 0x467   :  { %v3953_v39 = vadd.f32 %v7540_v24, %v6993_v56  ;;  %v3944_v20 = vpop.f32.mrb[189].mxu1 }
 0x468   :  { %v3945_v32 = vadd.f32 %v7540_v24, %v3944_v20  ;;  %v6994_v60 = vpop.f32.mrb[190].mxu1 }
 0x469   :  { %v3956_v6 = vadd.f32 %v7540_v24, %v6994_v60  ;;  %v3947_v45 = vpop.f32.mrb[191].mxu1  ;;  %v5600_v14 = vmul.f32 0.0, %v3953_v39 }
 0x46a   :  { %v5598_v41 = vmul.f32 0.0, %v3945_v32  ;;  %v3948_v0 = vadd.f32 %v7540_v24, %v3947_v45 }
 0x46b   :  { %v6611_v28 = vpack.c.bf16 %v3956_v6, %v3953_v39  ;;  %v5601_v40 = vmul.f32 0.0, %v3956_v6  ;;  %v5733_v13 = vmul.f32 %v5600_v14, %v5600_v14 }
 0x46c   :  { %v5661_v50 = vadd.f32 %v5660_v49, %v5598_v41  ;;  %v5731_v23 = vmul.f32 %v5598_v41, %v5598_v41  ;;  %v6606_v52 = vpack.c.bf16 %v3948_v0, %v3945_v32  ;;  %v5599_v17 = vmul.f32 0.0, %v3948_v0 }
 0x46d   :  { %6803 = vst [vmem:[%s9396_s7 + $0xf8] sm:$0xff] %v6611_v28   ;;  %v5734_v26 = vmul.f32 %v5601_v40, %v5601_v40 }
 0x46e   :  { %v5794_v22 = vadd.f32 %v5793_v12, %v5731_v23  ;;  %6802 = vst [vmem:[%s9396_s7 + $0xf0] sm:$0xff] %v6606_v52   ;;  %v5662_v57 = vadd.f32 %v5661_v50, %v5599_v17  ;;  %v5732_v2 = vmul.f32 %v5599_v17, %v5599_v17  ;;  %v7013_v31 = vpop.f32.mrb[192].mxu1 }
 0x46f   :  { %v4640_v15 = vpop.f32.mrb[193].mxu1  ;;  %v4649_v1 = vadd.f32 %v7013_v31, %v9220_v25 }
 0x470   :  { %v5663_v21 = vadd.f32 %v5662_v57, %v5600_v14  ;;  %v5795_v3 = vadd.f32 %v5794_v22, %v5732_v2  ;;  %v7014_v61 = vpop.f32.mrb[194].mxu1  ;;  %v4641_v36 = vadd.f32 %v9220_v25, %v4640_v15 }
 0x471   :  { %v4652_v33 = vadd.f32 %v7014_v61, %v9220_v25  ;;  %v4643_v37 = vpop.f32.mrb[195].mxu1 }
 0x472   :  { %v5664_v16 = vadd.f32 %v5663_v21, %v5601_v40  ;;  %v5796_v30 = vadd.f32 %v5795_v3, %v5733_v13  ;;  %v4644_v58 = vadd.f32 %v9220_v25, %v4643_v37 }
 0x473   :  { %v6621_v19 = vpack.c.bf16 %v4652_v33, %v4649_v1 }
 0x474   :  { %v5665_v34 = vrot.slane %v5664_v16, 4  ;;  %v5797_v18 = vadd.f32 %v5796_v30, %v5734_v26  ;;  %v6616_v29 = vpack.c.bf16 %v4644_v58, %v4641_v36 }
 0x475   :  { %6804 = vst [vmem:[%s9398_s8 + $0x8] sm:$0xff] %v6621_v19  }
 0x476   :  { %v5666_v43 = vadd.f32 %v5665_v34, %v5664_v16  ;;  %v5798_v51 = vrot.slane %v5797_v18, 4  ;;  %6617 = vst [vmem:[%s9398_s8] sm:$0xff] %v6616_v29   ;;  %v7017_v63 = vpop.f32.mrb[196].mxu1 }
 0x477   :  { %v4656_v27 = vpop.f32.mrb[197].mxu1  ;;  %v4665_v46 = vadd.f32 %v7017_v63, %v9220_v25 }
 0x478   :  { %v5667_v48 = vrot.slane %v5666_v43, 2  ;;  %v5799_v44 = vadd.f32 %v5798_v51, %v5797_v18  ;;  %v7018_v4 = vpop.f32.mrb[198].mxu1  ;;  %v4657_v42 = vadd.f32 %v9220_v25, %v4656_v27 }
 0x479   :  { %v4668_v35 = vadd.f32 %v7018_v4, %v9220_v25  ;;  %v4659_v62 = vpop.f32.mrb[199].mxu1 }
 0x47a   :  { %v5668_v9 = vadd.f32 %v5667_v48, %v5666_v43  ;;  %v5800_v8 = vrot.slane %v5799_v44, 2  ;;  %v4660_v53 = vadd.f32 %v9220_v25, %v4659_v62 }
 0x47b   :  { %v6631_v11 = vpack.c.bf16 %v4668_v35, %v4665_v46 }
 0x47c   :  { %v5669_v47 = vrot.slane %v5668_v9, 1  ;;  %v5801_v59 = vadd.f32 %v5800_v8, %v5799_v44  ;;  %v6626_v5 = vpack.c.bf16 %v4660_v53, %v4657_v42 }
 0x47d   :  { %6806 = vst [vmem:[%s9398_s8 + $0x18] sm:$0xff] %v6631_v11  }
 0x47e   :  { %v5670_v54 = vadd.f32 %v5669_v47, %v5668_v9  ;;  %v5802_v10 = vrot.slane %v5801_v59, 1  ;;  %6805 = vst [vmem:[%s9398_s8 + $0x10] sm:$0xff] %v6626_v5   ;;  %v7021_v7 = vpop.f32.mrb[200].mxu1 }
 0x47f   :  { %v4672_v49 = vpop.f32.mrb[201].mxu1  ;;  %v4681_v39 = vadd.f32 %v7021_v7, %v9220_v25 }
 0x480   :  { %v5803_v12 = vadd.f32 %v5802_v10, %v5801_v59  ;;  %v5805_v56 = vsel %vm5804_vm0, %v5670_v54, 0.0  ;;  %v7022_v24 = vpop.f32.mrb[202].mxu1  ;;  %v4673_v6 = vadd.f32 %v9220_v25, %v4672_v49 }
 0x481   :  { %5806 = vst [vmem:[%s9399_s9] sm:$0xff] %v5805_v56  ;;  %v4684_v20 = vadd.f32 %v7022_v24, %v9220_v25  ;;  %v4675_v32 = vpop.f32.mrb[203].mxu1 }
 0x482   :  { %v5807_v60 = vsel %vm5804_vm0, %v5803_v12, 0.0  ;;  %v4676_v45 = vadd.f32 %v9220_v25, %v4675_v32 }
 0x483   :  { %5808 = vst [vmem:[%s9400_s10] sm:$0xff] %v5807_v60  ;;  %v6641_v41 = vpack.c.bf16 %v4684_v20, %v4681_v39 }
 0x484   :  { %v6636_v0 = vpack.c.bf16 %v4676_v45, %v4673_v6 }
 0x485   :  { %6808 = vst [vmem:[%s9398_s8 + $0x28] sm:$0xff] %v6641_v41  }
 0x486   :  { %6807 = vst [vmem:[%s9398_s8 + $0x20] sm:$0xff] %v6636_v0   ;;  %v7025_v14 = vpop.f32.mrb[204].mxu1 }
 0x487   :  { %v4688_v28 = vpop.f32.mrb[205].mxu1  ;;  %v4697_v23 = vadd.f32 %v7025_v14, %v9220_v25 }
 0x488   :  { %v7026_v50 = vpop.f32.mrb[206].mxu1  ;;  %v4689_v40 = vadd.f32 %v9220_v25, %v4688_v28 }
 0x489   :  { %v4700_v52 = vadd.f32 %v7026_v50, %v9220_v25  ;;  %v4691_v17 = vpop.f32.mrb[207].mxu1 }
 0x48a   :  { %v4692_v22 = vadd.f32 %v9220_v25, %v4691_v17 }
 0x48b   :  { %v6651_v57 = vpack.c.bf16 %v4700_v52, %v4697_v23 }
 0x48c   :  { %v6646_v2 = vpack.c.bf16 %v4692_v22, %v4689_v40 }
 0x48d   :  { %6810 = vst [vmem:[%s9398_s8 + $0x38] sm:$0xff] %v6651_v57  }
 0x48e   :  { %6809 = vst [vmem:[%s9398_s8 + $0x30] sm:$0xff] %v6646_v2   ;;  %v7029_v31 = vpop.f32.mrb[208].mxu1 }
 0x48f   :  { %v4704_v15 = vpop.f32.mrb[209].mxu1  ;;  %v4713_v21 = vadd.f32 %v7029_v31, %v9220_v25 }
 0x490   :  { %v7030_v13 = vpop.f32.mrb[210].mxu1  ;;  %v4705_v26 = vadd.f32 %v9220_v25, %v4704_v15 }
 0x491   :  { %v4716_v3 = vadd.f32 %v7030_v13, %v9220_v25  ;;  %v4707_v61 = vpop.f32.mrb[211].mxu1 }
 0x492   :  { %v4708_v1 = vadd.f32 %v9220_v25, %v4707_v61 }
 0x493   :  { %v6661_v33 = vpack.c.bf16 %v4716_v3, %v4713_v21 }
 0x494   :  { %v6656_v37 = vpack.c.bf16 %v4708_v1, %v4705_v26 }
 0x495   :  { %6812 = vst [vmem:[%s9398_s8 + $0x48] sm:$0xff] %v6661_v33  }
 0x496   :  { %6811 = vst [vmem:[%s9398_s8 + $0x40] sm:$0xff] %v6656_v37   ;;  %v7033_v16 = vpop.f32.mrb[212].mxu1 }
 0x497   :  { %v4720_v30 = vpop.f32.mrb[213].mxu1  ;;  %v4729_v58 = vadd.f32 %v7033_v16, %v9220_v25 }
 0x498   :  { %v7034_v36 = vpop.f32.mrb[214].mxu1  ;;  %v4721_v18 = vadd.f32 %v9220_v25, %v4720_v30 }
 0x499   :  { %v4732_v19 = vadd.f32 %v7034_v36, %v9220_v25  ;;  %v4723_v34 = vpop.f32.mrb[215].mxu1 }
 0x49a   :  { %v4724_v29 = vadd.f32 %v9220_v25, %v4723_v34 }
 0x49b   :  { %v6671_v55 = vpack.c.bf16 %v4732_v19, %v4729_v58 }
 0x49c   :  { %v6666_v43 = vpack.c.bf16 %v4724_v29, %v4721_v18 }
 0x49d   :  { %6814 = vst [vmem:[%s9398_s8 + $0x58] sm:$0xff] %v6671_v55  }
 0x49e   :  { %6813 = vst [vmem:[%s9398_s8 + $0x50] sm:$0xff] %v6666_v43   ;;  %v7037_v51 = vpop.f32.mrb[216].mxu1 }
 0x49f   :  { %v4736_v63 = vpop.f32.mrb[217].mxu1  ;;  %v4745_v48 = vadd.f32 %v7037_v51, %v9220_v25 }
 0x4a0   :  { %v7038_v27 = vpop.f32.mrb[218].mxu1  ;;  %v4737_v38 = vadd.f32 %v9220_v25, %v4736_v63 }
 0x4a1   :  { %v4748_v44 = vadd.f32 %v7038_v27, %v9220_v25  ;;  %v4739_v4 = vpop.f32.mrb[219].mxu1 }
 0x4a2   :  { %v4740_v46 = vadd.f32 %v9220_v25, %v4739_v4 }
 0x4a3   :  { %v6681_v35 = vpack.c.bf16 %v4748_v44, %v4745_v48 }
 0x4a4   :  { %v6676_v62 = vpack.c.bf16 %v4740_v46, %v4737_v38 }
 0x4a5   :  { %6816 = vst [vmem:[%s9398_s8 + $0x68] sm:$0xff] %v6681_v35  }
 0x4a6   :  { %6815 = vst [vmem:[%s9398_s8 + $0x60] sm:$0xff] %v6676_v62   ;;  %v7041_v9 = vpop.f32.mrb[220].mxu1 }
 0x4a7   :  { %v4752_v8 = vpop.f32.mrb[221].mxu1  ;;  %v4761_v53 = vadd.f32 %v7041_v9, %v9220_v25 }
 0x4a8   :  { %v7042_v42 = vpop.f32.mrb[222].mxu1  ;;  %v4753_v59 = vadd.f32 %v9220_v25, %v4752_v8 }
 0x4a9   :  { %v4764_v11 = vadd.f32 %v7042_v42, %v9220_v25  ;;  %v4755_v47 = vpop.f32.mrb[223].mxu1 }
 0x4aa   :  { %v4756_v5 = vadd.f32 %v9220_v25, %v4755_v47 }
 0x4ab   :  { %v6691_v54 = vpack.c.bf16 %v4764_v11, %v4761_v53 }
 0x4ac   :  { %v6686_v10 = vpack.c.bf16 %v4756_v5, %v4753_v59 }
 0x4ad   :  { %6818 = vst [vmem:[%s9398_s8 + $0x78] sm:$0xff] %v6691_v54  }
 0x4ae   :  { %6817 = vst [vmem:[%s9398_s8 + $0x70] sm:$0xff] %v6686_v10   ;;  %v7045_v7 = vpop.f32.mrb[224].mxu1 }
 0x4af   :  { %v4768_v49 = vpop.f32.mrb[225].mxu1  ;;  %v4777_v56 = vadd.f32 %v7045_v7, %v9220_v25 }
 0x4b0   :  { %v7046_v12 = vpop.f32.mrb[226].mxu1  ;;  %v4769_v20 = vadd.f32 %v9220_v25, %v4768_v49 }
 0x4b1   :  { %v4780_v24 = vadd.f32 %v7046_v12, %v9220_v25  ;;  %v4771_v39 = vpop.f32.mrb[227].mxu1 }
 0x4b2   :  { %v4772_v32 = vadd.f32 %v9220_v25, %v4771_v39 }
 0x4b3   :  { %v6701_v60 = vpack.c.bf16 %v4780_v24, %v4777_v56 }
 0x4b4   :  { %v6696_v6 = vpack.c.bf16 %v4772_v32, %v4769_v20 }
 0x4b5   :  { %6820 = vst [vmem:[%s9398_s8 + $0x88] sm:$0xff] %v6701_v60  }
 0x4b6   :  { %6819 = vst [vmem:[%s9398_s8 + $0x80] sm:$0xff] %v6696_v6   ;;  %v7049_v45 = vpop.f32.mrb[228].mxu1 }
 0x4b7   :  { %v4784_v41 = vpop.f32.mrb[229].mxu1  ;;  %v4793_v14 = vadd.f32 %v7049_v45, %v9220_v25 }
 0x4b8   :  { %v7050_v0 = vpop.f32.mrb[230].mxu1  ;;  %v4785_v23 = vadd.f32 %v9220_v25, %v4784_v41 }
 0x4b9   :  { %v4796_v28 = vadd.f32 %v7050_v0, %v9220_v25  ;;  %v4787_v50 = vpop.f32.mrb[231].mxu1 }
 0x4ba   :  { %v4788_v52 = vadd.f32 %v9220_v25, %v4787_v50 }
 0x4bb   :  { %v6711_v17 = vpack.c.bf16 %v4796_v28, %v4793_v14 }
 0x4bc   :  { %v6706_v40 = vpack.c.bf16 %v4788_v52, %v4785_v23 }
 0x4bd   :  { %6822 = vst [vmem:[%s9398_s8 + $0x98] sm:$0xff] %v6711_v17  }
 0x4be   :  { %6821 = vst [vmem:[%s9398_s8 + $0x90] sm:$0xff] %v6706_v40   ;;  %v7053_v22 = vpop.f32.mrb[232].mxu1 }
 0x4bf   :  { %v4800_v57 = vpop.f32.mrb[233].mxu1  ;;  %v4809_v31 = vadd.f32 %v7053_v22, %v9220_v25 }
 0x4c0   :  { %v7054_v2 = vpop.f32.mrb[234].mxu1  ;;  %v4801_v21 = vadd.f32 %v9220_v25, %v4800_v57 }
 0x4c1   :  { %v4812_v15 = vadd.f32 %v7054_v2, %v9220_v25  ;;  %v4803_v13 = vpop.f32.mrb[235].mxu1 }
 0x4c2   :  { %v4804_v3 = vadd.f32 %v9220_v25, %v4803_v13 }
 0x4c3   :  { %v6721_v61 = vpack.c.bf16 %v4812_v15, %v4809_v31 }
 0x4c4   :  { %v6716_v26 = vpack.c.bf16 %v4804_v3, %v4801_v21 }
 0x4c5   :  { %6824 = vst [vmem:[%s9398_s8 + $0xa8] sm:$0xff] %v6721_v61  }
 0x4c6   :  { %6823 = vst [vmem:[%s9398_s8 + $0xa0] sm:$0xff] %v6716_v26   ;;  %v7057_v1 = vpop.f32.mrb[236].mxu1 }
 0x4c7   :  { %v4816_v33 = vpop.f32.mrb[237].mxu1  ;;  %v4825_v16 = vadd.f32 %v7057_v1, %v9220_v25 }
 0x4c8   :  { %v7058_v37 = vpop.f32.mrb[238].mxu1  ;;  %v4817_v58 = vadd.f32 %v9220_v25, %v4816_v33 }
 0x4c9   :  { %v4828_v30 = vadd.f32 %v7058_v37, %v9220_v25  ;;  %v4819_v36 = vpop.f32.mrb[239].mxu1 }
 0x4ca   :  { %v4820_v19 = vadd.f32 %v9220_v25, %v4819_v36 }
 0x4cb   :  { %v6731_v34 = vpack.c.bf16 %v4828_v30, %v4825_v16 }
 0x4cc   :  { %v6726_v18 = vpack.c.bf16 %v4820_v19, %v4817_v58 }
 0x4cd   :  { %6826 = vst [vmem:[%s9398_s8 + $0xb8] sm:$0xff] %v6731_v34  }
 0x4ce   :  { %6825 = vst [vmem:[%s9398_s8 + $0xb0] sm:$0xff] %v6726_v18   ;;  %v7061_v29 = vpop.f32.mrb[240].mxu1 }
 0x4cf   :  { %v4832_v55 = vpop.f32.mrb[241].mxu1  ;;  %v4841_v51 = vadd.f32 %v7061_v29, %v9220_v25 }
 0x4d0   :  { %v7062_v43 = vpop.f32.mrb[242].mxu1  ;;  %v4833_v48 = vadd.f32 %v9220_v25, %v4832_v55 }
 0x4d1   :  { %v4844_v63 = vadd.f32 %v7062_v43, %v9220_v25  ;;  %v4835_v27 = vpop.f32.mrb[243].mxu1 }
 0x4d2   :  { %v4836_v44 = vadd.f32 %v9220_v25, %v4835_v27 }
 0x4d3   :  { %v6741_v4 = vpack.c.bf16 %v4844_v63, %v4841_v51 }
 0x4d4   :  { %v6736_v38 = vpack.c.bf16 %v4836_v44, %v4833_v48 }
 0x4d5   :  { %6828 = vst [vmem:[%s9398_s8 + $0xc8] sm:$0xff] %v6741_v4  }
 0x4d6   :  { %6827 = vst [vmem:[%s9398_s8 + $0xc0] sm:$0xff] %v6736_v38   ;;  %v7065_v46 = vpop.f32.mrb[244].mxu1 }
 0x4d7   :  { %v4848_v35 = vpop.f32.mrb[245].mxu1  ;;  %v4857_v9 = vadd.f32 %v7065_v46, %v9220_v25 }
 0x4d8   :  { %v7066_v62 = vpop.f32.mrb[246].mxu1  ;;  %v4849_v53 = vadd.f32 %v9220_v25, %v4848_v35 }
 0x4d9   :  { %v4860_v8 = vadd.f32 %v7066_v62, %v9220_v25  ;;  %v4851_v42 = vpop.f32.mrb[247].mxu1 }
 0x4da   :  { %v4852_v11 = vadd.f32 %v9220_v25, %v4851_v42 }
 0x4db   :  { %v6751_v47 = vpack.c.bf16 %v4860_v8, %v4857_v9 }
 0x4dc   :  { %v6746_v59 = vpack.c.bf16 %v4852_v11, %v4849_v53 }
 0x4dd   :  { %6830 = vst [vmem:[%s9398_s8 + $0xd8] sm:$0xff] %v6751_v47  }
 0x4de   :  { %6829 = vst [vmem:[%s9398_s8 + $0xd0] sm:$0xff] %v6746_v59   ;;  %v7069_v5 = vpop.f32.mrb[248].mxu1 }
 0x4df   :  { %v4864_v54 = vpop.f32.mrb[249].mxu1  ;;  %v4873_v7 = vadd.f32 %v7069_v5, %v9220_v25 }
 0x4e0   :  { %v7070_v10 = vpop.f32.mrb[250].mxu1  ;;  %v4865_v56 = vadd.f32 %v9220_v25, %v4864_v54 }
 0x4e1   :  { %v4876_v49 = vadd.f32 %v7070_v10, %v9220_v25  ;;  %v4867_v12 = vpop.f32.mrb[251].mxu1 }
 0x4e2   :  { %v4868_v24 = vadd.f32 %v9220_v25, %v4867_v12 }
 0x4e3   :  { %v6761_v39 = vpack.c.bf16 %v4876_v49, %v4873_v7 }
 0x4e4   :  { %v6756_v20 = vpack.c.bf16 %v4868_v24, %v4865_v56 }
 0x4e5   :  { %6832 = vst [vmem:[%s9398_s8 + $0xe8] sm:$0xff] %v6761_v39  }
 0x4e6   :  { %6831 = vst [vmem:[%s9398_s8 + $0xe0] sm:$0xff] %v6756_v20   ;;  %v7073_v32 = vpop.f32.mrb[252].mxu1 }
 0x4e7   :  { %v4880_v60 = vpop.f32.mrb[253].mxu1  ;;  %v4889_v45 = vadd.f32 %v7073_v32, %v9220_v25 }
 0x4e8   :  { %v7074_v6 = vpop.f32.mrb[254].mxu1  ;;  %v4881_v14 = vadd.f32 %v9220_v25, %v4880_v60 }
 0x4e9   :  { %v4892_v41 = vadd.f32 %v7074_v6, %v9220_v25  ;;  %v4883_v0 = vpop.f32.mrb[255].mxu1 }
 0x4ea   :  { %v4884_v28 = vadd.f32 %v9220_v25, %v4883_v0 }
 0x4eb   :  { %v6771_v50 = vpack.c.bf16 %v4892_v41, %v4889_v45 }
 0x4ec   :  { %v6766_v23 = vpack.c.bf16 %v4884_v28, %v4881_v14 }
 0x4ed   :  { %6834 = vst [vmem:[%s9398_s8 + $0xf8] sm:$0xff] %v6771_v50  }
 0x4ee   :  { %6833 = vst [vmem:[%s9398_s8 + $0xf0] sm:$0xff] %v6766_v23  }

</bundles_post_ra>
